<compile_context>
chip_gen: v6e
topology: v6e:2x2x1
jax: 0.10.0
libtpu: 0.0.40
codegen_flags: <defaults>
</compile_context>

<pallas_src>
import jax
import jax.numpy as jnp
from jax.experimental import pallas as pl
from jax.experimental.pallas import tpu as pltpu


# ----------------------------- helpers (elementwise) -----------------------------

def _softplus(x):
    # numerically stable softplus, pure elementwise (VPU/EUP friendly)
    return jnp.where(x > 20.0, x, jnp.log1p(jnp.exp(jnp.minimum(x, 20.0))))


def _sigmoid(x):
    return 1.0 / (1.0 + jnp.exp(-x))


# ------------------------------ fused NeRF kernel --------------------------------
# One grid step renders TILE_RAYS rays end-to-end.
# Layout: samples on sublanes, rays on lanes  ->  every slab is (S, TR).

def fused_nerf_kernel(pts_ref, w1_ref, b1_ref, w2_ref, b2_ref,
                      deltas_ref, ltri_ref, out_ref):
    S = pts_ref.shape[2]
    TR = pts_ref.shape[3]
    H = b1_ref.shape[0]

    px = pts_ref[0, 0]          # (S, TR)
    py = pts_ref[0, 1]
    pz = pts_ref[0, 2]

    # ---- implicit MLP: both layers as VPU broadcast-FMAs, weights from SMEM ----
    zeros = jnp.zeros((S, TR), jnp.float32)
    o_sig = zeros + b2_ref[0]
    o_r = zeros + b2_ref[1]
    o_g = zeros + b2_ref[2]
    o_b = zeros + b2_ref[3]
    for k in range(H):                                   # static unroll, H small
        h = (px * w1_ref[k]
             + py * w1_ref[H + k]
             + pz * w1_ref[2 * H + k]
             + b1_ref[k])
        h = jnp.maximum(h, 0.0)
        o_sig = o_sig + h * w2_ref[4 * k + 0]
        o_r = o_r + h * w2_ref[4 * k + 1]
        o_g = o_g + h * w2_ref[4 * k + 2]
        o_b = o_b + h * w2_ref[4 * k + 3]

    # per-channel activations (no iota/where select)
    sigma = _softplus(o_sig)                             # (S, TR)
    r_c = _sigmoid(o_r)
    g_c = _sigmoid(o_g)
    b_c = _sigmoid(o_b)

    # ---- emission-absorption renderer ----
    neg_sd = -sigma * deltas_ref[...]                    # (S, TR) * (S, 1)
    alpha = 1.0 - jnp.exp(neg_sd)
    # exclusive prefix sum over samples via strictly-lower-tri matmul (otherwise-idle MXU)
    cum = jnp.dot(ltri_ref[...], neg_sd, preferred_element_type=jnp.float32)  # (S, TR)
    w = alpha * jnp.exp(cum)                             # compositing weights

    cr = jnp.sum(w * r_c, axis=0, keepdims=True)         # (1, TR) lane-dense rows
    cg = jnp.sum(w * g_c, axis=0, keepdims=True)
    cb = jnp.sum(w * b_c, axis=0, keepdims=True)
    op = jnp.sum(w, axis=0, keepdims=True)

    out_ref[0] = jnp.concatenate([cr, cg, cb, op], axis=0)   # (4, TR)


# --------------------------------- full forward ----------------------------------

def nerf_forward(points, deltas, w1, b1, w2, b2, *, tile_rays=8):
    """points: (N_rays, N_samples, 3); returns (N_rays, 4) = rgb + opacity."""
    N, S, _ = points.shape

    # ceil-div grid + padding: no silently dropped tail rays
    num_tiles = (N + tile_rays - 1) // tile_rays
    n_pad = num_tiles * tile_rays
    pts = points
    if n_pad != N:
        pts = jnp.pad(points, ((0, n_pad - N), (0, 0), (0, 0)))

    # (n_pad, S, 3) -> (tiles, 3, S, TR): samples on sublanes, rays on lanes
    pts_tiled = pts.reshape(num_tiles, tile_rays, S, 3).transpose(0, 3, 2, 1)

    deltas_col = jnp.reshape(deltas, (S, 1)).astype(jnp.float32)        # per-sample delta
    # strictly-lower-triangular mask: ltri[i, j] = 1 iff j < i  (exclusive prefix sum)
    ltri = (jnp.arange(S)[:, None] > jnp.arange(S)[None, :]).astype(jnp.float32)

    # flatten small MLP params for SMEM scalar access
    w1f = w1.reshape(-1).astype(jnp.float32)     # (3*H,)  index d*H + k
    b1f = b1.reshape(-1).astype(jnp.float32)     # (H,)
    w2f = w2.reshape(-1).astype(jnp.float32)     # (H*4,)  index k*4 + c
    b2f = b2.reshape(-1).astype(jnp.float32)     # (4,)

    out_tiled = pl.pallas_call(
        fused_nerf_kernel,
        out_shape=jax.ShapeDtypeStruct((num_tiles, 4, tile_rays), jnp.float32),
        grid_spec=pltpu.PrefetchScalarGridSpec(
            num_scalar_prefetch=0,
            grid=(num_tiles,),
            in_specs=[
                pl.BlockSpec((1, 3, S, tile_rays), lambda i: (i, 0, 0, 0)),   # points
                pl.BlockSpec(memory_space=pltpu.MemorySpace.SMEM),            # w1 flat
                pl.BlockSpec(memory_space=pltpu.MemorySpace.SMEM),            # b1 flat
                pl.BlockSpec(memory_space=pltpu.MemorySpace.SMEM),            # w2 flat
                pl.BlockSpec(memory_space=pltpu.MemorySpace.SMEM),            # b2 flat
                pl.BlockSpec((S, 1), lambda i: (0, 0)),                       # deltas
                pl.BlockSpec((S, S), lambda i: (0, 0)),                       # lower-tri
            ],
            out_specs=pl.BlockSpec((1, 4, tile_rays), lambda i: (i, 0, 0)),
        ),
        compiler_params=pltpu.CompilerParams(
            dimension_semantics=("parallel",),
        ),
    )(pts_tiled, w1f, b1f, w2f, b2f, deltas_col, ltri)

    # (tiles, 4, TR) -> (N, 4)
    out = out_tiled.transpose(0, 2, 1).reshape(n_pad, 4)[:N]
    return out


# ------------------------------- pure-JAX reference -------------------------------

def reference(points, deltas, w1, b1, w2, b2):
    N, S, _ = points.shape
    x = points.reshape(N * S, 3)
    h = jnp.maximum(x @ w1 + b1, 0.0)
    o = h @ w2 + b2
    sigma = _softplus(o[:, 0]).reshape(N, S)
    rgb = _sigmoid(o[:, 1:4]).reshape(N, S, 3)
    neg_sd = -sigma * deltas                          # (N, S)
    alpha = 1.0 - jnp.exp(neg_sd)
    cum = jnp.cumsum(neg_sd, axis=1) - neg_sd         # exclusive cumsum
    w = alpha * jnp.exp(cum)
    color = jnp.sum(w[:, :, None] * rgb, axis=1)      # (N, 3)
    opacity = jnp.sum(w, axis=1, keepdims=True)       # (N, 1)
    return jnp.concatenate([color, opacity], axis=1)


if __name__ == "__main__":
    # TODO(synk): the torch Model's config-driven sampler/implicit/renderer registries are
    # replaced by the single stratified-sampler + MLP + EA-renderer path implemented here.
    N_RAYS, N_SAMPLES, HIDDEN = 16, 16, 32
    near, far = 1.0, 3.0

    key = jax.random.PRNGKey(0)
    k_o, k_d, k1, k2, k3, k4 = jax.random.split(key, 6)

    # ray bundle
    origins = jax.random.normal(k_o, (N_RAYS, 3), jnp.float32) * 0.1
    dirs = jax.random.normal(k_d, (N_RAYS, 3), jnp.float32)
    dirs = dirs / jnp.linalg.norm(dirs, axis=-1, keepdims=True)

    # sampler (stratified / uniform depths shared across rays)
    depths = jnp.linspace(near, far, N_SAMPLES, dtype=jnp.float32)
    points = origins[:, None, :] + depths[None, :, None] * dirs[:, None, :]   # (N, S, 3)
    delta_val = (far - near) / (N_SAMPLES - 1)
    deltas = jnp.full((1, N_SAMPLES), delta_val, jnp.float32)

    # implicit-function parameters (deterministic)
    w1 = jax.random.normal(k1, (3, HIDDEN), jnp.float32) * 0.5
    b1 = jax.random.normal(k2, (HIDDEN,), jnp.float32) * 0.1
    w2 = jax.random.normal(k3, (HIDDEN, 4), jnp.float32) * 0.3
    b2 = jax.random.normal(k4, (4,), jnp.float32) * 0.1

    out = jax.block_until_ready(
        nerf_forward(points, deltas, w1, b1, w2, b2, tile_rays=8))   # grid = 2 steps
    ref = reference(points, deltas, w1, b1, w2, b2)

    assert out.shape == (N_RAYS, 4)
    assert jnp.allclose(out, ref, atol=1e-4, rtol=1e-4), float(jnp.max(jnp.abs(out - ref)))
    print("KERNEL_OK")
</pallas_src>

<mosaic_0001>
module attributes {stable_mosaic.version = 11 : i64} {
  func.func @fused_nerf_kernel(%arg0: i32, %arg1: memref<1x3x16x8xf32, #tpu.memory_space<vmem>>, %arg2: memref<96xf32, #tpu.memory_space<smem>>, %arg3: memref<32xf32, #tpu.memory_space<smem>>, %arg4: memref<128xf32, #tpu.memory_space<smem>>, %arg5: memref<4xf32, #tpu.memory_space<smem>>, %arg6: memref<16x1xf32, #tpu.memory_space<vmem>>, %arg7: memref<16x16xf32, #tpu.memory_space<vmem>>, %arg8: memref<1x4x8xf32, #tpu.memory_space<vmem>>) attributes {dimension_semantics = [#tpu.dimension_semantics<parallel>], iteration_bounds = array<i64: 2>, scalar_prefetch = 0 : i64, scratch_operands = 0 : i64, tpu.core_type = #tpu.core_type<tc>, window_params = [{transform_indices = @transform_0, window_bounds = array<i64: 1, 3, 16, 8>}, {transform_indices = @transform_1, window_bounds = array<i64: 96>}, {transform_indices = @transform_2, window_bounds = array<i64: 32>}, {transform_indices = @transform_3, window_bounds = array<i64: 128>}, {transform_indices = @transform_4, window_bounds = array<i64: 4>}, {pipeline_mode = #tpu.pipeline_mode<synchronous>, transform_indices = @transform_5, window_bounds = array<i64: 16, 1>}, {pipeline_mode = #tpu.pipeline_mode<synchronous>, transform_indices = @transform_6, window_bounds = array<i64: 16, 16>}, {transform_indices = @transform_7, window_bounds = array<i64: 1, 4, 8>}]} {
    %c0 = arith.constant 0 : index
    %c0_0 = arith.constant 0 : index
    %c0_1 = arith.constant 0 : index
    %c0_2 = arith.constant 0 : index
    %0 = vector.load %arg1[%c0, %c0_0, %c0_1, %c0_2] : memref<1x3x16x8xf32, #tpu.memory_space<vmem>>, vector<1x1x16x8xf32>
    %1 = vector.shape_cast %0 : vector<1x1x16x8xf32> to vector<16x8xf32>
    %c0_3 = arith.constant 0 : index
    %c1 = arith.constant 1 : index
    %c0_4 = arith.constant 0 : index
    %c0_5 = arith.constant 0 : index
    %2 = vector.load %arg1[%c0_3, %c1, %c0_4, %c0_5] : memref<1x3x16x8xf32, #tpu.memory_space<vmem>>, vector<1x1x16x8xf32>
    %3 = vector.shape_cast %2 : vector<1x1x16x8xf32> to vector<16x8xf32>
    %c0_6 = arith.constant 0 : index
    %c2 = arith.constant 2 : index
    %c0_7 = arith.constant 0 : index
    %c0_8 = arith.constant 0 : index
    %4 = vector.load %arg1[%c0_6, %c2, %c0_7, %c0_8] : memref<1x3x16x8xf32, #tpu.memory_space<vmem>>, vector<1x1x16x8xf32>
    %5 = vector.shape_cast %4 : vector<1x1x16x8xf32> to vector<16x8xf32>
    %cst = arith.constant 0.000000e+00 : f32
    %6 = vector.broadcast %cst : f32 to vector<16x8xf32>
    %c0_9 = arith.constant 0 : index
    %7 = memref.load %arg5[%c0_9] : memref<4xf32, #tpu.memory_space<smem>>
    %8 = vector.broadcast %7 : f32 to vector<16x8xf32>
    %9 = arith.addf %6, %8 : vector<16x8xf32>
    %c1_10 = arith.constant 1 : index
    %10 = memref.load %arg5[%c1_10] : memref<4xf32, #tpu.memory_space<smem>>
    %11 = vector.broadcast %10 : f32 to vector<16x8xf32>
    %12 = arith.addf %6, %11 : vector<16x8xf32>
    %c2_11 = arith.constant 2 : index
    %13 = memref.load %arg5[%c2_11] : memref<4xf32, #tpu.memory_space<smem>>
    %14 = vector.broadcast %13 : f32 to vector<16x8xf32>
    %15 = arith.addf %6, %14 : vector<16x8xf32>
    %c3 = arith.constant 3 : index
    %16 = memref.load %arg5[%c3] : memref<4xf32, #tpu.memory_space<smem>>
    %17 = vector.broadcast %16 : f32 to vector<16x8xf32>
    %18 = arith.addf %6, %17 : vector<16x8xf32>
    %c0_12 = arith.constant 0 : index
    %19 = memref.load %arg2[%c0_12] : memref<96xf32, #tpu.memory_space<smem>>
    %20 = vector.broadcast %19 : f32 to vector<16x8xf32>
    %21 = arith.mulf %1, %20 : vector<16x8xf32>
    %c32 = arith.constant 32 : index
    %22 = memref.load %arg2[%c32] : memref<96xf32, #tpu.memory_space<smem>>
    %23 = vector.broadcast %22 : f32 to vector<16x8xf32>
    %24 = arith.mulf %3, %23 : vector<16x8xf32>
    %25 = arith.addf %21, %24 : vector<16x8xf32>
    %c64 = arith.constant 64 : index
    %26 = memref.load %arg2[%c64] : memref<96xf32, #tpu.memory_space<smem>>
    %27 = vector.broadcast %26 : f32 to vector<16x8xf32>
    %28 = arith.mulf %5, %27 : vector<16x8xf32>
    %29 = arith.addf %25, %28 : vector<16x8xf32>
    %c0_13 = arith.constant 0 : index
    %30 = memref.load %arg3[%c0_13] : memref<32xf32, #tpu.memory_space<smem>>
    %31 = vector.broadcast %30 : f32 to vector<16x8xf32>
    %32 = arith.addf %29, %31 : vector<16x8xf32>
    %cst_14 = arith.constant 0.000000e+00 : f32
    %33 = vector.broadcast %cst_14 : f32 to vector<16x8xf32>
    %34 = arith.maximumf %32, %33 : vector<16x8xf32>
    %c0_15 = arith.constant 0 : index
    %35 = memref.load %arg4[%c0_15] : memref<128xf32, #tpu.memory_space<smem>>
    %36 = vector.broadcast %35 : f32 to vector<16x8xf32>
    %37 = arith.mulf %34, %36 : vector<16x8xf32>
    %38 = arith.addf %9, %37 : vector<16x8xf32>
    %c1_16 = arith.constant 1 : index
    %39 = memref.load %arg4[%c1_16] : memref<128xf32, #tpu.memory_space<smem>>
    %40 = vector.broadcast %39 : f32 to vector<16x8xf32>
    %41 = arith.mulf %34, %40 : vector<16x8xf32>
    %42 = arith.addf %12, %41 : vector<16x8xf32>
    %c2_17 = arith.constant 2 : index
    %43 = memref.load %arg4[%c2_17] : memref<128xf32, #tpu.memory_space<smem>>
    %44 = vector.broadcast %43 : f32 to vector<16x8xf32>
    %45 = arith.mulf %34, %44 : vector<16x8xf32>
    %46 = arith.addf %15, %45 : vector<16x8xf32>
    %c3_18 = arith.constant 3 : index
    %47 = memref.load %arg4[%c3_18] : memref<128xf32, #tpu.memory_space<smem>>
    %48 = vector.broadcast %47 : f32 to vector<16x8xf32>
    %49 = arith.mulf %34, %48 : vector<16x8xf32>
    %50 = arith.addf %18, %49 : vector<16x8xf32>
    %c1_19 = arith.constant 1 : index
    %51 = memref.load %arg2[%c1_19] : memref<96xf32, #tpu.memory_space<smem>>
    %52 = vector.broadcast %51 : f32 to vector<16x8xf32>
    %53 = arith.mulf %1, %52 : vector<16x8xf32>
    %c33 = arith.constant 33 : index
    %54 = memref.load %arg2[%c33] : memref<96xf32, #tpu.memory_space<smem>>
    %55 = vector.broadcast %54 : f32 to vector<16x8xf32>
    %56 = arith.mulf %3, %55 : vector<16x8xf32>
    %57 = arith.addf %53, %56 : vector<16x8xf32>
    %c65 = arith.constant 65 : index
    %58 = memref.load %arg2[%c65] : memref<96xf32, #tpu.memory_space<smem>>
    %59 = vector.broadcast %58 : f32 to vector<16x8xf32>
    %60 = arith.mulf %5, %59 : vector<16x8xf32>
    %61 = arith.addf %57, %60 : vector<16x8xf32>
    %c1_20 = arith.constant 1 : index
    %62 = memref.load %arg3[%c1_20] : memref<32xf32, #tpu.memory_space<smem>>
    %63 = vector.broadcast %62 : f32 to vector<16x8xf32>
    %64 = arith.addf %61, %63 : vector<16x8xf32>
    %cst_21 = arith.constant 0.000000e+00 : f32
    %65 = vector.broadcast %cst_21 : f32 to vector<16x8xf32>
    %66 = arith.maximumf %64, %65 : vector<16x8xf32>
    %c4 = arith.constant 4 : index
    %67 = memref.load %arg4[%c4] : memref<128xf32, #tpu.memory_space<smem>>
    %68 = vector.broadcast %67 : f32 to vector<16x8xf32>
    %69 = arith.mulf %66, %68 : vector<16x8xf32>
    %70 = arith.addf %38, %69 : vector<16x8xf32>
    %c5 = arith.constant 5 : index
    %71 = memref.load %arg4[%c5] : memref<128xf32, #tpu.memory_space<smem>>
    %72 = vector.broadcast %71 : f32 to vector<16x8xf32>
    %73 = arith.mulf %66, %72 : vector<16x8xf32>
    %74 = arith.addf %42, %73 : vector<16x8xf32>
    %c6 = arith.constant 6 : index
    %75 = memref.load %arg4[%c6] : memref<128xf32, #tpu.memory_space<smem>>
    %76 = vector.broadcast %75 : f32 to vector<16x8xf32>
    %77 = arith.mulf %66, %76 : vector<16x8xf32>
    %78 = arith.addf %46, %77 : vector<16x8xf32>
    %c7 = arith.constant 7 : index
    %79 = memref.load %arg4[%c7] : memref<128xf32, #tpu.memory_space<smem>>
    %80 = vector.broadcast %79 : f32 to vector<16x8xf32>
    %81 = arith.mulf %66, %80 : vector<16x8xf32>
    %82 = arith.addf %50, %81 : vector<16x8xf32>
    %c2_22 = arith.constant 2 : index
    %83 = memref.load %arg2[%c2_22] : memref<96xf32, #tpu.memory_space<smem>>
    %84 = vector.broadcast %83 : f32 to vector<16x8xf32>
    %85 = arith.mulf %1, %84 : vector<16x8xf32>
    %c34 = arith.constant 34 : index
    %86 = memref.load %arg2[%c34] : memref<96xf32, #tpu.memory_space<smem>>
    %87 = vector.broadcast %86 : f32 to vector<16x8xf32>
    %88 = arith.mulf %3, %87 : vector<16x8xf32>
    %89 = arith.addf %85, %88 : vector<16x8xf32>
    %c66 = arith.constant 66 : index
    %90 = memref.load %arg2[%c66] : memref<96xf32, #tpu.memory_space<smem>>
    %91 = vector.broadcast %90 : f32 to vector<16x8xf32>
    %92 = arith.mulf %5, %91 : vector<16x8xf32>
    %93 = arith.addf %89, %92 : vector<16x8xf32>
    %c2_23 = arith.constant 2 : index
    %94 = memref.load %arg3[%c2_23] : memref<32xf32, #tpu.memory_space<smem>>
    %95 = vector.broadcast %94 : f32 to vector<16x8xf32>
    %96 = arith.addf %93, %95 : vector<16x8xf32>
    %cst_24 = arith.constant 0.000000e+00 : f32
    %97 = vector.broadcast %cst_24 : f32 to vector<16x8xf32>
    %98 = arith.maximumf %96, %97 : vector<16x8xf32>
    %c8 = arith.constant 8 : index
    %99 = memref.load %arg4[%c8] : memref<128xf32, #tpu.memory_space<smem>>
    %100 = vector.broadcast %99 : f32 to vector<16x8xf32>
    %101 = arith.mulf %98, %100 : vector<16x8xf32>
    %102 = arith.addf %70, %101 : vector<16x8xf32>
    %c9 = arith.constant 9 : index
    %103 = memref.load %arg4[%c9] : memref<128xf32, #tpu.memory_space<smem>>
    %104 = vector.broadcast %103 : f32 to vector<16x8xf32>
    %105 = arith.mulf %98, %104 : vector<16x8xf32>
    %106 = arith.addf %74, %105 : vector<16x8xf32>
    %c10 = arith.constant 10 : index
    %107 = memref.load %arg4[%c10] : memref<128xf32, #tpu.memory_space<smem>>
    %108 = vector.broadcast %107 : f32 to vector<16x8xf32>
    %109 = arith.mulf %98, %108 : vector<16x8xf32>
    %110 = arith.addf %78, %109 : vector<16x8xf32>
    %c11 = arith.constant 11 : index
    %111 = memref.load %arg4[%c11] : memref<128xf32, #tpu.memory_space<smem>>
    %112 = vector.broadcast %111 : f32 to vector<16x8xf32>
    %113 = arith.mulf %98, %112 : vector<16x8xf32>
    %114 = arith.addf %82, %113 : vector<16x8xf32>
    %c3_25 = arith.constant 3 : index
    %115 = memref.load %arg2[%c3_25] : memref<96xf32, #tpu.memory_space<smem>>
    %116 = vector.broadcast %115 : f32 to vector<16x8xf32>
    %117 = arith.mulf %1, %116 : vector<16x8xf32>
    %c35 = arith.constant 35 : index
    %118 = memref.load %arg2[%c35] : memref<96xf32, #tpu.memory_space<smem>>
    %119 = vector.broadcast %118 : f32 to vector<16x8xf32>
    %120 = arith.mulf %3, %119 : vector<16x8xf32>
    %121 = arith.addf %117, %120 : vector<16x8xf32>
    %c67 = arith.constant 67 : index
    %122 = memref.load %arg2[%c67] : memref<96xf32, #tpu.memory_space<smem>>
    %123 = vector.broadcast %122 : f32 to vector<16x8xf32>
    %124 = arith.mulf %5, %123 : vector<16x8xf32>
    %125 = arith.addf %121, %124 : vector<16x8xf32>
    %c3_26 = arith.constant 3 : index
    %126 = memref.load %arg3[%c3_26] : memref<32xf32, #tpu.memory_space<smem>>
    %127 = vector.broadcast %126 : f32 to vector<16x8xf32>
    %128 = arith.addf %125, %127 : vector<16x8xf32>
    %cst_27 = arith.constant 0.000000e+00 : f32
    %129 = vector.broadcast %cst_27 : f32 to vector<16x8xf32>
    %130 = arith.maximumf %128, %129 : vector<16x8xf32>
    %c12 = arith.constant 12 : index
    %131 = memref.load %arg4[%c12] : memref<128xf32, #tpu.memory_space<smem>>
    %132 = vector.broadcast %131 : f32 to vector<16x8xf32>
    %133 = arith.mulf %130, %132 : vector<16x8xf32>
    %134 = arith.addf %102, %133 : vector<16x8xf32>
    %c13 = arith.constant 13 : index
    %135 = memref.load %arg4[%c13] : memref<128xf32, #tpu.memory_space<smem>>
    %136 = vector.broadcast %135 : f32 to vector<16x8xf32>
    %137 = arith.mulf %130, %136 : vector<16x8xf32>
    %138 = arith.addf %106, %137 : vector<16x8xf32>
    %c14 = arith.constant 14 : index
    %139 = memref.load %arg4[%c14] : memref<128xf32, #tpu.memory_space<smem>>
    %140 = vector.broadcast %139 : f32 to vector<16x8xf32>
    %141 = arith.mulf %130, %140 : vector<16x8xf32>
    %142 = arith.addf %110, %141 : vector<16x8xf32>
    %c15 = arith.constant 15 : index
    %143 = memref.load %arg4[%c15] : memref<128xf32, #tpu.memory_space<smem>>
    %144 = vector.broadcast %143 : f32 to vector<16x8xf32>
    %145 = arith.mulf %130, %144 : vector<16x8xf32>
    %146 = arith.addf %114, %145 : vector<16x8xf32>
    %c4_28 = arith.constant 4 : index
    %147 = memref.load %arg2[%c4_28] : memref<96xf32, #tpu.memory_space<smem>>
    %148 = vector.broadcast %147 : f32 to vector<16x8xf32>
    %149 = arith.mulf %1, %148 : vector<16x8xf32>
    %c36 = arith.constant 36 : index
    %150 = memref.load %arg2[%c36] : memref<96xf32, #tpu.memory_space<smem>>
    %151 = vector.broadcast %150 : f32 to vector<16x8xf32>
    %152 = arith.mulf %3, %151 : vector<16x8xf32>
    %153 = arith.addf %149, %152 : vector<16x8xf32>
    %c68 = arith.constant 68 : index
    %154 = memref.load %arg2[%c68] : memref<96xf32, #tpu.memory_space<smem>>
    %155 = vector.broadcast %154 : f32 to vector<16x8xf32>
    %156 = arith.mulf %5, %155 : vector<16x8xf32>
    %157 = arith.addf %153, %156 : vector<16x8xf32>
    %c4_29 = arith.constant 4 : index
    %158 = memref.load %arg3[%c4_29] : memref<32xf32, #tpu.memory_space<smem>>
    %159 = vector.broadcast %158 : f32 to vector<16x8xf32>
    %160 = arith.addf %157, %159 : vector<16x8xf32>
    %cst_30 = arith.constant 0.000000e+00 : f32
    %161 = vector.broadcast %cst_30 : f32 to vector<16x8xf32>
    %162 = arith.maximumf %160, %161 : vector<16x8xf32>
    %c16 = arith.constant 16 : index
    %163 = memref.load %arg4[%c16] : memref<128xf32, #tpu.memory_space<smem>>
    %164 = vector.broadcast %163 : f32 to vector<16x8xf32>
    %165 = arith.mulf %162, %164 : vector<16x8xf32>
    %166 = arith.addf %134, %165 : vector<16x8xf32>
    %c17 = arith.constant 17 : index
    %167 = memref.load %arg4[%c17] : memref<128xf32, #tpu.memory_space<smem>>
    %168 = vector.broadcast %167 : f32 to vector<16x8xf32>
    %169 = arith.mulf %162, %168 : vector<16x8xf32>
    %170 = arith.addf %138, %169 : vector<16x8xf32>
    %c18 = arith.constant 18 : index
    %171 = memref.load %arg4[%c18] : memref<128xf32, #tpu.memory_space<smem>>
    %172 = vector.broadcast %171 : f32 to vector<16x8xf32>
    %173 = arith.mulf %162, %172 : vector<16x8xf32>
    %174 = arith.addf %142, %173 : vector<16x8xf32>
    %c19 = arith.constant 19 : index
    %175 = memref.load %arg4[%c19] : memref<128xf32, #tpu.memory_space<smem>>
    %176 = vector.broadcast %175 : f32 to vector<16x8xf32>
    %177 = arith.mulf %162, %176 : vector<16x8xf32>
    %178 = arith.addf %146, %177 : vector<16x8xf32>
    %c5_31 = arith.constant 5 : index
    %179 = memref.load %arg2[%c5_31] : memref<96xf32, #tpu.memory_space<smem>>
    %180 = vector.broadcast %179 : f32 to vector<16x8xf32>
    %181 = arith.mulf %1, %180 : vector<16x8xf32>
    %c37 = arith.constant 37 : index
    %182 = memref.load %arg2[%c37] : memref<96xf32, #tpu.memory_space<smem>>
    %183 = vector.broadcast %182 : f32 to vector<16x8xf32>
    %184 = arith.mulf %3, %183 : vector<16x8xf32>
    %185 = arith.addf %181, %184 : vector<16x8xf32>
    %c69 = arith.constant 69 : index
    %186 = memref.load %arg2[%c69] : memref<96xf32, #tpu.memory_space<smem>>
    %187 = vector.broadcast %186 : f32 to vector<16x8xf32>
    %188 = arith.mulf %5, %187 : vector<16x8xf32>
    %189 = arith.addf %185, %188 : vector<16x8xf32>
    %c5_32 = arith.constant 5 : index
    %190 = memref.load %arg3[%c5_32] : memref<32xf32, #tpu.memory_space<smem>>
    %191 = vector.broadcast %190 : f32 to vector<16x8xf32>
    %192 = arith.addf %189, %191 : vector<16x8xf32>
    %cst_33 = arith.constant 0.000000e+00 : f32
    %193 = vector.broadcast %cst_33 : f32 to vector<16x8xf32>
    %194 = arith.maximumf %192, %193 : vector<16x8xf32>
    %c20 = arith.constant 20 : index
    %195 = memref.load %arg4[%c20] : memref<128xf32, #tpu.memory_space<smem>>
    %196 = vector.broadcast %195 : f32 to vector<16x8xf32>
    %197 = arith.mulf %194, %196 : vector<16x8xf32>
    %198 = arith.addf %166, %197 : vector<16x8xf32>
    %c21 = arith.constant 21 : index
    %199 = memref.load %arg4[%c21] : memref<128xf32, #tpu.memory_space<smem>>
    %200 = vector.broadcast %199 : f32 to vector<16x8xf32>
    %201 = arith.mulf %194, %200 : vector<16x8xf32>
    %202 = arith.addf %170, %201 : vector<16x8xf32>
    %c22 = arith.constant 22 : index
    %203 = memref.load %arg4[%c22] : memref<128xf32, #tpu.memory_space<smem>>
    %204 = vector.broadcast %203 : f32 to vector<16x8xf32>
    %205 = arith.mulf %194, %204 : vector<16x8xf32>
    %206 = arith.addf %174, %205 : vector<16x8xf32>
    %c23 = arith.constant 23 : index
    %207 = memref.load %arg4[%c23] : memref<128xf32, #tpu.memory_space<smem>>
    %208 = vector.broadcast %207 : f32 to vector<16x8xf32>
    %209 = arith.mulf %194, %208 : vector<16x8xf32>
    %210 = arith.addf %178, %209 : vector<16x8xf32>
    %c6_34 = arith.constant 6 : index
    %211 = memref.load %arg2[%c6_34] : memref<96xf32, #tpu.memory_space<smem>>
    %212 = vector.broadcast %211 : f32 to vector<16x8xf32>
    %213 = arith.mulf %1, %212 : vector<16x8xf32>
    %c38 = arith.constant 38 : index
    %214 = memref.load %arg2[%c38] : memref<96xf32, #tpu.memory_space<smem>>
    %215 = vector.broadcast %214 : f32 to vector<16x8xf32>
    %216 = arith.mulf %3, %215 : vector<16x8xf32>
    %217 = arith.addf %213, %216 : vector<16x8xf32>
    %c70 = arith.constant 70 : index
    %218 = memref.load %arg2[%c70] : memref<96xf32, #tpu.memory_space<smem>>
    %219 = vector.broadcast %218 : f32 to vector<16x8xf32>
    %220 = arith.mulf %5, %219 : vector<16x8xf32>
    %221 = arith.addf %217, %220 : vector<16x8xf32>
    %c6_35 = arith.constant 6 : index
    %222 = memref.load %arg3[%c6_35] : memref<32xf32, #tpu.memory_space<smem>>
    %223 = vector.broadcast %222 : f32 to vector<16x8xf32>
    %224 = arith.addf %221, %223 : vector<16x8xf32>
    %cst_36 = arith.constant 0.000000e+00 : f32
    %225 = vector.broadcast %cst_36 : f32 to vector<16x8xf32>
    %226 = arith.maximumf %224, %225 : vector<16x8xf32>
    %c24 = arith.constant 24 : index
    %227 = memref.load %arg4[%c24] : memref<128xf32, #tpu.memory_space<smem>>
    %228 = vector.broadcast %227 : f32 to vector<16x8xf32>
    %229 = arith.mulf %226, %228 : vector<16x8xf32>
    %230 = arith.addf %198, %229 : vector<16x8xf32>
    %c25 = arith.constant 25 : index
    %231 = memref.load %arg4[%c25] : memref<128xf32, #tpu.memory_space<smem>>
    %232 = vector.broadcast %231 : f32 to vector<16x8xf32>
    %233 = arith.mulf %226, %232 : vector<16x8xf32>
    %234 = arith.addf %202, %233 : vector<16x8xf32>
    %c26 = arith.constant 26 : index
    %235 = memref.load %arg4[%c26] : memref<128xf32, #tpu.memory_space<smem>>
    %236 = vector.broadcast %235 : f32 to vector<16x8xf32>
    %237 = arith.mulf %226, %236 : vector<16x8xf32>
    %238 = arith.addf %206, %237 : vector<16x8xf32>
    %c27 = arith.constant 27 : index
    %239 = memref.load %arg4[%c27] : memref<128xf32, #tpu.memory_space<smem>>
    %240 = vector.broadcast %239 : f32 to vector<16x8xf32>
    %241 = arith.mulf %226, %240 : vector<16x8xf32>
    %242 = arith.addf %210, %241 : vector<16x8xf32>
    %c7_37 = arith.constant 7 : index
    %243 = memref.load %arg2[%c7_37] : memref<96xf32, #tpu.memory_space<smem>>
    %244 = vector.broadcast %243 : f32 to vector<16x8xf32>
    %245 = arith.mulf %1, %244 : vector<16x8xf32>
    %c39 = arith.constant 39 : index
    %246 = memref.load %arg2[%c39] : memref<96xf32, #tpu.memory_space<smem>>
    %247 = vector.broadcast %246 : f32 to vector<16x8xf32>
    %248 = arith.mulf %3, %247 : vector<16x8xf32>
    %249 = arith.addf %245, %248 : vector<16x8xf32>
    %c71 = arith.constant 71 : index
    %250 = memref.load %arg2[%c71] : memref<96xf32, #tpu.memory_space<smem>>
    %251 = vector.broadcast %250 : f32 to vector<16x8xf32>
    %252 = arith.mulf %5, %251 : vector<16x8xf32>
    %253 = arith.addf %249, %252 : vector<16x8xf32>
    %c7_38 = arith.constant 7 : index
    %254 = memref.load %arg3[%c7_38] : memref<32xf32, #tpu.memory_space<smem>>
    %255 = vector.broadcast %254 : f32 to vector<16x8xf32>
    %256 = arith.addf %253, %255 : vector<16x8xf32>
    %cst_39 = arith.constant 0.000000e+00 : f32
    %257 = vector.broadcast %cst_39 : f32 to vector<16x8xf32>
    %258 = arith.maximumf %256, %257 : vector<16x8xf32>
    %c28 = arith.constant 28 : index
    %259 = memref.load %arg4[%c28] : memref<128xf32, #tpu.memory_space<smem>>
    %260 = vector.broadcast %259 : f32 to vector<16x8xf32>
    %261 = arith.mulf %258, %260 : vector<16x8xf32>
    %262 = arith.addf %230, %261 : vector<16x8xf32>
    %c29 = arith.constant 29 : index
    %263 = memref.load %arg4[%c29] : memref<128xf32, #tpu.memory_space<smem>>
    %264 = vector.broadcast %263 : f32 to vector<16x8xf32>
    %265 = arith.mulf %258, %264 : vector<16x8xf32>
    %266 = arith.addf %234, %265 : vector<16x8xf32>
    %c30 = arith.constant 30 : index
    %267 = memref.load %arg4[%c30] : memref<128xf32, #tpu.memory_space<smem>>
    %268 = vector.broadcast %267 : f32 to vector<16x8xf32>
    %269 = arith.mulf %258, %268 : vector<16x8xf32>
    %270 = arith.addf %238, %269 : vector<16x8xf32>
    %c31 = arith.constant 31 : index
    %271 = memref.load %arg4[%c31] : memref<128xf32, #tpu.memory_space<smem>>
    %272 = vector.broadcast %271 : f32 to vector<16x8xf32>
    %273 = arith.mulf %258, %272 : vector<16x8xf32>
    %274 = arith.addf %242, %273 : vector<16x8xf32>
    %c8_40 = arith.constant 8 : index
    %275 = memref.load %arg2[%c8_40] : memref<96xf32, #tpu.memory_space<smem>>
    %276 = vector.broadcast %275 : f32 to vector<16x8xf32>
    %277 = arith.mulf %1, %276 : vector<16x8xf32>
    %c40 = arith.constant 40 : index
    %278 = memref.load %arg2[%c40] : memref<96xf32, #tpu.memory_space<smem>>
    %279 = vector.broadcast %278 : f32 to vector<16x8xf32>
    %280 = arith.mulf %3, %279 : vector<16x8xf32>
    %281 = arith.addf %277, %280 : vector<16x8xf32>
    %c72 = arith.constant 72 : index
    %282 = memref.load %arg2[%c72] : memref<96xf32, #tpu.memory_space<smem>>
    %283 = vector.broadcast %282 : f32 to vector<16x8xf32>
    %284 = arith.mulf %5, %283 : vector<16x8xf32>
    %285 = arith.addf %281, %284 : vector<16x8xf32>
    %c8_41 = arith.constant 8 : index
    %286 = memref.load %arg3[%c8_41] : memref<32xf32, #tpu.memory_space<smem>>
    %287 = vector.broadcast %286 : f32 to vector<16x8xf32>
    %288 = arith.addf %285, %287 : vector<16x8xf32>
    %cst_42 = arith.constant 0.000000e+00 : f32
    %289 = vector.broadcast %cst_42 : f32 to vector<16x8xf32>
    %290 = arith.maximumf %288, %289 : vector<16x8xf32>
    %c32_43 = arith.constant 32 : index
    %291 = memref.load %arg4[%c32_43] : memref<128xf32, #tpu.memory_space<smem>>
    %292 = vector.broadcast %291 : f32 to vector<16x8xf32>
    %293 = arith.mulf %290, %292 : vector<16x8xf32>
    %294 = arith.addf %262, %293 : vector<16x8xf32>
    %c33_44 = arith.constant 33 : index
    %295 = memref.load %arg4[%c33_44] : memref<128xf32, #tpu.memory_space<smem>>
    %296 = vector.broadcast %295 : f32 to vector<16x8xf32>
    %297 = arith.mulf %290, %296 : vector<16x8xf32>
    %298 = arith.addf %266, %297 : vector<16x8xf32>
    %c34_45 = arith.constant 34 : index
    %299 = memref.load %arg4[%c34_45] : memref<128xf32, #tpu.memory_space<smem>>
    %300 = vector.broadcast %299 : f32 to vector<16x8xf32>
    %301 = arith.mulf %290, %300 : vector<16x8xf32>
    %302 = arith.addf %270, %301 : vector<16x8xf32>
    %c35_46 = arith.constant 35 : index
    %303 = memref.load %arg4[%c35_46] : memref<128xf32, #tpu.memory_space<smem>>
    %304 = vector.broadcast %303 : f32 to vector<16x8xf32>
    %305 = arith.mulf %290, %304 : vector<16x8xf32>
    %306 = arith.addf %274, %305 : vector<16x8xf32>
    %c9_47 = arith.constant 9 : index
    %307 = memref.load %arg2[%c9_47] : memref<96xf32, #tpu.memory_space<smem>>
    %308 = vector.broadcast %307 : f32 to vector<16x8xf32>
    %309 = arith.mulf %1, %308 : vector<16x8xf32>
    %c41 = arith.constant 41 : index
    %310 = memref.load %arg2[%c41] : memref<96xf32, #tpu.memory_space<smem>>
    %311 = vector.broadcast %310 : f32 to vector<16x8xf32>
    %312 = arith.mulf %3, %311 : vector<16x8xf32>
    %313 = arith.addf %309, %312 : vector<16x8xf32>
    %c73 = arith.constant 73 : index
    %314 = memref.load %arg2[%c73] : memref<96xf32, #tpu.memory_space<smem>>
    %315 = vector.broadcast %314 : f32 to vector<16x8xf32>
    %316 = arith.mulf %5, %315 : vector<16x8xf32>
    %317 = arith.addf %313, %316 : vector<16x8xf32>
    %c9_48 = arith.constant 9 : index
    %318 = memref.load %arg3[%c9_48] : memref<32xf32, #tpu.memory_space<smem>>
    %319 = vector.broadcast %318 : f32 to vector<16x8xf32>
    %320 = arith.addf %317, %319 : vector<16x8xf32>
    %cst_49 = arith.constant 0.000000e+00 : f32
    %321 = vector.broadcast %cst_49 : f32 to vector<16x8xf32>
    %322 = arith.maximumf %320, %321 : vector<16x8xf32>
    %c36_50 = arith.constant 36 : index
    %323 = memref.load %arg4[%c36_50] : memref<128xf32, #tpu.memory_space<smem>>
    %324 = vector.broadcast %323 : f32 to vector<16x8xf32>
    %325 = arith.mulf %322, %324 : vector<16x8xf32>
    %326 = arith.addf %294, %325 : vector<16x8xf32>
    %c37_51 = arith.constant 37 : index
    %327 = memref.load %arg4[%c37_51] : memref<128xf32, #tpu.memory_space<smem>>
    %328 = vector.broadcast %327 : f32 to vector<16x8xf32>
    %329 = arith.mulf %322, %328 : vector<16x8xf32>
    %330 = arith.addf %298, %329 : vector<16x8xf32>
    %c38_52 = arith.constant 38 : index
    %331 = memref.load %arg4[%c38_52] : memref<128xf32, #tpu.memory_space<smem>>
    %332 = vector.broadcast %331 : f32 to vector<16x8xf32>
    %333 = arith.mulf %322, %332 : vector<16x8xf32>
    %334 = arith.addf %302, %333 : vector<16x8xf32>
    %c39_53 = arith.constant 39 : index
    %335 = memref.load %arg4[%c39_53] : memref<128xf32, #tpu.memory_space<smem>>
    %336 = vector.broadcast %335 : f32 to vector<16x8xf32>
    %337 = arith.mulf %322, %336 : vector<16x8xf32>
    %338 = arith.addf %306, %337 : vector<16x8xf32>
    %c10_54 = arith.constant 10 : index
    %339 = memref.load %arg2[%c10_54] : memref<96xf32, #tpu.memory_space<smem>>
    %340 = vector.broadcast %339 : f32 to vector<16x8xf32>
    %341 = arith.mulf %1, %340 : vector<16x8xf32>
    %c42 = arith.constant 42 : index
    %342 = memref.load %arg2[%c42] : memref<96xf32, #tpu.memory_space<smem>>
    %343 = vector.broadcast %342 : f32 to vector<16x8xf32>
    %344 = arith.mulf %3, %343 : vector<16x8xf32>
    %345 = arith.addf %341, %344 : vector<16x8xf32>
    %c74 = arith.constant 74 : index
    %346 = memref.load %arg2[%c74] : memref<96xf32, #tpu.memory_space<smem>>
    %347 = vector.broadcast %346 : f32 to vector<16x8xf32>
    %348 = arith.mulf %5, %347 : vector<16x8xf32>
    %349 = arith.addf %345, %348 : vector<16x8xf32>
    %c10_55 = arith.constant 10 : index
    %350 = memref.load %arg3[%c10_55] : memref<32xf32, #tpu.memory_space<smem>>
    %351 = vector.broadcast %350 : f32 to vector<16x8xf32>
    %352 = arith.addf %349, %351 : vector<16x8xf32>
    %cst_56 = arith.constant 0.000000e+00 : f32
    %353 = vector.broadcast %cst_56 : f32 to vector<16x8xf32>
    %354 = arith.maximumf %352, %353 : vector<16x8xf32>
    %c40_57 = arith.constant 40 : index
    %355 = memref.load %arg4[%c40_57] : memref<128xf32, #tpu.memory_space<smem>>
    %356 = vector.broadcast %355 : f32 to vector<16x8xf32>
    %357 = arith.mulf %354, %356 : vector<16x8xf32>
    %358 = arith.addf %326, %357 : vector<16x8xf32>
    %c41_58 = arith.constant 41 : index
    %359 = memref.load %arg4[%c41_58] : memref<128xf32, #tpu.memory_space<smem>>
    %360 = vector.broadcast %359 : f32 to vector<16x8xf32>
    %361 = arith.mulf %354, %360 : vector<16x8xf32>
    %362 = arith.addf %330, %361 : vector<16x8xf32>
    %c42_59 = arith.constant 42 : index
    %363 = memref.load %arg4[%c42_59] : memref<128xf32, #tpu.memory_space<smem>>
    %364 = vector.broadcast %363 : f32 to vector<16x8xf32>
    %365 = arith.mulf %354, %364 : vector<16x8xf32>
    %366 = arith.addf %334, %365 : vector<16x8xf32>
    %c43 = arith.constant 43 : index
    %367 = memref.load %arg4[%c43] : memref<128xf32, #tpu.memory_space<smem>>
    %368 = vector.broadcast %367 : f32 to vector<16x8xf32>
    %369 = arith.mulf %354, %368 : vector<16x8xf32>
    %370 = arith.addf %338, %369 : vector<16x8xf32>
    %c11_60 = arith.constant 11 : index
    %371 = memref.load %arg2[%c11_60] : memref<96xf32, #tpu.memory_space<smem>>
    %372 = vector.broadcast %371 : f32 to vector<16x8xf32>
    %373 = arith.mulf %1, %372 : vector<16x8xf32>
    %c43_61 = arith.constant 43 : index
    %374 = memref.load %arg2[%c43_61] : memref<96xf32, #tpu.memory_space<smem>>
    %375 = vector.broadcast %374 : f32 to vector<16x8xf32>
    %376 = arith.mulf %3, %375 : vector<16x8xf32>
    %377 = arith.addf %373, %376 : vector<16x8xf32>
    %c75 = arith.constant 75 : index
    %378 = memref.load %arg2[%c75] : memref<96xf32, #tpu.memory_space<smem>>
    %379 = vector.broadcast %378 : f32 to vector<16x8xf32>
    %380 = arith.mulf %5, %379 : vector<16x8xf32>
    %381 = arith.addf %377, %380 : vector<16x8xf32>
    %c11_62 = arith.constant 11 : index
    %382 = memref.load %arg3[%c11_62] : memref<32xf32, #tpu.memory_space<smem>>
    %383 = vector.broadcast %382 : f32 to vector<16x8xf32>
    %384 = arith.addf %381, %383 : vector<16x8xf32>
    %cst_63 = arith.constant 0.000000e+00 : f32
    %385 = vector.broadcast %cst_63 : f32 to vector<16x8xf32>
    %386 = arith.maximumf %384, %385 : vector<16x8xf32>
    %c44 = arith.constant 44 : index
    %387 = memref.load %arg4[%c44] : memref<128xf32, #tpu.memory_space<smem>>
    %388 = vector.broadcast %387 : f32 to vector<16x8xf32>
    %389 = arith.mulf %386, %388 : vector<16x8xf32>
    %390 = arith.addf %358, %389 : vector<16x8xf32>
    %c45 = arith.constant 45 : index
    %391 = memref.load %arg4[%c45] : memref<128xf32, #tpu.memory_space<smem>>
    %392 = vector.broadcast %391 : f32 to vector<16x8xf32>
    %393 = arith.mulf %386, %392 : vector<16x8xf32>
    %394 = arith.addf %362, %393 : vector<16x8xf32>
    %c46 = arith.constant 46 : index
    %395 = memref.load %arg4[%c46] : memref<128xf32, #tpu.memory_space<smem>>
    %396 = vector.broadcast %395 : f32 to vector<16x8xf32>
    %397 = arith.mulf %386, %396 : vector<16x8xf32>
    %398 = arith.addf %366, %397 : vector<16x8xf32>
    %c47 = arith.constant 47 : index
    %399 = memref.load %arg4[%c47] : memref<128xf32, #tpu.memory_space<smem>>
    %400 = vector.broadcast %399 : f32 to vector<16x8xf32>
    %401 = arith.mulf %386, %400 : vector<16x8xf32>
    %402 = arith.addf %370, %401 : vector<16x8xf32>
    %c12_64 = arith.constant 12 : index
    %403 = memref.load %arg2[%c12_64] : memref<96xf32, #tpu.memory_space<smem>>
    %404 = vector.broadcast %403 : f32 to vector<16x8xf32>
    %405 = arith.mulf %1, %404 : vector<16x8xf32>
    %c44_65 = arith.constant 44 : index
    %406 = memref.load %arg2[%c44_65] : memref<96xf32, #tpu.memory_space<smem>>
    %407 = vector.broadcast %406 : f32 to vector<16x8xf32>
    %408 = arith.mulf %3, %407 : vector<16x8xf32>
    %409 = arith.addf %405, %408 : vector<16x8xf32>
    %c76 = arith.constant 76 : index
    %410 = memref.load %arg2[%c76] : memref<96xf32, #tpu.memory_space<smem>>
    %411 = vector.broadcast %410 : f32 to vector<16x8xf32>
    %412 = arith.mulf %5, %411 : vector<16x8xf32>
    %413 = arith.addf %409, %412 : vector<16x8xf32>
    %c12_66 = arith.constant 12 : index
    %414 = memref.load %arg3[%c12_66] : memref<32xf32, #tpu.memory_space<smem>>
    %415 = vector.broadcast %414 : f32 to vector<16x8xf32>
    %416 = arith.addf %413, %415 : vector<16x8xf32>
    %cst_67 = arith.constant 0.000000e+00 : f32
    %417 = vector.broadcast %cst_67 : f32 to vector<16x8xf32>
    %418 = arith.maximumf %416, %417 : vector<16x8xf32>
    %c48 = arith.constant 48 : index
    %419 = memref.load %arg4[%c48] : memref<128xf32, #tpu.memory_space<smem>>
    %420 = vector.broadcast %419 : f32 to vector<16x8xf32>
    %421 = arith.mulf %418, %420 : vector<16x8xf32>
    %422 = arith.addf %390, %421 : vector<16x8xf32>
    %c49 = arith.constant 49 : index
    %423 = memref.load %arg4[%c49] : memref<128xf32, #tpu.memory_space<smem>>
    %424 = vector.broadcast %423 : f32 to vector<16x8xf32>
    %425 = arith.mulf %418, %424 : vector<16x8xf32>
    %426 = arith.addf %394, %425 : vector<16x8xf32>
    %c50 = arith.constant 50 : index
    %427 = memref.load %arg4[%c50] : memref<128xf32, #tpu.memory_space<smem>>
    %428 = vector.broadcast %427 : f32 to vector<16x8xf32>
    %429 = arith.mulf %418, %428 : vector<16x8xf32>
    %430 = arith.addf %398, %429 : vector<16x8xf32>
    %c51 = arith.constant 51 : index
    %431 = memref.load %arg4[%c51] : memref<128xf32, #tpu.memory_space<smem>>
    %432 = vector.broadcast %431 : f32 to vector<16x8xf32>
    %433 = arith.mulf %418, %432 : vector<16x8xf32>
    %434 = arith.addf %402, %433 : vector<16x8xf32>
    %c13_68 = arith.constant 13 : index
    %435 = memref.load %arg2[%c13_68] : memref<96xf32, #tpu.memory_space<smem>>
    %436 = vector.broadcast %435 : f32 to vector<16x8xf32>
    %437 = arith.mulf %1, %436 : vector<16x8xf32>
    %c45_69 = arith.constant 45 : index
    %438 = memref.load %arg2[%c45_69] : memref<96xf32, #tpu.memory_space<smem>>
    %439 = vector.broadcast %438 : f32 to vector<16x8xf32>
    %440 = arith.mulf %3, %439 : vector<16x8xf32>
    %441 = arith.addf %437, %440 : vector<16x8xf32>
    %c77 = arith.constant 77 : index
    %442 = memref.load %arg2[%c77] : memref<96xf32, #tpu.memory_space<smem>>
    %443 = vector.broadcast %442 : f32 to vector<16x8xf32>
    %444 = arith.mulf %5, %443 : vector<16x8xf32>
    %445 = arith.addf %441, %444 : vector<16x8xf32>
    %c13_70 = arith.constant 13 : index
    %446 = memref.load %arg3[%c13_70] : memref<32xf32, #tpu.memory_space<smem>>
    %447 = vector.broadcast %446 : f32 to vector<16x8xf32>
    %448 = arith.addf %445, %447 : vector<16x8xf32>
    %cst_71 = arith.constant 0.000000e+00 : f32
    %449 = vector.broadcast %cst_71 : f32 to vector<16x8xf32>
    %450 = arith.maximumf %448, %449 : vector<16x8xf32>
    %c52 = arith.constant 52 : index
    %451 = memref.load %arg4[%c52] : memref<128xf32, #tpu.memory_space<smem>>
    %452 = vector.broadcast %451 : f32 to vector<16x8xf32>
    %453 = arith.mulf %450, %452 : vector<16x8xf32>
    %454 = arith.addf %422, %453 : vector<16x8xf32>
    %c53 = arith.constant 53 : index
    %455 = memref.load %arg4[%c53] : memref<128xf32, #tpu.memory_space<smem>>
    %456 = vector.broadcast %455 : f32 to vector<16x8xf32>
    %457 = arith.mulf %450, %456 : vector<16x8xf32>
    %458 = arith.addf %426, %457 : vector<16x8xf32>
    %c54 = arith.constant 54 : index
    %459 = memref.load %arg4[%c54] : memref<128xf32, #tpu.memory_space<smem>>
    %460 = vector.broadcast %459 : f32 to vector<16x8xf32>
    %461 = arith.mulf %450, %460 : vector<16x8xf32>
    %462 = arith.addf %430, %461 : vector<16x8xf32>
    %c55 = arith.constant 55 : index
    %463 = memref.load %arg4[%c55] : memref<128xf32, #tpu.memory_space<smem>>
    %464 = vector.broadcast %463 : f32 to vector<16x8xf32>
    %465 = arith.mulf %450, %464 : vector<16x8xf32>
    %466 = arith.addf %434, %465 : vector<16x8xf32>
    %c14_72 = arith.constant 14 : index
    %467 = memref.load %arg2[%c14_72] : memref<96xf32, #tpu.memory_space<smem>>
    %468 = vector.broadcast %467 : f32 to vector<16x8xf32>
    %469 = arith.mulf %1, %468 : vector<16x8xf32>
    %c46_73 = arith.constant 46 : index
    %470 = memref.load %arg2[%c46_73] : memref<96xf32, #tpu.memory_space<smem>>
    %471 = vector.broadcast %470 : f32 to vector<16x8xf32>
    %472 = arith.mulf %3, %471 : vector<16x8xf32>
    %473 = arith.addf %469, %472 : vector<16x8xf32>
    %c78 = arith.constant 78 : index
    %474 = memref.load %arg2[%c78] : memref<96xf32, #tpu.memory_space<smem>>
    %475 = vector.broadcast %474 : f32 to vector<16x8xf32>
    %476 = arith.mulf %5, %475 : vector<16x8xf32>
    %477 = arith.addf %473, %476 : vector<16x8xf32>
    %c14_74 = arith.constant 14 : index
    %478 = memref.load %arg3[%c14_74] : memref<32xf32, #tpu.memory_space<smem>>
    %479 = vector.broadcast %478 : f32 to vector<16x8xf32>
    %480 = arith.addf %477, %479 : vector<16x8xf32>
    %cst_75 = arith.constant 0.000000e+00 : f32
    %481 = vector.broadcast %cst_75 : f32 to vector<16x8xf32>
    %482 = arith.maximumf %480, %481 : vector<16x8xf32>
    %c56 = arith.constant 56 : index
    %483 = memref.load %arg4[%c56] : memref<128xf32, #tpu.memory_space<smem>>
    %484 = vector.broadcast %483 : f32 to vector<16x8xf32>
    %485 = arith.mulf %482, %484 : vector<16x8xf32>
    %486 = arith.addf %454, %485 : vector<16x8xf32>
    %c57 = arith.constant 57 : index
    %487 = memref.load %arg4[%c57] : memref<128xf32, #tpu.memory_space<smem>>
    %488 = vector.broadcast %487 : f32 to vector<16x8xf32>
    %489 = arith.mulf %482, %488 : vector<16x8xf32>
    %490 = arith.addf %458, %489 : vector<16x8xf32>
    %c58 = arith.constant 58 : index
    %491 = memref.load %arg4[%c58] : memref<128xf32, #tpu.memory_space<smem>>
    %492 = vector.broadcast %491 : f32 to vector<16x8xf32>
    %493 = arith.mulf %482, %492 : vector<16x8xf32>
    %494 = arith.addf %462, %493 : vector<16x8xf32>
    %c59 = arith.constant 59 : index
    %495 = memref.load %arg4[%c59] : memref<128xf32, #tpu.memory_space<smem>>
    %496 = vector.broadcast %495 : f32 to vector<16x8xf32>
    %497 = arith.mulf %482, %496 : vector<16x8xf32>
    %498 = arith.addf %466, %497 : vector<16x8xf32>
    %c15_76 = arith.constant 15 : index
    %499 = memref.load %arg2[%c15_76] : memref<96xf32, #tpu.memory_space<smem>>
    %500 = vector.broadcast %499 : f32 to vector<16x8xf32>
    %501 = arith.mulf %1, %500 : vector<16x8xf32>
    %c47_77 = arith.constant 47 : index
    %502 = memref.load %arg2[%c47_77] : memref<96xf32, #tpu.memory_space<smem>>
    %503 = vector.broadcast %502 : f32 to vector<16x8xf32>
    %504 = arith.mulf %3, %503 : vector<16x8xf32>
    %505 = arith.addf %501, %504 : vector<16x8xf32>
    %c79 = arith.constant 79 : index
    %506 = memref.load %arg2[%c79] : memref<96xf32, #tpu.memory_space<smem>>
    %507 = vector.broadcast %506 : f32 to vector<16x8xf32>
    %508 = arith.mulf %5, %507 : vector<16x8xf32>
    %509 = arith.addf %505, %508 : vector<16x8xf32>
    %c15_78 = arith.constant 15 : index
    %510 = memref.load %arg3[%c15_78] : memref<32xf32, #tpu.memory_space<smem>>
    %511 = vector.broadcast %510 : f32 to vector<16x8xf32>
    %512 = arith.addf %509, %511 : vector<16x8xf32>
    %cst_79 = arith.constant 0.000000e+00 : f32
    %513 = vector.broadcast %cst_79 : f32 to vector<16x8xf32>
    %514 = arith.maximumf %512, %513 : vector<16x8xf32>
    %c60 = arith.constant 60 : index
    %515 = memref.load %arg4[%c60] : memref<128xf32, #tpu.memory_space<smem>>
    %516 = vector.broadcast %515 : f32 to vector<16x8xf32>
    %517 = arith.mulf %514, %516 : vector<16x8xf32>
    %518 = arith.addf %486, %517 : vector<16x8xf32>
    %c61 = arith.constant 61 : index
    %519 = memref.load %arg4[%c61] : memref<128xf32, #tpu.memory_space<smem>>
    %520 = vector.broadcast %519 : f32 to vector<16x8xf32>
    %521 = arith.mulf %514, %520 : vector<16x8xf32>
    %522 = arith.addf %490, %521 : vector<16x8xf32>
    %c62 = arith.constant 62 : index
    %523 = memref.load %arg4[%c62] : memref<128xf32, #tpu.memory_space<smem>>
    %524 = vector.broadcast %523 : f32 to vector<16x8xf32>
    %525 = arith.mulf %514, %524 : vector<16x8xf32>
    %526 = arith.addf %494, %525 : vector<16x8xf32>
    %c63 = arith.constant 63 : index
    %527 = memref.load %arg4[%c63] : memref<128xf32, #tpu.memory_space<smem>>
    %528 = vector.broadcast %527 : f32 to vector<16x8xf32>
    %529 = arith.mulf %514, %528 : vector<16x8xf32>
    %530 = arith.addf %498, %529 : vector<16x8xf32>
    %c16_80 = arith.constant 16 : index
    %531 = memref.load %arg2[%c16_80] : memref<96xf32, #tpu.memory_space<smem>>
    %532 = vector.broadcast %531 : f32 to vector<16x8xf32>
    %533 = arith.mulf %1, %532 : vector<16x8xf32>
    %c48_81 = arith.constant 48 : index
    %534 = memref.load %arg2[%c48_81] : memref<96xf32, #tpu.memory_space<smem>>
    %535 = vector.broadcast %534 : f32 to vector<16x8xf32>
    %536 = arith.mulf %3, %535 : vector<16x8xf32>
    %537 = arith.addf %533, %536 : vector<16x8xf32>
    %c80 = arith.constant 80 : index
    %538 = memref.load %arg2[%c80] : memref<96xf32, #tpu.memory_space<smem>>
    %539 = vector.broadcast %538 : f32 to vector<16x8xf32>
    %540 = arith.mulf %5, %539 : vector<16x8xf32>
    %541 = arith.addf %537, %540 : vector<16x8xf32>
    %c16_82 = arith.constant 16 : index
    %542 = memref.load %arg3[%c16_82] : memref<32xf32, #tpu.memory_space<smem>>
    %543 = vector.broadcast %542 : f32 to vector<16x8xf32>
    %544 = arith.addf %541, %543 : vector<16x8xf32>
    %cst_83 = arith.constant 0.000000e+00 : f32
    %545 = vector.broadcast %cst_83 : f32 to vector<16x8xf32>
    %546 = arith.maximumf %544, %545 : vector<16x8xf32>
    %c64_84 = arith.constant 64 : index
    %547 = memref.load %arg4[%c64_84] : memref<128xf32, #tpu.memory_space<smem>>
    %548 = vector.broadcast %547 : f32 to vector<16x8xf32>
    %549 = arith.mulf %546, %548 : vector<16x8xf32>
    %550 = arith.addf %518, %549 : vector<16x8xf32>
    %c65_85 = arith.constant 65 : index
    %551 = memref.load %arg4[%c65_85] : memref<128xf32, #tpu.memory_space<smem>>
    %552 = vector.broadcast %551 : f32 to vector<16x8xf32>
    %553 = arith.mulf %546, %552 : vector<16x8xf32>
    %554 = arith.addf %522, %553 : vector<16x8xf32>
    %c66_86 = arith.constant 66 : index
    %555 = memref.load %arg4[%c66_86] : memref<128xf32, #tpu.memory_space<smem>>
    %556 = vector.broadcast %555 : f32 to vector<16x8xf32>
    %557 = arith.mulf %546, %556 : vector<16x8xf32>
    %558 = arith.addf %526, %557 : vector<16x8xf32>
    %c67_87 = arith.constant 67 : index
    %559 = memref.load %arg4[%c67_87] : memref<128xf32, #tpu.memory_space<smem>>
    %560 = vector.broadcast %559 : f32 to vector<16x8xf32>
    %561 = arith.mulf %546, %560 : vector<16x8xf32>
    %562 = arith.addf %530, %561 : vector<16x8xf32>
    %c17_88 = arith.constant 17 : index
    %563 = memref.load %arg2[%c17_88] : memref<96xf32, #tpu.memory_space<smem>>
    %564 = vector.broadcast %563 : f32 to vector<16x8xf32>
    %565 = arith.mulf %1, %564 : vector<16x8xf32>
    %c49_89 = arith.constant 49 : index
    %566 = memref.load %arg2[%c49_89] : memref<96xf32, #tpu.memory_space<smem>>
    %567 = vector.broadcast %566 : f32 to vector<16x8xf32>
    %568 = arith.mulf %3, %567 : vector<16x8xf32>
    %569 = arith.addf %565, %568 : vector<16x8xf32>
    %c81 = arith.constant 81 : index
    %570 = memref.load %arg2[%c81] : memref<96xf32, #tpu.memory_space<smem>>
    %571 = vector.broadcast %570 : f32 to vector<16x8xf32>
    %572 = arith.mulf %5, %571 : vector<16x8xf32>
    %573 = arith.addf %569, %572 : vector<16x8xf32>
    %c17_90 = arith.constant 17 : index
    %574 = memref.load %arg3[%c17_90] : memref<32xf32, #tpu.memory_space<smem>>
    %575 = vector.broadcast %574 : f32 to vector<16x8xf32>
    %576 = arith.addf %573, %575 : vector<16x8xf32>
    %cst_91 = arith.constant 0.000000e+00 : f32
    %577 = vector.broadcast %cst_91 : f32 to vector<16x8xf32>
    %578 = arith.maximumf %576, %577 : vector<16x8xf32>
    %c68_92 = arith.constant 68 : index
    %579 = memref.load %arg4[%c68_92] : memref<128xf32, #tpu.memory_space<smem>>
    %580 = vector.broadcast %579 : f32 to vector<16x8xf32>
    %581 = arith.mulf %578, %580 : vector<16x8xf32>
    %582 = arith.addf %550, %581 : vector<16x8xf32>
    %c69_93 = arith.constant 69 : index
    %583 = memref.load %arg4[%c69_93] : memref<128xf32, #tpu.memory_space<smem>>
    %584 = vector.broadcast %583 : f32 to vector<16x8xf32>
    %585 = arith.mulf %578, %584 : vector<16x8xf32>
    %586 = arith.addf %554, %585 : vector<16x8xf32>
    %c70_94 = arith.constant 70 : index
    %587 = memref.load %arg4[%c70_94] : memref<128xf32, #tpu.memory_space<smem>>
    %588 = vector.broadcast %587 : f32 to vector<16x8xf32>
    %589 = arith.mulf %578, %588 : vector<16x8xf32>
    %590 = arith.addf %558, %589 : vector<16x8xf32>
    %c71_95 = arith.constant 71 : index
    %591 = memref.load %arg4[%c71_95] : memref<128xf32, #tpu.memory_space<smem>>
    %592 = vector.broadcast %591 : f32 to vector<16x8xf32>
    %593 = arith.mulf %578, %592 : vector<16x8xf32>
    %594 = arith.addf %562, %593 : vector<16x8xf32>
    %c18_96 = arith.constant 18 : index
    %595 = memref.load %arg2[%c18_96] : memref<96xf32, #tpu.memory_space<smem>>
    %596 = vector.broadcast %595 : f32 to vector<16x8xf32>
    %597 = arith.mulf %1, %596 : vector<16x8xf32>
    %c50_97 = arith.constant 50 : index
    %598 = memref.load %arg2[%c50_97] : memref<96xf32, #tpu.memory_space<smem>>
    %599 = vector.broadcast %598 : f32 to vector<16x8xf32>
    %600 = arith.mulf %3, %599 : vector<16x8xf32>
    %601 = arith.addf %597, %600 : vector<16x8xf32>
    %c82 = arith.constant 82 : index
    %602 = memref.load %arg2[%c82] : memref<96xf32, #tpu.memory_space<smem>>
    %603 = vector.broadcast %602 : f32 to vector<16x8xf32>
    %604 = arith.mulf %5, %603 : vector<16x8xf32>
    %605 = arith.addf %601, %604 : vector<16x8xf32>
    %c18_98 = arith.constant 18 : index
    %606 = memref.load %arg3[%c18_98] : memref<32xf32, #tpu.memory_space<smem>>
    %607 = vector.broadcast %606 : f32 to vector<16x8xf32>
    %608 = arith.addf %605, %607 : vector<16x8xf32>
    %cst_99 = arith.constant 0.000000e+00 : f32
    %609 = vector.broadcast %cst_99 : f32 to vector<16x8xf32>
    %610 = arith.maximumf %608, %609 : vector<16x8xf32>
    %c72_100 = arith.constant 72 : index
    %611 = memref.load %arg4[%c72_100] : memref<128xf32, #tpu.memory_space<smem>>
    %612 = vector.broadcast %611 : f32 to vector<16x8xf32>
    %613 = arith.mulf %610, %612 : vector<16x8xf32>
    %614 = arith.addf %582, %613 : vector<16x8xf32>
    %c73_101 = arith.constant 73 : index
    %615 = memref.load %arg4[%c73_101] : memref<128xf32, #tpu.memory_space<smem>>
    %616 = vector.broadcast %615 : f32 to vector<16x8xf32>
    %617 = arith.mulf %610, %616 : vector<16x8xf32>
    %618 = arith.addf %586, %617 : vector<16x8xf32>
    %c74_102 = arith.constant 74 : index
    %619 = memref.load %arg4[%c74_102] : memref<128xf32, #tpu.memory_space<smem>>
    %620 = vector.broadcast %619 : f32 to vector<16x8xf32>
    %621 = arith.mulf %610, %620 : vector<16x8xf32>
    %622 = arith.addf %590, %621 : vector<16x8xf32>
    %c75_103 = arith.constant 75 : index
    %623 = memref.load %arg4[%c75_103] : memref<128xf32, #tpu.memory_space<smem>>
    %624 = vector.broadcast %623 : f32 to vector<16x8xf32>
    %625 = arith.mulf %610, %624 : vector<16x8xf32>
    %626 = arith.addf %594, %625 : vector<16x8xf32>
    %c19_104 = arith.constant 19 : index
    %627 = memref.load %arg2[%c19_104] : memref<96xf32, #tpu.memory_space<smem>>
    %628 = vector.broadcast %627 : f32 to vector<16x8xf32>
    %629 = arith.mulf %1, %628 : vector<16x8xf32>
    %c51_105 = arith.constant 51 : index
    %630 = memref.load %arg2[%c51_105] : memref<96xf32, #tpu.memory_space<smem>>
    %631 = vector.broadcast %630 : f32 to vector<16x8xf32>
    %632 = arith.mulf %3, %631 : vector<16x8xf32>
    %633 = arith.addf %629, %632 : vector<16x8xf32>
    %c83 = arith.constant 83 : index
    %634 = memref.load %arg2[%c83] : memref<96xf32, #tpu.memory_space<smem>>
    %635 = vector.broadcast %634 : f32 to vector<16x8xf32>
    %636 = arith.mulf %5, %635 : vector<16x8xf32>
    %637 = arith.addf %633, %636 : vector<16x8xf32>
    %c19_106 = arith.constant 19 : index
    %638 = memref.load %arg3[%c19_106] : memref<32xf32, #tpu.memory_space<smem>>
    %639 = vector.broadcast %638 : f32 to vector<16x8xf32>
    %640 = arith.addf %637, %639 : vector<16x8xf32>
    %cst_107 = arith.constant 0.000000e+00 : f32
    %641 = vector.broadcast %cst_107 : f32 to vector<16x8xf32>
    %642 = arith.maximumf %640, %641 : vector<16x8xf32>
    %c76_108 = arith.constant 76 : index
    %643 = memref.load %arg4[%c76_108] : memref<128xf32, #tpu.memory_space<smem>>
    %644 = vector.broadcast %643 : f32 to vector<16x8xf32>
    %645 = arith.mulf %642, %644 : vector<16x8xf32>
    %646 = arith.addf %614, %645 : vector<16x8xf32>
    %c77_109 = arith.constant 77 : index
    %647 = memref.load %arg4[%c77_109] : memref<128xf32, #tpu.memory_space<smem>>
    %648 = vector.broadcast %647 : f32 to vector<16x8xf32>
    %649 = arith.mulf %642, %648 : vector<16x8xf32>
    %650 = arith.addf %618, %649 : vector<16x8xf32>
    %c78_110 = arith.constant 78 : index
    %651 = memref.load %arg4[%c78_110] : memref<128xf32, #tpu.memory_space<smem>>
    %652 = vector.broadcast %651 : f32 to vector<16x8xf32>
    %653 = arith.mulf %642, %652 : vector<16x8xf32>
    %654 = arith.addf %622, %653 : vector<16x8xf32>
    %c79_111 = arith.constant 79 : index
    %655 = memref.load %arg4[%c79_111] : memref<128xf32, #tpu.memory_space<smem>>
    %656 = vector.broadcast %655 : f32 to vector<16x8xf32>
    %657 = arith.mulf %642, %656 : vector<16x8xf32>
    %658 = arith.addf %626, %657 : vector<16x8xf32>
    %c20_112 = arith.constant 20 : index
    %659 = memref.load %arg2[%c20_112] : memref<96xf32, #tpu.memory_space<smem>>
    %660 = vector.broadcast %659 : f32 to vector<16x8xf32>
    %661 = arith.mulf %1, %660 : vector<16x8xf32>
    %c52_113 = arith.constant 52 : index
    %662 = memref.load %arg2[%c52_113] : memref<96xf32, #tpu.memory_space<smem>>
    %663 = vector.broadcast %662 : f32 to vector<16x8xf32>
    %664 = arith.mulf %3, %663 : vector<16x8xf32>
    %665 = arith.addf %661, %664 : vector<16x8xf32>
    %c84 = arith.constant 84 : index
    %666 = memref.load %arg2[%c84] : memref<96xf32, #tpu.memory_space<smem>>
    %667 = vector.broadcast %666 : f32 to vector<16x8xf32>
    %668 = arith.mulf %5, %667 : vector<16x8xf32>
    %669 = arith.addf %665, %668 : vector<16x8xf32>
    %c20_114 = arith.constant 20 : index
    %670 = memref.load %arg3[%c20_114] : memref<32xf32, #tpu.memory_space<smem>>
    %671 = vector.broadcast %670 : f32 to vector<16x8xf32>
    %672 = arith.addf %669, %671 : vector<16x8xf32>
    %cst_115 = arith.constant 0.000000e+00 : f32
    %673 = vector.broadcast %cst_115 : f32 to vector<16x8xf32>
    %674 = arith.maximumf %672, %673 : vector<16x8xf32>
    %c80_116 = arith.constant 80 : index
    %675 = memref.load %arg4[%c80_116] : memref<128xf32, #tpu.memory_space<smem>>
    %676 = vector.broadcast %675 : f32 to vector<16x8xf32>
    %677 = arith.mulf %674, %676 : vector<16x8xf32>
    %678 = arith.addf %646, %677 : vector<16x8xf32>
    %c81_117 = arith.constant 81 : index
    %679 = memref.load %arg4[%c81_117] : memref<128xf32, #tpu.memory_space<smem>>
    %680 = vector.broadcast %679 : f32 to vector<16x8xf32>
    %681 = arith.mulf %674, %680 : vector<16x8xf32>
    %682 = arith.addf %650, %681 : vector<16x8xf32>
    %c82_118 = arith.constant 82 : index
    %683 = memref.load %arg4[%c82_118] : memref<128xf32, #tpu.memory_space<smem>>
    %684 = vector.broadcast %683 : f32 to vector<16x8xf32>
    %685 = arith.mulf %674, %684 : vector<16x8xf32>
    %686 = arith.addf %654, %685 : vector<16x8xf32>
    %c83_119 = arith.constant 83 : index
    %687 = memref.load %arg4[%c83_119] : memref<128xf32, #tpu.memory_space<smem>>
    %688 = vector.broadcast %687 : f32 to vector<16x8xf32>
    %689 = arith.mulf %674, %688 : vector<16x8xf32>
    %690 = arith.addf %658, %689 : vector<16x8xf32>
    %c21_120 = arith.constant 21 : index
    %691 = memref.load %arg2[%c21_120] : memref<96xf32, #tpu.memory_space<smem>>
    %692 = vector.broadcast %691 : f32 to vector<16x8xf32>
    %693 = arith.mulf %1, %692 : vector<16x8xf32>
    %c53_121 = arith.constant 53 : index
    %694 = memref.load %arg2[%c53_121] : memref<96xf32, #tpu.memory_space<smem>>
    %695 = vector.broadcast %694 : f32 to vector<16x8xf32>
    %696 = arith.mulf %3, %695 : vector<16x8xf32>
    %697 = arith.addf %693, %696 : vector<16x8xf32>
    %c85 = arith.constant 85 : index
    %698 = memref.load %arg2[%c85] : memref<96xf32, #tpu.memory_space<smem>>
    %699 = vector.broadcast %698 : f32 to vector<16x8xf32>
    %700 = arith.mulf %5, %699 : vector<16x8xf32>
    %701 = arith.addf %697, %700 : vector<16x8xf32>
    %c21_122 = arith.constant 21 : index
    %702 = memref.load %arg3[%c21_122] : memref<32xf32, #tpu.memory_space<smem>>
    %703 = vector.broadcast %702 : f32 to vector<16x8xf32>
    %704 = arith.addf %701, %703 : vector<16x8xf32>
    %cst_123 = arith.constant 0.000000e+00 : f32
    %705 = vector.broadcast %cst_123 : f32 to vector<16x8xf32>
    %706 = arith.maximumf %704, %705 : vector<16x8xf32>
    %c84_124 = arith.constant 84 : index
    %707 = memref.load %arg4[%c84_124] : memref<128xf32, #tpu.memory_space<smem>>
    %708 = vector.broadcast %707 : f32 to vector<16x8xf32>
    %709 = arith.mulf %706, %708 : vector<16x8xf32>
    %710 = arith.addf %678, %709 : vector<16x8xf32>
    %c85_125 = arith.constant 85 : index
    %711 = memref.load %arg4[%c85_125] : memref<128xf32, #tpu.memory_space<smem>>
    %712 = vector.broadcast %711 : f32 to vector<16x8xf32>
    %713 = arith.mulf %706, %712 : vector<16x8xf32>
    %714 = arith.addf %682, %713 : vector<16x8xf32>
    %c86 = arith.constant 86 : index
    %715 = memref.load %arg4[%c86] : memref<128xf32, #tpu.memory_space<smem>>
    %716 = vector.broadcast %715 : f32 to vector<16x8xf32>
    %717 = arith.mulf %706, %716 : vector<16x8xf32>
    %718 = arith.addf %686, %717 : vector<16x8xf32>
    %c87 = arith.constant 87 : index
    %719 = memref.load %arg4[%c87] : memref<128xf32, #tpu.memory_space<smem>>
    %720 = vector.broadcast %719 : f32 to vector<16x8xf32>
    %721 = arith.mulf %706, %720 : vector<16x8xf32>
    %722 = arith.addf %690, %721 : vector<16x8xf32>
    %c22_126 = arith.constant 22 : index
    %723 = memref.load %arg2[%c22_126] : memref<96xf32, #tpu.memory_space<smem>>
    %724 = vector.broadcast %723 : f32 to vector<16x8xf32>
    %725 = arith.mulf %1, %724 : vector<16x8xf32>
    %c54_127 = arith.constant 54 : index
    %726 = memref.load %arg2[%c54_127] : memref<96xf32, #tpu.memory_space<smem>>
    %727 = vector.broadcast %726 : f32 to vector<16x8xf32>
    %728 = arith.mulf %3, %727 : vector<16x8xf32>
    %729 = arith.addf %725, %728 : vector<16x8xf32>
    %c86_128 = arith.constant 86 : index
    %730 = memref.load %arg2[%c86_128] : memref<96xf32, #tpu.memory_space<smem>>
    %731 = vector.broadcast %730 : f32 to vector<16x8xf32>
    %732 = arith.mulf %5, %731 : vector<16x8xf32>
    %733 = arith.addf %729, %732 : vector<16x8xf32>
    %c22_129 = arith.constant 22 : index
    %734 = memref.load %arg3[%c22_129] : memref<32xf32, #tpu.memory_space<smem>>
    %735 = vector.broadcast %734 : f32 to vector<16x8xf32>
    %736 = arith.addf %733, %735 : vector<16x8xf32>
    %cst_130 = arith.constant 0.000000e+00 : f32
    %737 = vector.broadcast %cst_130 : f32 to vector<16x8xf32>
    %738 = arith.maximumf %736, %737 : vector<16x8xf32>
    %c88 = arith.constant 88 : index
    %739 = memref.load %arg4[%c88] : memref<128xf32, #tpu.memory_space<smem>>
    %740 = vector.broadcast %739 : f32 to vector<16x8xf32>
    %741 = arith.mulf %738, %740 : vector<16x8xf32>
    %742 = arith.addf %710, %741 : vector<16x8xf32>
    %c89 = arith.constant 89 : index
    %743 = memref.load %arg4[%c89] : memref<128xf32, #tpu.memory_space<smem>>
    %744 = vector.broadcast %743 : f32 to vector<16x8xf32>
    %745 = arith.mulf %738, %744 : vector<16x8xf32>
    %746 = arith.addf %714, %745 : vector<16x8xf32>
    %c90 = arith.constant 90 : index
    %747 = memref.load %arg4[%c90] : memref<128xf32, #tpu.memory_space<smem>>
    %748 = vector.broadcast %747 : f32 to vector<16x8xf32>
    %749 = arith.mulf %738, %748 : vector<16x8xf32>
    %750 = arith.addf %718, %749 : vector<16x8xf32>
    %c91 = arith.constant 91 : index
    %751 = memref.load %arg4[%c91] : memref<128xf32, #tpu.memory_space<smem>>
    %752 = vector.broadcast %751 : f32 to vector<16x8xf32>
    %753 = arith.mulf %738, %752 : vector<16x8xf32>
    %754 = arith.addf %722, %753 : vector<16x8xf32>
    %c23_131 = arith.constant 23 : index
    %755 = memref.load %arg2[%c23_131] : memref<96xf32, #tpu.memory_space<smem>>
    %756 = vector.broadcast %755 : f32 to vector<16x8xf32>
    %757 = arith.mulf %1, %756 : vector<16x8xf32>
    %c55_132 = arith.constant 55 : index
    %758 = memref.load %arg2[%c55_132] : memref<96xf32, #tpu.memory_space<smem>>
    %759 = vector.broadcast %758 : f32 to vector<16x8xf32>
    %760 = arith.mulf %3, %759 : vector<16x8xf32>
    %761 = arith.addf %757, %760 : vector<16x8xf32>
    %c87_133 = arith.constant 87 : index
    %762 = memref.load %arg2[%c87_133] : memref<96xf32, #tpu.memory_space<smem>>
    %763 = vector.broadcast %762 : f32 to vector<16x8xf32>
    %764 = arith.mulf %5, %763 : vector<16x8xf32>
    %765 = arith.addf %761, %764 : vector<16x8xf32>
    %c23_134 = arith.constant 23 : index
    %766 = memref.load %arg3[%c23_134] : memref<32xf32, #tpu.memory_space<smem>>
    %767 = vector.broadcast %766 : f32 to vector<16x8xf32>
    %768 = arith.addf %765, %767 : vector<16x8xf32>
    %cst_135 = arith.constant 0.000000e+00 : f32
    %769 = vector.broadcast %cst_135 : f32 to vector<16x8xf32>
    %770 = arith.maximumf %768, %769 : vector<16x8xf32>
    %c92 = arith.constant 92 : index
    %771 = memref.load %arg4[%c92] : memref<128xf32, #tpu.memory_space<smem>>
    %772 = vector.broadcast %771 : f32 to vector<16x8xf32>
    %773 = arith.mulf %770, %772 : vector<16x8xf32>
    %774 = arith.addf %742, %773 : vector<16x8xf32>
    %c93 = arith.constant 93 : index
    %775 = memref.load %arg4[%c93] : memref<128xf32, #tpu.memory_space<smem>>
    %776 = vector.broadcast %775 : f32 to vector<16x8xf32>
    %777 = arith.mulf %770, %776 : vector<16x8xf32>
    %778 = arith.addf %746, %777 : vector<16x8xf32>
    %c94 = arith.constant 94 : index
    %779 = memref.load %arg4[%c94] : memref<128xf32, #tpu.memory_space<smem>>
    %780 = vector.broadcast %779 : f32 to vector<16x8xf32>
    %781 = arith.mulf %770, %780 : vector<16x8xf32>
    %782 = arith.addf %750, %781 : vector<16x8xf32>
    %c95 = arith.constant 95 : index
    %783 = memref.load %arg4[%c95] : memref<128xf32, #tpu.memory_space<smem>>
    %784 = vector.broadcast %783 : f32 to vector<16x8xf32>
    %785 = arith.mulf %770, %784 : vector<16x8xf32>
    %786 = arith.addf %754, %785 : vector<16x8xf32>
    %c24_136 = arith.constant 24 : index
    %787 = memref.load %arg2[%c24_136] : memref<96xf32, #tpu.memory_space<smem>>
    %788 = vector.broadcast %787 : f32 to vector<16x8xf32>
    %789 = arith.mulf %1, %788 : vector<16x8xf32>
    %c56_137 = arith.constant 56 : index
    %790 = memref.load %arg2[%c56_137] : memref<96xf32, #tpu.memory_space<smem>>
    %791 = vector.broadcast %790 : f32 to vector<16x8xf32>
    %792 = arith.mulf %3, %791 : vector<16x8xf32>
    %793 = arith.addf %789, %792 : vector<16x8xf32>
    %c88_138 = arith.constant 88 : index
    %794 = memref.load %arg2[%c88_138] : memref<96xf32, #tpu.memory_space<smem>>
    %795 = vector.broadcast %794 : f32 to vector<16x8xf32>
    %796 = arith.mulf %5, %795 : vector<16x8xf32>
    %797 = arith.addf %793, %796 : vector<16x8xf32>
    %c24_139 = arith.constant 24 : index
    %798 = memref.load %arg3[%c24_139] : memref<32xf32, #tpu.memory_space<smem>>
    %799 = vector.broadcast %798 : f32 to vector<16x8xf32>
    %800 = arith.addf %797, %799 : vector<16x8xf32>
    %cst_140 = arith.constant 0.000000e+00 : f32
    %801 = vector.broadcast %cst_140 : f32 to vector<16x8xf32>
    %802 = arith.maximumf %800, %801 : vector<16x8xf32>
    %c96 = arith.constant 96 : index
    %803 = memref.load %arg4[%c96] : memref<128xf32, #tpu.memory_space<smem>>
    %804 = vector.broadcast %803 : f32 to vector<16x8xf32>
    %805 = arith.mulf %802, %804 : vector<16x8xf32>
    %806 = arith.addf %774, %805 : vector<16x8xf32>
    %c97 = arith.constant 97 : index
    %807 = memref.load %arg4[%c97] : memref<128xf32, #tpu.memory_space<smem>>
    %808 = vector.broadcast %807 : f32 to vector<16x8xf32>
    %809 = arith.mulf %802, %808 : vector<16x8xf32>
    %810 = arith.addf %778, %809 : vector<16x8xf32>
    %c98 = arith.constant 98 : index
    %811 = memref.load %arg4[%c98] : memref<128xf32, #tpu.memory_space<smem>>
    %812 = vector.broadcast %811 : f32 to vector<16x8xf32>
    %813 = arith.mulf %802, %812 : vector<16x8xf32>
    %814 = arith.addf %782, %813 : vector<16x8xf32>
    %c99 = arith.constant 99 : index
    %815 = memref.load %arg4[%c99] : memref<128xf32, #tpu.memory_space<smem>>
    %816 = vector.broadcast %815 : f32 to vector<16x8xf32>
    %817 = arith.mulf %802, %816 : vector<16x8xf32>
    %818 = arith.addf %786, %817 : vector<16x8xf32>
    %c25_141 = arith.constant 25 : index
    %819 = memref.load %arg2[%c25_141] : memref<96xf32, #tpu.memory_space<smem>>
    %820 = vector.broadcast %819 : f32 to vector<16x8xf32>
    %821 = arith.mulf %1, %820 : vector<16x8xf32>
    %c57_142 = arith.constant 57 : index
    %822 = memref.load %arg2[%c57_142] : memref<96xf32, #tpu.memory_space<smem>>
    %823 = vector.broadcast %822 : f32 to vector<16x8xf32>
    %824 = arith.mulf %3, %823 : vector<16x8xf32>
    %825 = arith.addf %821, %824 : vector<16x8xf32>
    %c89_143 = arith.constant 89 : index
    %826 = memref.load %arg2[%c89_143] : memref<96xf32, #tpu.memory_space<smem>>
    %827 = vector.broadcast %826 : f32 to vector<16x8xf32>
    %828 = arith.mulf %5, %827 : vector<16x8xf32>
    %829 = arith.addf %825, %828 : vector<16x8xf32>
    %c25_144 = arith.constant 25 : index
    %830 = memref.load %arg3[%c25_144] : memref<32xf32, #tpu.memory_space<smem>>
    %831 = vector.broadcast %830 : f32 to vector<16x8xf32>
    %832 = arith.addf %829, %831 : vector<16x8xf32>
    %cst_145 = arith.constant 0.000000e+00 : f32
    %833 = vector.broadcast %cst_145 : f32 to vector<16x8xf32>
    %834 = arith.maximumf %832, %833 : vector<16x8xf32>
    %c100 = arith.constant 100 : index
    %835 = memref.load %arg4[%c100] : memref<128xf32, #tpu.memory_space<smem>>
    %836 = vector.broadcast %835 : f32 to vector<16x8xf32>
    %837 = arith.mulf %834, %836 : vector<16x8xf32>
    %838 = arith.addf %806, %837 : vector<16x8xf32>
    %c101 = arith.constant 101 : index
    %839 = memref.load %arg4[%c101] : memref<128xf32, #tpu.memory_space<smem>>
    %840 = vector.broadcast %839 : f32 to vector<16x8xf32>
    %841 = arith.mulf %834, %840 : vector<16x8xf32>
    %842 = arith.addf %810, %841 : vector<16x8xf32>
    %c102 = arith.constant 102 : index
    %843 = memref.load %arg4[%c102] : memref<128xf32, #tpu.memory_space<smem>>
    %844 = vector.broadcast %843 : f32 to vector<16x8xf32>
    %845 = arith.mulf %834, %844 : vector<16x8xf32>
    %846 = arith.addf %814, %845 : vector<16x8xf32>
    %c103 = arith.constant 103 : index
    %847 = memref.load %arg4[%c103] : memref<128xf32, #tpu.memory_space<smem>>
    %848 = vector.broadcast %847 : f32 to vector<16x8xf32>
    %849 = arith.mulf %834, %848 : vector<16x8xf32>
    %850 = arith.addf %818, %849 : vector<16x8xf32>
    %c26_146 = arith.constant 26 : index
    %851 = memref.load %arg2[%c26_146] : memref<96xf32, #tpu.memory_space<smem>>
    %852 = vector.broadcast %851 : f32 to vector<16x8xf32>
    %853 = arith.mulf %1, %852 : vector<16x8xf32>
    %c58_147 = arith.constant 58 : index
    %854 = memref.load %arg2[%c58_147] : memref<96xf32, #tpu.memory_space<smem>>
    %855 = vector.broadcast %854 : f32 to vector<16x8xf32>
    %856 = arith.mulf %3, %855 : vector<16x8xf32>
    %857 = arith.addf %853, %856 : vector<16x8xf32>
    %c90_148 = arith.constant 90 : index
    %858 = memref.load %arg2[%c90_148] : memref<96xf32, #tpu.memory_space<smem>>
    %859 = vector.broadcast %858 : f32 to vector<16x8xf32>
    %860 = arith.mulf %5, %859 : vector<16x8xf32>
    %861 = arith.addf %857, %860 : vector<16x8xf32>
    %c26_149 = arith.constant 26 : index
    %862 = memref.load %arg3[%c26_149] : memref<32xf32, #tpu.memory_space<smem>>
    %863 = vector.broadcast %862 : f32 to vector<16x8xf32>
    %864 = arith.addf %861, %863 : vector<16x8xf32>
    %cst_150 = arith.constant 0.000000e+00 : f32
    %865 = vector.broadcast %cst_150 : f32 to vector<16x8xf32>
    %866 = arith.maximumf %864, %865 : vector<16x8xf32>
    %c104 = arith.constant 104 : index
    %867 = memref.load %arg4[%c104] : memref<128xf32, #tpu.memory_space<smem>>
    %868 = vector.broadcast %867 : f32 to vector<16x8xf32>
    %869 = arith.mulf %866, %868 : vector<16x8xf32>
    %870 = arith.addf %838, %869 : vector<16x8xf32>
    %c105 = arith.constant 105 : index
    %871 = memref.load %arg4[%c105] : memref<128xf32, #tpu.memory_space<smem>>
    %872 = vector.broadcast %871 : f32 to vector<16x8xf32>
    %873 = arith.mulf %866, %872 : vector<16x8xf32>
    %874 = arith.addf %842, %873 : vector<16x8xf32>
    %c106 = arith.constant 106 : index
    %875 = memref.load %arg4[%c106] : memref<128xf32, #tpu.memory_space<smem>>
    %876 = vector.broadcast %875 : f32 to vector<16x8xf32>
    %877 = arith.mulf %866, %876 : vector<16x8xf32>
    %878 = arith.addf %846, %877 : vector<16x8xf32>
    %c107 = arith.constant 107 : index
    %879 = memref.load %arg4[%c107] : memref<128xf32, #tpu.memory_space<smem>>
    %880 = vector.broadcast %879 : f32 to vector<16x8xf32>
    %881 = arith.mulf %866, %880 : vector<16x8xf32>
    %882 = arith.addf %850, %881 : vector<16x8xf32>
    %c27_151 = arith.constant 27 : index
    %883 = memref.load %arg2[%c27_151] : memref<96xf32, #tpu.memory_space<smem>>
    %884 = vector.broadcast %883 : f32 to vector<16x8xf32>
    %885 = arith.mulf %1, %884 : vector<16x8xf32>
    %c59_152 = arith.constant 59 : index
    %886 = memref.load %arg2[%c59_152] : memref<96xf32, #tpu.memory_space<smem>>
    %887 = vector.broadcast %886 : f32 to vector<16x8xf32>
    %888 = arith.mulf %3, %887 : vector<16x8xf32>
    %889 = arith.addf %885, %888 : vector<16x8xf32>
    %c91_153 = arith.constant 91 : index
    %890 = memref.load %arg2[%c91_153] : memref<96xf32, #tpu.memory_space<smem>>
    %891 = vector.broadcast %890 : f32 to vector<16x8xf32>
    %892 = arith.mulf %5, %891 : vector<16x8xf32>
    %893 = arith.addf %889, %892 : vector<16x8xf32>
    %c27_154 = arith.constant 27 : index
    %894 = memref.load %arg3[%c27_154] : memref<32xf32, #tpu.memory_space<smem>>
    %895 = vector.broadcast %894 : f32 to vector<16x8xf32>
    %896 = arith.addf %893, %895 : vector<16x8xf32>
    %cst_155 = arith.constant 0.000000e+00 : f32
    %897 = vector.broadcast %cst_155 : f32 to vector<16x8xf32>
    %898 = arith.maximumf %896, %897 : vector<16x8xf32>
    %c108 = arith.constant 108 : index
    %899 = memref.load %arg4[%c108] : memref<128xf32, #tpu.memory_space<smem>>
    %900 = vector.broadcast %899 : f32 to vector<16x8xf32>
    %901 = arith.mulf %898, %900 : vector<16x8xf32>
    %902 = arith.addf %870, %901 : vector<16x8xf32>
    %c109 = arith.constant 109 : index
    %903 = memref.load %arg4[%c109] : memref<128xf32, #tpu.memory_space<smem>>
    %904 = vector.broadcast %903 : f32 to vector<16x8xf32>
    %905 = arith.mulf %898, %904 : vector<16x8xf32>
    %906 = arith.addf %874, %905 : vector<16x8xf32>
    %c110 = arith.constant 110 : index
    %907 = memref.load %arg4[%c110] : memref<128xf32, #tpu.memory_space<smem>>
    %908 = vector.broadcast %907 : f32 to vector<16x8xf32>
    %909 = arith.mulf %898, %908 : vector<16x8xf32>
    %910 = arith.addf %878, %909 : vector<16x8xf32>
    %c111 = arith.constant 111 : index
    %911 = memref.load %arg4[%c111] : memref<128xf32, #tpu.memory_space<smem>>
    %912 = vector.broadcast %911 : f32 to vector<16x8xf32>
    %913 = arith.mulf %898, %912 : vector<16x8xf32>
    %914 = arith.addf %882, %913 : vector<16x8xf32>
    %c28_156 = arith.constant 28 : index
    %915 = memref.load %arg2[%c28_156] : memref<96xf32, #tpu.memory_space<smem>>
    %916 = vector.broadcast %915 : f32 to vector<16x8xf32>
    %917 = arith.mulf %1, %916 : vector<16x8xf32>
    %c60_157 = arith.constant 60 : index
    %918 = memref.load %arg2[%c60_157] : memref<96xf32, #tpu.memory_space<smem>>
    %919 = vector.broadcast %918 : f32 to vector<16x8xf32>
    %920 = arith.mulf %3, %919 : vector<16x8xf32>
    %921 = arith.addf %917, %920 : vector<16x8xf32>
    %c92_158 = arith.constant 92 : index
    %922 = memref.load %arg2[%c92_158] : memref<96xf32, #tpu.memory_space<smem>>
    %923 = vector.broadcast %922 : f32 to vector<16x8xf32>
    %924 = arith.mulf %5, %923 : vector<16x8xf32>
    %925 = arith.addf %921, %924 : vector<16x8xf32>
    %c28_159 = arith.constant 28 : index
    %926 = memref.load %arg3[%c28_159] : memref<32xf32, #tpu.memory_space<smem>>
    %927 = vector.broadcast %926 : f32 to vector<16x8xf32>
    %928 = arith.addf %925, %927 : vector<16x8xf32>
    %cst_160 = arith.constant 0.000000e+00 : f32
    %929 = vector.broadcast %cst_160 : f32 to vector<16x8xf32>
    %930 = arith.maximumf %928, %929 : vector<16x8xf32>
    %c112 = arith.constant 112 : index
    %931 = memref.load %arg4[%c112] : memref<128xf32, #tpu.memory_space<smem>>
    %932 = vector.broadcast %931 : f32 to vector<16x8xf32>
    %933 = arith.mulf %930, %932 : vector<16x8xf32>
    %934 = arith.addf %902, %933 : vector<16x8xf32>
    %c113 = arith.constant 113 : index
    %935 = memref.load %arg4[%c113] : memref<128xf32, #tpu.memory_space<smem>>
    %936 = vector.broadcast %935 : f32 to vector<16x8xf32>
    %937 = arith.mulf %930, %936 : vector<16x8xf32>
    %938 = arith.addf %906, %937 : vector<16x8xf32>
    %c114 = arith.constant 114 : index
    %939 = memref.load %arg4[%c114] : memref<128xf32, #tpu.memory_space<smem>>
    %940 = vector.broadcast %939 : f32 to vector<16x8xf32>
    %941 = arith.mulf %930, %940 : vector<16x8xf32>
    %942 = arith.addf %910, %941 : vector<16x8xf32>
    %c115 = arith.constant 115 : index
    %943 = memref.load %arg4[%c115] : memref<128xf32, #tpu.memory_space<smem>>
    %944 = vector.broadcast %943 : f32 to vector<16x8xf32>
    %945 = arith.mulf %930, %944 : vector<16x8xf32>
    %946 = arith.addf %914, %945 : vector<16x8xf32>
    %c29_161 = arith.constant 29 : index
    %947 = memref.load %arg2[%c29_161] : memref<96xf32, #tpu.memory_space<smem>>
    %948 = vector.broadcast %947 : f32 to vector<16x8xf32>
    %949 = arith.mulf %1, %948 : vector<16x8xf32>
    %c61_162 = arith.constant 61 : index
    %950 = memref.load %arg2[%c61_162] : memref<96xf32, #tpu.memory_space<smem>>
    %951 = vector.broadcast %950 : f32 to vector<16x8xf32>
    %952 = arith.mulf %3, %951 : vector<16x8xf32>
    %953 = arith.addf %949, %952 : vector<16x8xf32>
    %c93_163 = arith.constant 93 : index
    %954 = memref.load %arg2[%c93_163] : memref<96xf32, #tpu.memory_space<smem>>
    %955 = vector.broadcast %954 : f32 to vector<16x8xf32>
    %956 = arith.mulf %5, %955 : vector<16x8xf32>
    %957 = arith.addf %953, %956 : vector<16x8xf32>
    %c29_164 = arith.constant 29 : index
    %958 = memref.load %arg3[%c29_164] : memref<32xf32, #tpu.memory_space<smem>>
    %959 = vector.broadcast %958 : f32 to vector<16x8xf32>
    %960 = arith.addf %957, %959 : vector<16x8xf32>
    %cst_165 = arith.constant 0.000000e+00 : f32
    %961 = vector.broadcast %cst_165 : f32 to vector<16x8xf32>
    %962 = arith.maximumf %960, %961 : vector<16x8xf32>
    %c116 = arith.constant 116 : index
    %963 = memref.load %arg4[%c116] : memref<128xf32, #tpu.memory_space<smem>>
    %964 = vector.broadcast %963 : f32 to vector<16x8xf32>
    %965 = arith.mulf %962, %964 : vector<16x8xf32>
    %966 = arith.addf %934, %965 : vector<16x8xf32>
    %c117 = arith.constant 117 : index
    %967 = memref.load %arg4[%c117] : memref<128xf32, #tpu.memory_space<smem>>
    %968 = vector.broadcast %967 : f32 to vector<16x8xf32>
    %969 = arith.mulf %962, %968 : vector<16x8xf32>
    %970 = arith.addf %938, %969 : vector<16x8xf32>
    %c118 = arith.constant 118 : index
    %971 = memref.load %arg4[%c118] : memref<128xf32, #tpu.memory_space<smem>>
    %972 = vector.broadcast %971 : f32 to vector<16x8xf32>
    %973 = arith.mulf %962, %972 : vector<16x8xf32>
    %974 = arith.addf %942, %973 : vector<16x8xf32>
    %c119 = arith.constant 119 : index
    %975 = memref.load %arg4[%c119] : memref<128xf32, #tpu.memory_space<smem>>
    %976 = vector.broadcast %975 : f32 to vector<16x8xf32>
    %977 = arith.mulf %962, %976 : vector<16x8xf32>
    %978 = arith.addf %946, %977 : vector<16x8xf32>
    %c30_166 = arith.constant 30 : index
    %979 = memref.load %arg2[%c30_166] : memref<96xf32, #tpu.memory_space<smem>>
    %980 = vector.broadcast %979 : f32 to vector<16x8xf32>
    %981 = arith.mulf %1, %980 : vector<16x8xf32>
    %c62_167 = arith.constant 62 : index
    %982 = memref.load %arg2[%c62_167] : memref<96xf32, #tpu.memory_space<smem>>
    %983 = vector.broadcast %982 : f32 to vector<16x8xf32>
    %984 = arith.mulf %3, %983 : vector<16x8xf32>
    %985 = arith.addf %981, %984 : vector<16x8xf32>
    %c94_168 = arith.constant 94 : index
    %986 = memref.load %arg2[%c94_168] : memref<96xf32, #tpu.memory_space<smem>>
    %987 = vector.broadcast %986 : f32 to vector<16x8xf32>
    %988 = arith.mulf %5, %987 : vector<16x8xf32>
    %989 = arith.addf %985, %988 : vector<16x8xf32>
    %c30_169 = arith.constant 30 : index
    %990 = memref.load %arg3[%c30_169] : memref<32xf32, #tpu.memory_space<smem>>
    %991 = vector.broadcast %990 : f32 to vector<16x8xf32>
    %992 = arith.addf %989, %991 : vector<16x8xf32>
    %cst_170 = arith.constant 0.000000e+00 : f32
    %993 = vector.broadcast %cst_170 : f32 to vector<16x8xf32>
    %994 = arith.maximumf %992, %993 : vector<16x8xf32>
    %c120 = arith.constant 120 : index
    %995 = memref.load %arg4[%c120] : memref<128xf32, #tpu.memory_space<smem>>
    %996 = vector.broadcast %995 : f32 to vector<16x8xf32>
    %997 = arith.mulf %994, %996 : vector<16x8xf32>
    %998 = arith.addf %966, %997 : vector<16x8xf32>
    %c121 = arith.constant 121 : index
    %999 = memref.load %arg4[%c121] : memref<128xf32, #tpu.memory_space<smem>>
    %1000 = vector.broadcast %999 : f32 to vector<16x8xf32>
    %1001 = arith.mulf %994, %1000 : vector<16x8xf32>
    %1002 = arith.addf %970, %1001 : vector<16x8xf32>
    %c122 = arith.constant 122 : index
    %1003 = memref.load %arg4[%c122] : memref<128xf32, #tpu.memory_space<smem>>
    %1004 = vector.broadcast %1003 : f32 to vector<16x8xf32>
    %1005 = arith.mulf %994, %1004 : vector<16x8xf32>
    %1006 = arith.addf %974, %1005 : vector<16x8xf32>
    %c123 = arith.constant 123 : index
    %1007 = memref.load %arg4[%c123] : memref<128xf32, #tpu.memory_space<smem>>
    %1008 = vector.broadcast %1007 : f32 to vector<16x8xf32>
    %1009 = arith.mulf %994, %1008 : vector<16x8xf32>
    %1010 = arith.addf %978, %1009 : vector<16x8xf32>
    %c31_171 = arith.constant 31 : index
    %1011 = memref.load %arg2[%c31_171] : memref<96xf32, #tpu.memory_space<smem>>
    %1012 = vector.broadcast %1011 : f32 to vector<16x8xf32>
    %1013 = arith.mulf %1, %1012 : vector<16x8xf32>
    %c63_172 = arith.constant 63 : index
    %1014 = memref.load %arg2[%c63_172] : memref<96xf32, #tpu.memory_space<smem>>
    %1015 = vector.broadcast %1014 : f32 to vector<16x8xf32>
    %1016 = arith.mulf %3, %1015 : vector<16x8xf32>
    %1017 = arith.addf %1013, %1016 : vector<16x8xf32>
    %c95_173 = arith.constant 95 : index
    %1018 = memref.load %arg2[%c95_173] : memref<96xf32, #tpu.memory_space<smem>>
    %1019 = vector.broadcast %1018 : f32 to vector<16x8xf32>
    %1020 = arith.mulf %5, %1019 : vector<16x8xf32>
    %1021 = arith.addf %1017, %1020 : vector<16x8xf32>
    %c31_174 = arith.constant 31 : index
    %1022 = memref.load %arg3[%c31_174] : memref<32xf32, #tpu.memory_space<smem>>
    %1023 = vector.broadcast %1022 : f32 to vector<16x8xf32>
    %1024 = arith.addf %1021, %1023 : vector<16x8xf32>
    %cst_175 = arith.constant 0.000000e+00 : f32
    %1025 = vector.broadcast %cst_175 : f32 to vector<16x8xf32>
    %1026 = arith.maximumf %1024, %1025 : vector<16x8xf32>
    %c124 = arith.constant 124 : index
    %1027 = memref.load %arg4[%c124] : memref<128xf32, #tpu.memory_space<smem>>
    %1028 = vector.broadcast %1027 : f32 to vector<16x8xf32>
    %1029 = arith.mulf %1026, %1028 : vector<16x8xf32>
    %1030 = arith.addf %998, %1029 : vector<16x8xf32>
    %c125 = arith.constant 125 : index
    %1031 = memref.load %arg4[%c125] : memref<128xf32, #tpu.memory_space<smem>>
    %1032 = vector.broadcast %1031 : f32 to vector<16x8xf32>
    %1033 = arith.mulf %1026, %1032 : vector<16x8xf32>
    %1034 = arith.addf %1002, %1033 : vector<16x8xf32>
    %c126 = arith.constant 126 : index
    %1035 = memref.load %arg4[%c126] : memref<128xf32, #tpu.memory_space<smem>>
    %1036 = vector.broadcast %1035 : f32 to vector<16x8xf32>
    %1037 = arith.mulf %1026, %1036 : vector<16x8xf32>
    %1038 = arith.addf %1006, %1037 : vector<16x8xf32>
    %c127 = arith.constant 127 : index
    %1039 = memref.load %arg4[%c127] : memref<128xf32, #tpu.memory_space<smem>>
    %1040 = vector.broadcast %1039 : f32 to vector<16x8xf32>
    %1041 = arith.mulf %1026, %1040 : vector<16x8xf32>
    %1042 = arith.addf %1010, %1041 : vector<16x8xf32>
    %cst_176 = arith.constant 2.000000e+01 : f32
    %1043 = vector.broadcast %cst_176 : f32 to vector<16x8xf32>
    %1044 = arith.cmpf ogt, %1030, %1043 : vector<16x8xf32>
    %cst_177 = arith.constant 2.000000e+01 : f32
    %1045 = vector.broadcast %cst_177 : f32 to vector<16x8xf32>
    %1046 = arith.minimumf %1030, %1045 : vector<16x8xf32>
    %1047 = math.exp %1046 : vector<16x8xf32>
    %1048 = math.log1p %1047 : vector<16x8xf32>
    %1049 = arith.select %1044, %1030, %1048 : vector<16x8xi1>, vector<16x8xf32>
    %cst_178 = arith.constant 0.000000e+00 : f32
    %1050 = vector.broadcast %cst_178 : f32 to vector<16x8xf32>
    %1051 = arith.subf %1050, %1034 : vector<16x8xf32>
    %1052 = math.exp %1051 : vector<16x8xf32>
    %cst_179 = arith.constant 1.000000e+00 : f32
    %1053 = vector.broadcast %cst_179 : f32 to vector<16x8xf32>
    %1054 = arith.addf %1053, %1052 : vector<16x8xf32>
    %cst_180 = arith.constant 1.000000e+00 : f32
    %1055 = vector.broadcast %cst_180 : f32 to vector<16x8xf32>
    %1056 = arith.divf %1055, %1054 : vector<16x8xf32>
    %cst_181 = arith.constant 0.000000e+00 : f32
    %1057 = vector.broadcast %cst_181 : f32 to vector<16x8xf32>
    %1058 = arith.subf %1057, %1038 : vector<16x8xf32>
    %1059 = math.exp %1058 : vector<16x8xf32>
    %cst_182 = arith.constant 1.000000e+00 : f32
    %1060 = vector.broadcast %cst_182 : f32 to vector<16x8xf32>
    %1061 = arith.addf %1060, %1059 : vector<16x8xf32>
    %cst_183 = arith.constant 1.000000e+00 : f32
    %1062 = vector.broadcast %cst_183 : f32 to vector<16x8xf32>
    %1063 = arith.divf %1062, %1061 : vector<16x8xf32>
    %cst_184 = arith.constant 0.000000e+00 : f32
    %1064 = vector.broadcast %cst_184 : f32 to vector<16x8xf32>
    %1065 = arith.subf %1064, %1042 : vector<16x8xf32>
    %1066 = math.exp %1065 : vector<16x8xf32>
    %cst_185 = arith.constant 1.000000e+00 : f32
    %1067 = vector.broadcast %cst_185 : f32 to vector<16x8xf32>
    %1068 = arith.addf %1067, %1066 : vector<16x8xf32>
    %cst_186 = arith.constant 1.000000e+00 : f32
    %1069 = vector.broadcast %cst_186 : f32 to vector<16x8xf32>
    %1070 = arith.divf %1069, %1068 : vector<16x8xf32>
    %cst_187 = arith.constant 0.000000e+00 : f32
    %1071 = vector.broadcast %cst_187 : f32 to vector<16x8xf32>
    %1072 = arith.subf %1071, %1049 : vector<16x8xf32>
    %c0_188 = arith.constant 0 : index
    %c0_189 = arith.constant 0 : index
    %1073 = vector.load %arg6[%c0_188, %c0_189] : memref<16x1xf32, #tpu.memory_space<vmem>>, vector<16x1xf32>
    %1074 = vector.broadcast %1073 : vector<16x1xf32> to vector<16x8xf32>
    %1075 = arith.mulf %1072, %1074 : vector<16x8xf32>
    %1076 = math.exp %1075 : vector<16x8xf32>
    %cst_190 = arith.constant 1.000000e+00 : f32
    %1077 = vector.broadcast %cst_190 : f32 to vector<16x8xf32>
    %1078 = arith.subf %1077, %1076 : vector<16x8xf32>
    %c0_191 = arith.constant 0 : index
    %c0_192 = arith.constant 0 : index
    %1079 = vector.load %arg7[%c0_191, %c0_192] : memref<16x16xf32, #tpu.memory_space<vmem>>, vector<16x16xf32>
    %cst_193 = arith.constant dense<0.000000e+00> : vector<16x8xf32>
    %1080 = tpu.matmul %1079, %1075, %cst_193 {dimension_numbers = #tpu.dot_dimension_numbers<[1], [0], [0], [1], [0, 0, 1, 1], [], []>} : vector<16x16xf32>, vector<16x8xf32>, vector<16x8xf32> -> vector<16x8xf32>
    %1081 = math.exp %1080 : vector<16x8xf32>
    %1082 = arith.mulf %1078, %1081 : vector<16x8xf32>
    %1083 = arith.mulf %1082, %1056 : vector<16x8xf32>
    %cst_194 = arith.constant dense<0.000000e+00> : vector<8xf32>
    %1084 = vector.multi_reduction <add>, %1083, %cst_194 [0] : vector<16x8xf32> to vector<8xf32>
    %1085 = vector.shape_cast %1084 : vector<8xf32> to vector<1x8xf32>
    %1086 = arith.mulf %1082, %1063 : vector<16x8xf32>
    %cst_195 = arith.constant dense<0.000000e+00> : vector<8xf32>
    %1087 = vector.multi_reduction <add>, %1086, %cst_195 [0] : vector<16x8xf32> to vector<8xf32>
    %1088 = vector.shape_cast %1087 : vector<8xf32> to vector<1x8xf32>
    %1089 = arith.mulf %1082, %1070 : vector<16x8xf32>
    %cst_196 = arith.constant dense<0.000000e+00> : vector<8xf32>
    %1090 = vector.multi_reduction <add>, %1089, %cst_196 [0] : vector<16x8xf32> to vector<8xf32>
    %1091 = vector.shape_cast %1090 : vector<8xf32> to vector<1x8xf32>
    %cst_197 = arith.constant dense<0.000000e+00> : vector<8xf32>
    %1092 = vector.multi_reduction <add>, %1082, %cst_197 [0] : vector<16x8xf32> to vector<8xf32>
    %1093 = vector.shape_cast %1092 : vector<8xf32> to vector<1x8xf32>
    %1094 = tpu.concatenate %1085, %1088, %1091, %1093 in 0 : vector<1x8xf32>, vector<1x8xf32>, vector<1x8xf32>, vector<1x8xf32> -> vector<4x8xf32>
    %c0_198 = arith.constant 0 : index
    %c0_199 = arith.constant 0 : index
    %c0_200 = arith.constant 0 : index
    %1095 = vector.load %arg8[%c0_198, %c0_199, %c0_200] : memref<1x4x8xf32, #tpu.memory_space<vmem>>, vector<1x4x8xf32>
    %1096 = vector.shape_cast %1095 : vector<1x4x8xf32> to vector<4x8xf32>
    %1097 = vector.shape_cast %1094 : vector<4x8xf32> to vector<1x4x8xf32>
    tpu.vector_store %arg8[%c0_198, %c0_199, %c0_200], %1097 {strides = array<i32>} : memref<1x4x8xf32, #tpu.memory_space<vmem>>, vector<1x4x8xf32>,
    return
  }
  func.func @transform_0(%arg0: i32) -> (i32, i32, i32, i32) {
    %c0_i32 = arith.constant 0 : i32
    %c0_i32_0 = arith.constant 0 : i32
    %c0_i32_1 = arith.constant 0 : i32
    %c0_i32_2 = arith.constant 0 : i32
    return %arg0, %c0_i32, %c0_i32_0, %c0_i32_1 : i32, i32, i32, i32
  }
  func.func @transform_1(%arg0: i32) -> i32 {
    %c0_i32 = arith.constant 0 : i32
    %c0_i32_0 = arith.constant 0 : i32
    return %c0_i32 : i32
  }
  func.func @transform_2(%arg0: i32) -> i32 {
    %c0_i32 = arith.constant 0 : i32
    %c0_i32_0 = arith.constant 0 : i32
    return %c0_i32 : i32
  }
  func.func @transform_3(%arg0: i32) -> i32 {
    %c0_i32 = arith.constant 0 : i32
    %c0_i32_0 = arith.constant 0 : i32
    return %c0_i32 : i32
  }
  func.func @transform_4(%arg0: i32) -> i32 {
    %c0_i32 = arith.constant 0 : i32
    %c0_i32_0 = arith.constant 0 : i32
    return %c0_i32 : i32
  }
  func.func @transform_5(%arg0: i32) -> (i32, i32) {
    %c0_i32 = arith.constant 0 : i32
    %c0_i32_0 = arith.constant 0 : i32
    %c0_i32_1 = arith.constant 0 : i32
    return %c0_i32, %c0_i32_0 : i32, i32
  }
  func.func @transform_6(%arg0: i32) -> (i32, i32) {
    %c0_i32 = arith.constant 0 : i32
    %c0_i32_0 = arith.constant 0 : i32
    %c0_i32_1 = arith.constant 0 : i32
    return %c0_i32, %c0_i32_0 : i32, i32
  }
  func.func @transform_7(%arg0: i32) -> (i32, i32, i32) {
    %c0_i32 = arith.constant 0 : i32
    %c0_i32_0 = arith.constant 0 : i32
    %c0_i32_1 = arith.constant 0 : i32
    return %arg0, %c0_i32, %c0_i32_0 : i32, i32, i32
  }
}

</mosaic_0001>

<bundles_post_ra>
// kernel: tpu_custom_call.1
= control target key start
LH: loop header
LB: loop body
LE: loop exit
PB: predicated region body
PF: predicated region fallthrough
CT: control target
= control target key end

     0   :  { %s4005_s0 = inlined_call_operand.vmem [shape: f32[2,3,16,8], index: 0, kind: input, shape index: {}]   ;;  %s4006_s1 = inlined_call_operand.vmem [shape: f32[96], index: 1, kind: input, shape index: {}]   ;;  %s4007_s2 = inlined_call_operand.vmem [shape: f32[32], index: 2, kind: input, shape index: {}]   ;;  %s4008_s3 = inlined_call_operand.vmem [shape: f32[128], index: 3, kind: input, shape index: {}]   ;;  %s4009_s4 = inlined_call_operand.vmem [shape: f32[4], index: 4, kind: input, shape index: {}]   ;;  %s4010_s5 = inlined_call_operand.vmem [shape: f32[16,1], index: 5, kind: input, shape index: {}]   ;;  %s4011_s6 = inlined_call_operand.vmem [shape: f32[16,16], index: 6, kind: input, shape index: {}]   ;;  %s4012_s7 = inlined_call_operand.hbm [shape: f32[2,4,8], index: 7, kind: output, shape index: {}]  }
   0x1   :  { %4016 = sst [smem:[#allocation15_spill]] %s4005_s0 }
   0x2   :  { %4017 = sst [smem:[#allocation16_spill]] %s4006_s1 }
   0x3   :  { %4018 = sst [smem:[#allocation17_spill]] %s4007_s2 }
   0x4   :  { %12 = vsyncpa [#allocation4], 0 }
   0x5   :  { %13 = vsyncpa [#allocation6], 0 }
   0x6   :  { %14 = vsyncpa [#allocation9], 0 }
   0x7   :  { %15 = vsyncpa [#allocation3], 0 }
   0x8   :  { %17 = vsyncpa [#allocation3 + $0x1], 0  ;;  %s2768_s24 = smov 0   ;;  %s2770_s25 = smov 0  }
   0x9   :  { %s2772_s26 = smov 0   ;;  %s2774_s27 = smov 0  }
   0xa LB: > { %s2789_s28 = sadd.s32 4294967295, %s2720_s27   ;;  %s2162_s29 = sadd.s32 4294967294, %s2720_s27   ;;  %s2720_s27 = sphi %s2774_s27, %s4038_s27   ;;  %s2716_s26 = sphi %s2772_s26, %s4037_s26   ;;  %s2712_s25 = sphi %s2770_s25, %s4036_s25   ;;  %s2708_s24 = sphi %s2768_s24, %s4035_s24  }
   0xb   : > { %s2793_s30 = sadd.s32 1, %s2720_s27   ;;  %s182_s8 = sadd.s32 1, %s2716_s26 }
   0xc   : > { %s179_s9 = ssub.s32 %s2720_s27, %s2793_s30  ;;  %p192_p0 = scmp.ne.s32.totalorder %s2716_s26, %s2712_s25 }
   0xd   : > { %p180_p1 = scmp.eq.s32.totalorder %s179_s9, 0  ;;  %p193_p2 = scmp.eq.s32.totalorder %s2789_s28, 1 }
   0xe   : > { %p198_p3 = scmp.ne.s32.totalorder %s2712_s25, %s2708_s24  ;;  %p199_p4 = scmp.eq.s32.totalorder %s2162_s29, 1 }
   0xf   : > { %s2804_s10 = scalar_select %p180_p1, %s2716_s26, %s182_s8  }
  0x10   : > { %p2806_p5 = por %p193_p2, %p192_p0  ;;  %p2810_p6 = por %p199_p4, %p198_p3 }
  0x11   : > { %p2163_p7 = scmp.ge.s32.totalorder %s2720_s27, 1  ;;  %p206_p8 = scmp.lt.s32.totalorder %s2720_s27, 3 }
  0x12   : > { %s4019_s11 = scalar_select %p2806_p5, 1, 0 }
  0x13   : > { %s4020_s12 = scalar_select %p2810_p6, 1, 0 }
  0x14   : > { %p4013_p9 = scmp.eq.s32.totalorder %s2789_s28, 0  ;;  %p2817_p10 = pnand %p2163_p7, %p206_p8 }
  0x15   : > { %s4022_s2 = sld [smem:[#allocation17_spill]]  ;;  %s241_s23 = sshll.u32 %s4008_s3, 4  ;;  %s2838_s23 = int_to_ptr.vmem [resolvable:$true] %s241_s23 }
  0x16   : > { %s4021_s13 = scalar_select %p2817_p10, 1, 0 }
  0x17   : > { %p2472_p11 = pneg %p2817_p10  ;;  %s4023_s1 = sld [smem:[#allocation16_spill]] }
  0x18   : > { %s252_s9 = sshll.u32 %s4009_s4, 4  ;;  %s253_s9 = int_to_ptr.vmem [resolvable:$true] %s252_s9 }
  0x19   : > { %p2831_p12 = pnand %p4013_p9, %p2472_p11 }
  0x1b   : > { %s230_s16 = sshll.u32 %s4022_s2, 4  ;;  %p2590_p0 = pneg %p2831_p12  ;;  %s231_s16 = int_to_ptr.vmem [resolvable:$true] %s230_s16 }
  0x1c   : > { %s2588_s14 = scalar_lea.vmem %s231_s16, 16  ;;  %p2596_p3 = scmp.lt.s32.totalorder %s231_s16, %s231_s16 }
  0x1d   : > { %s219_s19 = sshll.u32 %s4023_s1, 4  ;;  %p2589_p13 = scmp.ne.s32.totalorder %s231_s16, %s2588_s14  ;;  %s220_s19 = int_to_ptr.vmem [resolvable:$true] %s219_s19 }
  0x1e   : > { %p2597_p4 = scmp.lt.s32.totalorder %s2588_s14, %s2588_s14 }
  0x1f   : > { %p2591_p1 = pnand %p2590_p0, %p2589_p13 }
  0x20   : > { %p2598_p7 = por %p2597_p4, %p2596_p3 }
  0x21   : > { %p2592_p2 = pneg %p2591_p1 }
  0x23   : > { %p2599_p8 = pnand %p2598_p7, %p2592_p2 }
  0x25   : > { %2602 = shalt.err (!%p2599_p8)
}
  0x26   : > { %s2722_s15 = smov [#allocation5]   ;;  %s2603_s17 = scalar_lea.vmem %s220_s19, 16 }
  0x27   : > { %2478 = dma.vmem_to_smem (!%p2831_p12), %s231_s16, 16, %s2722_s15, [#allocation6]  }
  0x28   : > { %p2604_p11 = scmp.ne.s32.totalorder %s220_s19, %s2603_s17  ;;  %p2611_p5 = scmp.lt.s32.totalorder %s220_s19, %s220_s19 }
  0x29   : > { %p2612_p10 = scmp.lt.s32.totalorder %s2603_s17, %s2603_s17 }
  0x2a   : > { %p2606_p9 = pnand %p2604_p11, %p2590_p0 }
  0x2b   : > { %p2613_p13 = por %p2612_p10, %p2611_p5 }
  0x2c   : > { %p2607_p6 = pneg %p2606_p9 }
  0x2e   : > { %p2614_p1 = pnand %p2613_p13, %p2607_p6 }
  0x30   : > { %2617 = shalt.err (!%p2614_p1)
}
  0x31   : > { %s2723_s18 = smov [#allocation2]   ;;  %s2618_s16 = scalar_lea.vmem %s2838_s23, 16 }
  0x32   : > { %2475 = dma.vmem_to_smem (!%p2831_p12), %s220_s19, 16, %s2723_s18, [#allocation4]  }
  0x33   : > { %p2619_p2 = scmp.ne.s32.totalorder %s2838_s23, %s2618_s16  ;;  %p2626_p9 = scmp.lt.s32.totalorder %s2838_s23, %s2838_s23 }
  0x34   : > { %p2627_p7 = scmp.lt.s32.totalorder %s2618_s16, %s2618_s16 }
  0x35   : > { %p2621_p3 = pnand %p2619_p2, %p2590_p0 }
  0x36   : > { %p2628_p5 = por %p2627_p7, %p2626_p9 }
  0x37   : > { %p2622_p4 = pneg %p2621_p3 }
  0x39   : > { %p2629_p6 = pnand %p2628_p5, %p2622_p4 }
  0x3b   : > { %2632 = shalt.err (!%p2629_p6)
}
  0x3c   : > { %s2724_s21 = smov [#allocation7]   ;;  %s2633_s29 = scalar_lea.vmem %s253_s9, 16 }
  0x3d   : > { %2481 = dma.vmem_to_smem (!%p2831_p12), %s2838_s23, 16, %s2724_s21, [#allocation6]  }
  0x3e   : > { %p2634_p10 = scmp.ne.s32.totalorder %s253_s9, %s2633_s29  ;;  %p2641_p13 = scmp.lt.s32.totalorder %s253_s9, %s253_s9 }
  0x3f   : > { %p2642_p1 = scmp.lt.s32.totalorder %s2633_s29, %s2633_s29 }
  0x40   : > { %p2636_p8 = pnand %p2634_p10, %p2590_p0 }
  0x41   : > { %p2643_p2 = por %p2642_p1, %p2641_p13 }
  0x42   : > { %p2637_p11 = pneg %p2636_p8 }
  0x44   : > { %p2644_p3 = pnand %p2643_p2, %p2637_p11 }
  0x46   : > { %2647 = shalt.err (!%p2644_p3)
}
  0x47   : > { %s2725_s8 = smov [#allocation8]   ;;  %p4025_p4 = scmp.ne.s32.totalorder %s4021_s13, 0 }
  0x48   : > { %2484 = dma.vmem_to_smem (!%p2831_p12), %s253_s9, 16, %s2725_s8, [#allocation9]  }
  0x49   : > { %279 = sbr.rel (%p4025_p4) target bundleno = 705 (0x2c1), region = 48  ;;  %p4026_p9 = scmp.eq.s32.totalorder (!%p4025_p4), %s2789_s28, 0 }
  0x4e   : > { %2691 = dma.done.wait (%p4026_p9), [#allocation4], 16   ;;  %p4027_p7 = pmov %p4026_p9 }
  0x50   : > { %2693 = vsyncadd (%p4027_p7), [#allocation4], 4294967280  ;;  %p4028_p0 = pmov %p4027_p7 }
  0x52   : > { %2695 = dma.done.wait (%p4028_p0), [#allocation6], 32   ;;  %p4029_p5 = pmov %p4028_p0 }
  0x53   : > { %p4030_p6 = pmov %p4028_p0 }
  0x54   : > { %2697 = vsyncadd (%p4029_p5), [#allocation6], 4294967264 }
  0x55   : > { %2699 = dma.done.wait (%p4030_p6), [#allocation9], 16   ;;  %p4031_p12 = pmov %p4028_p0 }
  0x57   : > { %2701 = vsyncadd (%p4031_p12), [#allocation9], 4294967280 }
  0x58   : > { %297 = sfence }
  0x59   : > { %v1888_v0 = vld [vmem:[%s4010_s5 + $0x8] sm:$0xff]  ;;  %p324_p10 = scmp.lt.s32.totalorder %s2789_s28, 1  ;;  %v2726_v1 = vmov 0   ;;  %s2892_s23 = sld [smem:[#allocation8]]  ;;  %v1887_v2 = vld [vmem:[%s4010_s5] sm:$0xff]  ;;  %vm1909_vm0 = vcmask 130048  }
  0x5a   : > { %2535 = vset.pattern.permute.xlu0 %v2726_v1  ;;  %s2894_s9 = sld [smem:[#allocation8 + $0x1]]  ;;  %vm1999_vm5 = vcmask 64512   ;;  %vm2040_vm6 = vcmask 1040384   ;;  %vm2042_vm7 = vcmask 1041408   ;;  %vm2044_vm8 = vcmask 1042432   ;;  %p4033_p11 = scmp.ne.s32.totalorder %s4019_s11, 0 }
  0x5b   : > { %1896 = vperm.xlu0 %2535, %v1888_v0   ;;  %s325_s17 = scalar_select %p324_p10, %s2789_s28, 1  ;;  %vm2046_vm9 = vcmask 60416  }
  0x5c   : > { %s2900_s18 = sld [smem:[#allocation8 + $0x2]] }
  0x5d   : > { %s2453_s16 = smul.u32 48, %s325_s17  ;;  %s2902_s21 = sld [smem:[#allocation8 + $0x3]] }
  0x5e   : > { %s349_s22 = sld [smem:[#allocation2]] }
  0x5f   : > { %1891 = vperm.xlu0 %2535, %v1887_v2   ;;  %s4032_s0 = sld [smem:[#allocation15_spill]]  ;;  %v338_v23 = vstv %s2892_s23 }
  0x60   : > { %s2183_s13 = sld [smem:[#allocation2 + $0x20]]  ;;  %v341_v24 = vstv %s2894_s9 }
  0x61   : > { %s2184_s20 = sld [smem:[#allocation2 + $0x40]] }
  0x62   : > { %s2909_s14 = sld [smem:[#allocation5]]  ;;  %v344_v25 = vstv %s2900_s18 }
  0x63   : > { %s2917_s15 = sld [smem:[#allocation7]]  ;;  %v347_v26 = vstv %s2902_s21 }
  0x64   : > { %s2925_s17 = sld [smem:[#allocation7 + $0x1]]  ;;  %v350_v9 = vstv %s349_s22 }
  0x65   : > { %s2907_s8 = scalar_lea.vmem %s4032_s0, %s2453_s16  ;;  %s2933_s16 = sld [smem:[#allocation7 + $0x2]] }
  0x66   : > { %v2912_v3 = vld [vmem:[%s2907_s8] sm:$0xff]  ;;  %v2915_v4 = vld [vmem:[%s2907_s8 + $0x8] sm:$0xff]  ;;  %v2920_v5 = vld [vmem:[%s2907_s8 + $0x10] sm:$0xff]  ;;  %v354_v12 = vstv %s2183_s13  ;;  %s2937_s19 = sld [smem:[#allocation7 + $0x3]] }
  0x67   : > { %v2923_v6 = vld [vmem:[%s2907_s8 + $0x18] sm:$0xff]  ;;  %v2928_v7 = vld [vmem:[%s2907_s8 + $0x20] sm:$0xff]  ;;  %v2931_v8 = vld [vmem:[%s2907_s8 + $0x28] sm:$0xff]  ;;  %v351_v10 = vmul.f32 %v350_v9, %v2912_v3  ;;  %v352_v11 = vmul.f32 %v350_v9, %v2915_v4  ;;  %v355_v13 = vmul.f32 %v2920_v5, %v354_v12  ;;  %v360_v15 = vstv %s2184_s20  ;;  %s2941_s29 = sld [smem:[#allocation2 + $0x1]] }
  0x68   : > { %v356_v14 = vmul.f32 %v2923_v6, %v354_v12  ;;  %v361_v16 = vmul.f32 %v2928_v7, %v360_v15  ;;  %v362_v17 = vmul.f32 %v2931_v8, %v360_v15  ;;  %s2189_s22 = sld [smem:[#allocation2 + $0x21]]  ;;  %v366_v20 = vstv %s2909_s14 }
  0x69   : > { %v357_v18 = vadd.f32 %v355_v13, %v351_v10  ;;  %s2945_s13 = sld [smem:[#allocation2 + $0x41]]  ;;  %v372_v30 = vstv %s2917_s15 }
  0x6a   : > { %v358_v19 = vadd.f32 %v356_v14, %v352_v11  ;;  %s2948_s0 = sld [smem:[#allocation5 + $0x1]]  ;;  %v378_v31 = vstv %s2925_s17 }
  0x6b   : > { %v363_v21 = vadd.f32 %v361_v16, %v357_v18  ;;  %s2950_s20 = sld [smem:[#allocation7 + $0x4]]  ;;  %v384_v32 = vstv %s2933_s16 }
  0x6c   : > { %v364_v22 = vadd.f32 %v362_v17, %v358_v19  ;;  %s2955_s1 = sld [smem:[#allocation7 + $0x5]]  ;;  %v390_v36 = vstv %s2937_s19 }
  0x6d   : > { %v367_v27 = vadd.f32 %v366_v20, %v363_v21  ;;  %v396_v29 = vstv %s2941_s29  ;;  %s2959_s2 = sld [smem:[#allocation7 + $0x6]] }
  0x6e   : > { %v368_v28 = vadd.f32 %v366_v20, %v364_v22  ;;  %v400_v33 = vstv %s2189_s22  ;;  %s2964_s14 = sld [smem:[#allocation7 + $0x7]]  ;;  %v397_v37 = vmul.f32 %v396_v29, %v2912_v3  ;;  %v398_v38 = vmul.f32 %v396_v29, %v2915_v4 }
  0x6f   : > { %v369_v34 = vmax.f32 %v367_v27, 0.0  ;;  %s2968_s23 = sld [smem:[#allocation2 + $0x2]]  ;;  %v401_v39 = vmul.f32 %v2920_v5, %v400_v33  ;;  %v402_v40 = vmul.f32 %v2923_v6, %v400_v33  ;;  %v406_v41 = vstv %s2945_s13 }
  0x70   : > { %v370_v35 = vmax.f32 %v368_v28, 0.0  ;;  %s2974_s9 = sld [smem:[#allocation2 + $0x22]]  ;;  %v412_v53 = vstv %s2948_s0  ;;  %v407_v60 = vmul.f32 %v2928_v7, %v406_v41  ;;  %v408_v61 = vmul.f32 %v2931_v8, %v406_v41 }
  0x71   : > { %v373_v42 = vmul.f32 %v372_v30, %v369_v34  ;;  %v379_v44 = vmul.f32 %v378_v31, %v369_v34  ;;  %s2976_s18 = sld [smem:[#allocation2 + $0x42]]  ;;  %v385_v46 = vmul.f32 %v384_v32, %v369_v34  ;;  %v391_v48 = vmul.f32 %v390_v36, %v369_v34 }
  0x72   : > { %v374_v43 = vmul.f32 %v372_v30, %v370_v35  ;;  %v380_v45 = vmul.f32 %v378_v31, %v370_v35  ;;  %v386_v47 = vmul.f32 %v384_v32, %v370_v35  ;;  %v392_v49 = vmul.f32 %v390_v36, %v370_v35  ;;  %s2978_s21 = sld [smem:[#allocation5 + $0x2]] }
  0x73   : > { %v375_v50 = vadd.f32 %v373_v42, %v338_v23  ;;  %v381_v52 = vadd.f32 %v379_v44, %v341_v24  ;;  %s2983_s15 = sld [smem:[#allocation7 + $0x8]]  ;;  %v387_v55 = vadd.f32 %v385_v46, %v344_v25  ;;  %v393_v57 = vadd.f32 %v391_v48, %v347_v26 }
  0x74   : > { %v2980_v51 = vadd.f32 %v374_v43, %v338_v23  ;;  %v382_v54 = vadd.f32 %v380_v45, %v341_v24  ;;  %v388_v56 = vadd.f32 %v386_v47, %v344_v25  ;;  %s2985_s17 = sld [smem:[#allocation7 + $0x9]]  ;;  %v403_v58 = vadd.f32 %v401_v39, %v397_v37 }
  0x75   : > { %v404_v59 = vadd.f32 %v402_v40, %v398_v38  ;;  %s2989_s16 = sld [smem:[#allocation7 + $0xa]]  ;;  %v394_v62 = vadd.f32 %v392_v49, %v347_v26  ;;  %v418_v63 = vstv %s2950_s20  ;;  %v424_v0 = vstv %s2955_s1 }
  0x76   : > { %v430_v1 = vstv %s2959_s2  ;;  %s2994_s0 = sld [smem:[#allocation7 + $0xb]]  ;;  %v409_v2 = vadd.f32 %v407_v60, %v403_v58  ;;  %v442_v10 = vstv %s2968_s23  ;;  %v446_v11 = vstv %s2974_s9 }
  0x77   : > { %v410_v9 = vadd.f32 %v408_v61, %v404_v59  ;;  %v443_v12 = vmul.f32 %v442_v10, %v2912_v3  ;;  %v444_v13 = vmul.f32 %v442_v10, %v2915_v4  ;;  %v447_v14 = vmul.f32 %v2920_v5, %v446_v11  ;;  %s3002_s19 = sld [smem:[#allocation2 + $0x3]] }
  0x78   : > { %v448_v15 = vmul.f32 %v2923_v6, %v446_v11  ;;  %v413_v16 = vadd.f32 %v412_v53, %v409_v2  ;;  %v436_v18 = vstv %s2964_s14  ;;  %v452_v19 = vstv %s2976_s18  ;;  %s3006_s1 = sld [smem:[#allocation2 + $0x23]] }
  0x79   : > { %v414_v17 = vadd.f32 %v412_v53, %v410_v9  ;;  %v449_v20 = vadd.f32 %v447_v14, %v443_v12  ;;  %v453_v22 = vmul.f32 %v2928_v7, %v452_v19  ;;  %v454_v23 = vmul.f32 %v2931_v8, %v452_v19  ;;  %s3012_s2 = sld [smem:[#allocation2 + $0x43]] }
  0x7a   : > { %v450_v21 = vadd.f32 %v448_v15, %v444_v13  ;;  %v415_v24 = vmax.f32 %v413_v16, 0.0  ;;  %v458_v26 = vstv %s2978_s21  ;;  %v464_v27 = vstv %s2983_s15  ;;  %s3017_s29 = sld [smem:[#allocation5 + $0x3]] }
  0x7b   : > { %v416_v25 = vmax.f32 %v414_v17, 0.0  ;;  %v455_v28 = vadd.f32 %v453_v22, %v449_v20  ;;  %v470_v30 = vstv %s2985_s17  ;;  %v476_v31 = vstv %s2989_s16  ;;  %s3019_s22 = sld [smem:[#allocation7 + $0xc]] }
  0x7c   : > { %v456_v29 = vadd.f32 %v454_v23, %v450_v21  ;;  %v419_v32 = vmul.f32 %v418_v63, %v415_v24  ;;  %v425_v33 = vmul.f32 %v424_v0, %v415_v24  ;;  %v482_v35 = vstv %s2994_s0  ;;  %s3021_s13 = sld [smem:[#allocation7 + $0xd]] }
  0x7d   : > { %v426_v34 = vmul.f32 %v424_v0, %v416_v25  ;;  %v431_v36 = vmul.f32 %v430_v1, %v415_v24  ;;  %v432_v37 = vmul.f32 %v430_v1, %v416_v25  ;;  %v437_v38 = vmul.f32 %v436_v18, %v415_v24  ;;  %s3023_s20 = sld [smem:[#allocation7 + $0xe]] }
  0x7e   : > { %v438_v39 = vmul.f32 %v436_v18, %v416_v25  ;;  %v420_v40 = vmul.f32 %v418_v63, %v416_v25  ;;  %v421_v41 = vadd.f32 %v419_v32, %v375_v50  ;;  %v427_v42 = vadd.f32 %v425_v33, %v381_v52  ;;  %s3027_s14 = sld [smem:[#allocation2 + $0x4]] }
  0x7f   : > { %v428_v43 = vadd.f32 %v426_v34, %v382_v54  ;;  %v433_v44 = vadd.f32 %v431_v36, %v387_v55  ;;  %v434_v45 = vadd.f32 %v432_v37, %v388_v56  ;;  %v439_v46 = vadd.f32 %v437_v38, %v393_v57  ;;  %s3033_s23 = sld [smem:[#allocation2 + $0x24]] }
  0x80   : > { %v440_v47 = vadd.f32 %v438_v39, %v394_v62  ;;  %v459_v48 = vadd.f32 %v458_v26, %v455_v28  ;;  %v460_v49 = vadd.f32 %v458_v26, %v456_v29  ;;  %v488_v53 = vstv %s3002_s19  ;;  %s3037_s9 = sld [smem:[#allocation7 + $0xf]] }
  0x81   : > { %v492_v58 = vstv %s3006_s1  ;;  %v489_v59 = vmul.f32 %v488_v53, %v2912_v3  ;;  %v490_v50 = vmul.f32 %v488_v53, %v2915_v4  ;;  %v422_v55 = vadd.f32 %v420_v40, %v2980_v51  ;;  %s3041_s18 = sld [smem:[#allocation2 + $0x44]] }
  0x82   : > { %v493_v52 = vmul.f32 %v2920_v5, %v492_v58  ;;  %v494_v54 = vmul.f32 %v2923_v6, %v492_v58  ;;  %v461_v56 = vmax.f32 %v459_v48, 0.0  ;;  %v462_v57 = vmax.f32 %v460_v49, 0.0  ;;  %s3043_s21 = sld [smem:[#allocation5 + $0x4]] }
  0x83   : > { %v498_v60 = vstv %s3012_s2  ;;  %s3045_s15 = sld [smem:[#allocation7 + $0x10]]  ;;  %v504_v17 = vstv %s3017_s29  ;;  %v510_v25 = vstv %s3019_s22  ;;  %v516_v26 = vstv %s3021_s13 }
  0x84   : > { %v495_v61 = vadd.f32 %v493_v52, %v489_v59  ;;  %v496_v62 = vadd.f32 %v494_v54, %v490_v50  ;;  %v499_v63 = vmul.f32 %v2928_v7, %v498_v60  ;;  %v500_v0 = vmul.f32 %v2931_v8, %v498_v60  ;;  %s3048_s17 = sld [smem:[#allocation7 + $0x11]] }
  0x85   : > { %v465_v1 = vmul.f32 %v464_v27, %v461_v56  ;;  %v466_v2 = vmul.f32 %v464_v27, %v462_v57  ;;  %v471_v9 = vmul.f32 %v470_v30, %v461_v56  ;;  %v472_v10 = vmul.f32 %v470_v30, %v462_v57  ;;  %s3050_s16 = sld [smem:[#allocation7 + $0x12]] }
  0x86   : > { %v477_v51 = vmul.f32 %v476_v31, %v461_v56  ;;  %v478_v11 = vmul.f32 %v476_v31, %v462_v57  ;;  %v483_v12 = vmul.f32 %v482_v35, %v461_v56  ;;  %v484_v13 = vmul.f32 %v482_v35, %v462_v57  ;;  %s3053_s0 = sld [smem:[#allocation7 + $0x13]] }
  0x87   : > { %v467_v14 = vadd.f32 %v465_v1, %v421_v41  ;;  %v473_v15 = vadd.f32 %v471_v9, %v427_v42  ;;  %v474_v16 = vadd.f32 %v472_v10, %v428_v43  ;;  %v468_v22 = vadd.f32 %v466_v2, %v422_v55  ;;  %s3059_s19 = sld [smem:[#allocation2 + $0x5]] }
  0x88   : > { %v479_v18 = vadd.f32 %v477_v51, %v433_v44  ;;  %v480_v19 = vadd.f32 %v478_v11, %v434_v45  ;;  %v485_v20 = vadd.f32 %v483_v12, %v439_v46  ;;  %v486_v21 = vadd.f32 %v484_v13, %v440_v47  ;;  %s3063_s1 = sld [smem:[#allocation2 + $0x25]] }
  0x89   : > { %v501_v23 = vadd.f32 %v499_v63, %v495_v61  ;;  %v502_v24 = vadd.f32 %v500_v0, %v496_v62  ;;  %v522_v27 = vstv %s3023_s20  ;;  %v534_v28 = vstv %s3027_s14  ;;  %s3069_s2 = sld [smem:[#allocation2 + $0x45]] }
  0x8a   : > { %v538_v29 = vstv %s3033_s23  ;;  %v535_v32 = vmul.f32 %v534_v28, %v2912_v3  ;;  %v536_v33 = vmul.f32 %v534_v28, %v2915_v4  ;;  %v528_v34 = vstv %s3037_s9  ;;  %s3073_s29 = sld [smem:[#allocation5 + $0x5]] }
  0x8b   : > { %v505_v30 = vadd.f32 %v504_v17, %v501_v23  ;;  %v506_v31 = vadd.f32 %v504_v17, %v502_v24  ;;  %v539_v35 = vmul.f32 %v2920_v5, %v538_v29  ;;  %v540_v36 = vmul.f32 %v2923_v6, %v538_v29  ;;  %s3077_s22 = sld [smem:[#allocation7 + $0x14]] }
  0x8c   : > { %v544_v37 = vstv %s3041_s18  ;;  %v550_v41 = vstv %s3043_s21  ;;  %v556_v45 = vstv %s3045_s15  ;;  %s3079_s13 = sld [smem:[#allocation7 + $0x15]]  ;;  %v562_v56 = vstv %s3048_s17 }
  0x8d   : > { %v507_v38 = vmax.f32 %v505_v30, 0.0  ;;  %v508_v39 = vmax.f32 %v506_v31, 0.0  ;;  %v545_v40 = vmul.f32 %v2928_v7, %v544_v37  ;;  %v541_v42 = vadd.f32 %v539_v35, %v535_v32  ;;  %s3081_s20 = sld [smem:[#allocation7 + $0x16]] }
  0x8e   : > { %v542_v43 = vadd.f32 %v540_v36, %v536_v33  ;;  %v546_v44 = vmul.f32 %v2931_v8, %v544_v37  ;;  %s3084_s14 = sld [smem:[#allocation7 + $0x17]]  ;;  %v568_v2 = vstv %s3050_s16  ;;  %v574_v9 = vstv %s3053_s0 }
  0x8f   : > { %v511_v46 = vmul.f32 %v510_v25, %v507_v38  ;;  %v512_v47 = vmul.f32 %v510_v25, %v508_v39  ;;  %v517_v48 = vmul.f32 %v516_v26, %v507_v38  ;;  %v518_v49 = vmul.f32 %v516_v26, %v508_v39  ;;  %s3091_s23 = sld [smem:[#allocation2 + $0x6]] }
  0x90   : > { %v523_v53 = vmul.f32 %v522_v27, %v507_v38  ;;  %v524_v58 = vmul.f32 %v522_v27, %v508_v39  ;;  %v529_v59 = vmul.f32 %v528_v34, %v507_v38  ;;  %v530_v50 = vmul.f32 %v528_v34, %v508_v39  ;;  %s3095_s9 = sld [smem:[#allocation2 + $0x26]] }
  0x91   : > { %v513_v52 = vadd.f32 %v511_v46, %v467_v14  ;;  %v519_v54 = vadd.f32 %v517_v48, %v473_v15  ;;  %v520_v55 = vadd.f32 %v518_v49, %v474_v16  ;;  %v514_v63 = vadd.f32 %v512_v47, %v468_v22  ;;  %s3101_s18 = sld [smem:[#allocation2 + $0x46]] }
  0x92   : > { %v525_v57 = vadd.f32 %v523_v53, %v479_v18  ;;  %v526_v60 = vadd.f32 %v524_v58, %v480_v19  ;;  %v531_v61 = vadd.f32 %v529_v59, %v485_v20  ;;  %v532_v62 = vadd.f32 %v530_v50, %v486_v21  ;;  %s3105_s21 = sld [smem:[#allocation5 + $0x6]] }
  0x93   : > { %v547_v0 = vadd.f32 %v545_v40, %v541_v42  ;;  %v548_v1 = vadd.f32 %v546_v44, %v542_v43  ;;  %v580_v10 = vstv %s3059_s19  ;;  %v584_v51 = vstv %s3063_s1  ;;  %s3109_s15 = sld [smem:[#allocation7 + $0x18]] }
  0x94   : > { %v590_v11 = vstv %s3069_s2  ;;  %v581_v14 = vmul.f32 %v580_v10, %v2912_v3  ;;  %v582_v15 = vmul.f32 %v580_v10, %v2915_v4  ;;  %v585_v16 = vmul.f32 %v2920_v5, %v584_v51  ;;  %s3112_s17 = sld [smem:[#allocation7 + $0x19]] }
  0x95   : > { %v551_v12 = vadd.f32 %v550_v41, %v547_v0  ;;  %v552_v13 = vadd.f32 %v550_v41, %v548_v1  ;;  %v586_v17 = vmul.f32 %v2923_v6, %v584_v51  ;;  %v591_v18 = vmul.f32 %v2928_v7, %v590_v11  ;;  %s3114_s16 = sld [smem:[#allocation7 + $0x1a]] }
  0x96   : > { %v596_v19 = vstv %s3073_s29  ;;  %v592_v22 = vmul.f32 %v2931_v8, %v590_v11  ;;  %v602_v23 = vstv %s3077_s22  ;;  %v587_v24 = vadd.f32 %v585_v16, %v581_v14  ;;  %s3116_s0 = sld [smem:[#allocation7 + $0x1b]] }
  0x97   : > { %v553_v20 = vmax.f32 %v551_v12, 0.0  ;;  %v554_v21 = vmax.f32 %v552_v13, 0.0  ;;  %v588_v25 = vadd.f32 %v586_v17, %v582_v15  ;;  %v608_v26 = vstv %s3079_s13  ;;  %s3124_s19 = sld [smem:[#allocation2 + $0x7]] }
  0x98   : > { %v614_v27 = vstv %s3081_s20  ;;  %v620_v31 = vstv %s3084_s14  ;;  %v593_v44 = vadd.f32 %v591_v18, %v587_v24  ;;  %v626_v47 = vstv %s3091_s23  ;;  %s3127_s1 = sld [smem:[#allocation2 + $0x27]] }
  0x99   : > { %v557_v28 = vmul.f32 %v556_v45, %v553_v20  ;;  %v563_v29 = vmul.f32 %v562_v56, %v553_v20  ;;  %v564_v30 = vmul.f32 %v562_v56, %v554_v21  ;;  %v569_v32 = vmul.f32 %v568_v2, %v553_v20  ;;  %s3133_s2 = sld [smem:[#allocation2 + $0x47]] }
  0x9a   : > { %v570_v33 = vmul.f32 %v568_v2, %v554_v21  ;;  %v575_v34 = vmul.f32 %v574_v9, %v553_v20  ;;  %v576_v35 = vmul.f32 %v574_v9, %v554_v21  ;;  %v558_v36 = vmul.f32 %v556_v45, %v554_v21  ;;  %s3140_s29 = sld [smem:[#allocation5 + $0x7]] }
  0x9b   : > { %v559_v37 = vadd.f32 %v557_v28, %v513_v52  ;;  %v565_v38 = vadd.f32 %v563_v29, %v519_v54  ;;  %v566_v39 = vadd.f32 %v564_v30, %v520_v55  ;;  %v571_v40 = vadd.f32 %v569_v32, %v525_v57  ;;  %s3142_s13 = sld [smem:[#allocation7 + $0x1c]] }
  0x9c   : > { %v572_v41 = vadd.f32 %v570_v33, %v526_v60  ;;  %v577_v42 = vadd.f32 %v575_v34, %v531_v61  ;;  %v578_v43 = vadd.f32 %v576_v35, %v532_v62  ;;  %v594_v46 = vadd.f32 %v592_v22, %v588_v25  ;;  %s3146_s20 = sld [smem:[#allocation7 + $0x1d]] }
  0x9d   : > { %v630_v48 = vstv %s3095_s9  ;;  %v627_v49 = vmul.f32 %v626_v47, %v2912_v3  ;;  %v628_v53 = vmul.f32 %v626_v47, %v2915_v4  ;;  %v560_v59 = vadd.f32 %v558_v36, %v514_v63  ;;  %s3148_s14 = sld [smem:[#allocation7 + $0x1e]] }
  0x9e   : > { %v631_v45 = vmul.f32 %v2920_v5, %v630_v48  ;;  %v632_v58 = vmul.f32 %v2923_v6, %v630_v48  ;;  %v597_v50 = vadd.f32 %v596_v19, %v593_v44  ;;  %v598_v52 = vadd.f32 %v596_v19, %v594_v46  ;;  %s3152_s23 = sld [smem:[#allocation2 + $0x8]] }
  0x9f   : > { %v636_v54 = vstv %s3101_s18  ;;  %v642_v0 = vstv %s3105_s21  ;;  %v648_v1 = vstv %s3109_s15  ;;  %v654_v9 = vstv %s3112_s17  ;;  %s3158_s22 = sld [smem:[#allocation2 + $0x28]] }
  0xa0   : > { %v633_v55 = vadd.f32 %v631_v45, %v627_v49  ;;  %v634_v56 = vadd.f32 %v632_v58, %v628_v53  ;;  %v637_v57 = vmul.f32 %v2928_v7, %v636_v54  ;;  %v638_v60 = vmul.f32 %v2931_v8, %v636_v54  ;;  %s3161_s9 = sld [smem:[#allocation7 + $0x1f]] }
  0xa1   : > { %v599_v61 = vmax.f32 %v597_v50, 0.0  ;;  %v600_v62 = vmax.f32 %v598_v52, 0.0  ;;  %v660_v10 = vstv %s3114_s16  ;;  %v666_v13 = vstv %s3116_s0  ;;  %s3165_s18 = sld [smem:[#allocation2 + $0x48]] }
  0xa2   : > { %v639_v63 = vadd.f32 %v637_v57, %v633_v55  ;;  %v640_v2 = vadd.f32 %v638_v60, %v634_v56  ;;  %v672_v29 = vstv %s3124_s19  ;;  %v676_v30 = vstv %s3127_s1  ;;  %s3167_s21 = sld [smem:[#allocation5 + $0x8]] }
  0xa3   : > { %v603_v51 = vmul.f32 %v602_v23, %v599_v61  ;;  %v609_v11 = vmul.f32 %v608_v26, %v599_v61  ;;  %v610_v12 = vmul.f32 %v608_v26, %v600_v62  ;;  %v615_v14 = vmul.f32 %v614_v27, %v599_v61  ;;  %s3169_s15 = sld [smem:[#allocation7 + $0x20]] }
  0xa4   : > { %v616_v15 = vmul.f32 %v614_v27, %v600_v62  ;;  %v621_v16 = vmul.f32 %v620_v31, %v599_v61  ;;  %v622_v17 = vmul.f32 %v620_v31, %v600_v62  ;;  %v604_v18 = vmul.f32 %v602_v23, %v600_v62  ;;  %s3172_s17 = sld [smem:[#allocation7 + $0x21]] }
  0xa5   : > { %v605_v19 = vadd.f32 %v603_v51, %v559_v37  ;;  %v611_v20 = vadd.f32 %v609_v11, %v565_v38  ;;  %v612_v21 = vadd.f32 %v610_v12, %v566_v39  ;;  %v617_v22 = vadd.f32 %v615_v14, %v571_v40  ;;  %s3174_s16 = sld [smem:[#allocation7 + $0x22]] }
  0xa6   : > { %v618_v24 = vadd.f32 %v616_v15, %v572_v41  ;;  %v623_v25 = vadd.f32 %v621_v16, %v577_v42  ;;  %v624_v26 = vadd.f32 %v622_v17, %v578_v43  ;;  %v643_v27 = vadd.f32 %v642_v0, %v639_v63  ;;  %s3177_s0 = sld [smem:[#allocation7 + $0x23]] }
  0xa7   : > { %v644_v28 = vadd.f32 %v642_v0, %v640_v2  ;;  %v673_v23 = vmul.f32 %v672_v29, %v2912_v3  ;;  %v674_v31 = vmul.f32 %v672_v29, %v2915_v4  ;;  %v677_v32 = vmul.f32 %v2920_v5, %v676_v30  ;;  %s3183_s19 = sld [smem:[#allocation2 + $0x9]] }
  0xa8   : > { %v678_v33 = vmul.f32 %v2923_v6, %v676_v30  ;;  %v606_v34 = vadd.f32 %v604_v18, %v560_v59  ;;  %v645_v35 = vmax.f32 %v643_v27, 0.0  ;;  %v682_v37 = vstv %s3133_s2  ;;  %s3187_s1 = sld [smem:[#allocation2 + $0x29]] }
  0xa9   : > { %v646_v36 = vmax.f32 %v644_v28, 0.0  ;;  %v679_v38 = vadd.f32 %v677_v32, %v673_v23  ;;  %v683_v40 = vmul.f32 %v2928_v7, %v682_v37  ;;  %v684_v41 = vmul.f32 %v2931_v8, %v682_v37  ;;  %s3193_s2 = sld [smem:[#allocation2 + $0x49]] }
  0xaa   : > { %v680_v39 = vadd.f32 %v678_v33, %v674_v31  ;;  %v649_v42 = vmul.f32 %v648_v1, %v645_v35  ;;  %v655_v44 = vmul.f32 %v654_v9, %v645_v35  ;;  %v661_v47 = vmul.f32 %v660_v10, %v645_v35 }
  0xab   : > { %v650_v43 = vmul.f32 %v648_v1, %v646_v36  ;;  %v656_v46 = vmul.f32 %v654_v9, %v646_v36  ;;  %v662_v48 = vmul.f32 %v660_v10, %v646_v36  ;;  %v667_v49 = vmul.f32 %v666_v13, %v645_v35 }
  0xac   : > { %v668_v53 = vmul.f32 %v666_v13, %v646_v36  ;;  %v651_v45 = vadd.f32 %v649_v42, %v605_v19  ;;  %v657_v58 = vadd.f32 %v655_v44, %v611_v20  ;;  %v688_v50 = vstv %s3140_s29  ;;  %s3197_s29 = sld [smem:[#allocation5 + $0x9]] }
  0xad   : > { %v658_v59 = vadd.f32 %v656_v46, %v612_v21  ;;  %v663_v52 = vadd.f32 %v661_v47, %v617_v22  ;;  %v664_v54 = vadd.f32 %v662_v48, %v618_v24  ;;  %v669_v55 = vadd.f32 %v667_v49, %v623_v25 }
  0xae   : > { %v670_v56 = vadd.f32 %v668_v53, %v624_v26  ;;  %v652_v57 = vadd.f32 %v650_v43, %v606_v34  ;;  %v685_v60 = vadd.f32 %v683_v40, %v679_v38  ;;  %v686_v61 = vadd.f32 %v684_v41, %v680_v39 }
  0xaf   : > { %v694_v62 = vstv %s3142_s13  ;;  %v700_v0 = vstv %s3146_s20  ;;  %v706_v1 = vstv %s3148_s14  ;;  %v718_v63 = vstv %s3152_s23  ;;  %s3201_s13 = sld [smem:[#allocation7 + $0x24]] }
  0xb0   : > { %v722_v2 = vstv %s3158_s22  ;;  %v689_v9 = vadd.f32 %v688_v50, %v685_v60  ;;  %v690_v10 = vadd.f32 %v688_v50, %v686_v61  ;;  %v719_v51 = vmul.f32 %v718_v63, %v2912_v3  ;;  %s3203_s20 = sld [smem:[#allocation7 + $0x25]] }
  0xb1   : > { %v720_v11 = vmul.f32 %v718_v63, %v2915_v4  ;;  %v712_v12 = vstv %s3161_s9  ;;  %v723_v13 = vmul.f32 %v2920_v5, %v722_v2  ;;  %v724_v14 = vmul.f32 %v2923_v6, %v722_v2  ;;  %s3205_s14 = sld [smem:[#allocation7 + $0x26]] }
  0xb2   : > { %v728_v15 = vstv %s3165_s18  ;;  %v691_v16 = vmax.f32 %v689_v9, 0.0  ;;  %v692_v17 = vmax.f32 %v690_v10, 0.0  ;;  %v734_v19 = vstv %s3167_s21  ;;  %s3208_s23 = sld [smem:[#allocation7 + $0x27]] }
  0xb3   : > { %v729_v18 = vmul.f32 %v2928_v7, %v728_v15  ;;  %v725_v20 = vadd.f32 %v723_v13, %v719_v51  ;;  %v726_v21 = vadd.f32 %v724_v14, %v720_v11  ;;  %v730_v22 = vmul.f32 %v2931_v8, %v728_v15  ;;  %s3215_s22 = sld [smem:[#allocation2 + $0xa]] }
  0xb4   : > { %v740_v24 = vstv %s3169_s15  ;;  %v695_v25 = vmul.f32 %v694_v62, %v691_v16  ;;  %v696_v26 = vmul.f32 %v694_v62, %v692_v17  ;;  %v701_v27 = vmul.f32 %v700_v0, %v691_v16  ;;  %s3219_s9 = sld [smem:[#allocation2 + $0x2a]] }
  0xb5   : > { %v702_v28 = vmul.f32 %v700_v0, %v692_v17  ;;  %v707_v29 = vmul.f32 %v706_v1, %v691_v16  ;;  %v708_v30 = vmul.f32 %v706_v1, %v692_v17  ;;  %v713_v23 = vmul.f32 %v712_v12, %v691_v16  ;;  %s3225_s18 = sld [smem:[#allocation2 + $0x4a]] }
  0xb6   : > { %v714_v31 = vmul.f32 %v712_v12, %v692_v17  ;;  %v697_v32 = vadd.f32 %v695_v25, %v651_v45  ;;  %v703_v33 = vadd.f32 %v701_v27, %v657_v58  ;;  %v746_v35 = vstv %s3172_s17  ;;  %s3229_s21 = sld [smem:[#allocation5 + $0xa]] }
  0xb7   : > { %v704_v34 = vadd.f32 %v702_v28, %v658_v59  ;;  %v709_v36 = vadd.f32 %v707_v29, %v663_v52  ;;  %v710_v37 = vadd.f32 %v708_v30, %v664_v54  ;;  %v715_v38 = vadd.f32 %v713_v23, %v669_v55  ;;  %s3233_s15 = sld [smem:[#allocation7 + $0x28]] }
  0xb8   : > { %v716_v39 = vadd.f32 %v714_v31, %v670_v56  ;;  %v698_v40 = vadd.f32 %v696_v26, %v652_v57  ;;  %v731_v41 = vadd.f32 %v729_v18, %v725_v20  ;;  %v732_v42 = vadd.f32 %v730_v22, %v726_v21  ;;  %s3236_s17 = sld [smem:[#allocation7 + $0x29]] }
  0xb9   : > { %v752_v43 = vstv %s3174_s16  ;;  %v758_v44 = vstv %s3177_s0  ;;  %v764_v46 = vstv %s3183_s19  ;;  %v768_v47 = vstv %s3187_s1  ;;  %s3238_s16 = sld [smem:[#allocation7 + $0x2a]] }
  0xba   : > { %v774_v48 = vstv %s3193_s2  ;;  %v735_v49 = vadd.f32 %v734_v19, %v731_v41  ;;  %v736_v53 = vadd.f32 %v734_v19, %v732_v42  ;;  %v765_v45 = vmul.f32 %v764_v46, %v2912_v3  ;;  %s3240_s0 = sld [smem:[#allocation7 + $0x2b]] }
  0xbb   : > { %v766_v58 = vmul.f32 %v764_v46, %v2915_v4  ;;  %v769_v59 = vmul.f32 %v2920_v5, %v768_v47  ;;  %v770_v50 = vmul.f32 %v2923_v6, %v768_v47  ;;  %v775_v52 = vmul.f32 %v2928_v7, %v774_v48  ;;  %s3248_s19 = sld [smem:[#allocation2 + $0xb]] }
  0xbc   : > { %v780_v54 = vstv %s3197_s29  ;;  %v737_v55 = vmax.f32 %v735_v49, 0.0  ;;  %v738_v56 = vmax.f32 %v736_v53, 0.0  ;;  %v776_v57 = vmul.f32 %v2931_v8, %v774_v48  ;;  %s3251_s1 = sld [smem:[#allocation2 + $0x2b]] }
  0xbd   : > { %v786_v60 = vstv %s3201_s13  ;;  %v771_v61 = vadd.f32 %v769_v59, %v765_v45  ;;  %v772_v62 = vadd.f32 %v770_v50, %v766_v58  ;;  %v792_v0 = vstv %s3203_s20  ;;  %s3257_s2 = sld [smem:[#allocation2 + $0x4b]] }
  0xbe   : > { %v798_v1 = vstv %s3205_s14  ;;  %v741_v63 = vmul.f32 %v740_v24, %v737_v55  ;;  %v747_v2 = vmul.f32 %v746_v35, %v737_v55  ;;  %v748_v9 = vmul.f32 %v746_v35, %v738_v56  ;;  %s3264_s29 = sld [smem:[#allocation5 + $0xb]] }
  0xbf   : > { %v804_v10 = vstv %s3208_s23  ;;  %v753_v51 = vmul.f32 %v752_v43, %v737_v55  ;;  %v754_v11 = vmul.f32 %v752_v43, %v738_v56  ;;  %v759_v12 = vmul.f32 %v758_v44, %v737_v55  ;;  %s3266_s20 = sld [smem:[#allocation7 + $0x2c]] }
  0xc0   : > { %v760_v13 = vmul.f32 %v758_v44, %v738_v56  ;;  %v742_v14 = vmul.f32 %v740_v24, %v738_v56  ;;  %v743_v15 = vadd.f32 %v741_v63, %v697_v32  ;;  %v749_v16 = vadd.f32 %v747_v2, %v703_v33  ;;  %s3270_s14 = sld [smem:[#allocation7 + $0x2d]] }
  0xc1   : > { %v750_v17 = vadd.f32 %v748_v9, %v704_v34  ;;  %v755_v18 = vadd.f32 %v753_v51, %v709_v36  ;;  %v756_v19 = vadd.f32 %v754_v11, %v710_v37  ;;  %v761_v20 = vadd.f32 %v759_v12, %v715_v38  ;;  %s3272_s23 = sld [smem:[#allocation7 + $0x2e]] }
  0xc2   : > { %v762_v21 = vadd.f32 %v760_v13, %v716_v39  ;;  %v777_v22 = vadd.f32 %v775_v52, %v771_v61  ;;  %v778_v25 = vadd.f32 %v776_v57, %v772_v62  ;;  %v810_v26 = vstv %s3215_s22  ;;  %s3276_s22 = sld [smem:[#allocation2 + $0xc]] }
  0xc3   : > { %v814_v27 = vstv %s3219_s9  ;;  %v811_v28 = vmul.f32 %v810_v26, %v2912_v3  ;;  %v812_v29 = vmul.f32 %v810_v26, %v2915_v4  ;;  %v744_v23 = vadd.f32 %v742_v14, %v698_v40  ;;  %s3282_s13 = sld [smem:[#allocation2 + $0x2c]] }
  0xc4   : > { %v815_v24 = vmul.f32 %v2920_v5, %v814_v27  ;;  %v816_v30 = vmul.f32 %v2923_v6, %v814_v27  ;;  %v781_v31 = vadd.f32 %v780_v54, %v777_v22  ;;  %v782_v32 = vadd.f32 %v780_v54, %v778_v25  ;;  %s3285_s9 = sld [smem:[#allocation7 + $0x2f]] }
  0xc5   : > { %v820_v33 = vstv %s3225_s18  ;;  %v826_v41 = vstv %s3229_s21  ;;  %v832_v42 = vstv %s3233_s15  ;;  %v838_v44 = vstv %s3236_s17  ;;  %s3289_s18 = sld [smem:[#allocation2 + $0x4c]] }
  0xc6   : > { %v817_v34 = vadd.f32 %v815_v24, %v811_v28  ;;  %v818_v35 = vadd.f32 %v816_v30, %v812_v29  ;;  %v821_v36 = vmul.f32 %v2928_v7, %v820_v33  ;;  %v822_v37 = vmul.f32 %v2931_v8, %v820_v33  ;;  %s3291_s21 = sld [smem:[#allocation5 + $0xc]] }
  0xc7   : > { %v783_v38 = vmax.f32 %v781_v31, 0.0  ;;  %v784_v39 = vmax.f32 %v782_v32, 0.0  ;;  %v844_v46 = vstv %s3238_s16  ;;  %v850_v53 = vstv %s3240_s0  ;;  %s3293_s15 = sld [smem:[#allocation7 + $0x30]] }
  0xc8   : > { %v823_v40 = vadd.f32 %v821_v36, %v817_v34  ;;  %v824_v43 = vadd.f32 %v822_v37, %v818_v35  ;;  %v856_v2 = vstv %s3248_s19  ;;  %v860_v9 = vstv %s3251_s1  ;;  %s3296_s17 = sld [smem:[#allocation7 + $0x31]] }
  0xc9   : > { %v787_v47 = vmul.f32 %v786_v60, %v783_v38  ;;  %v793_v48 = vmul.f32 %v792_v0, %v783_v38  ;;  %v794_v49 = vmul.f32 %v792_v0, %v784_v39  ;;  %v799_v45 = vmul.f32 %v798_v1, %v783_v38  ;;  %s3298_s16 = sld [smem:[#allocation7 + $0x32]] }
  0xca   : > { %v800_v58 = vmul.f32 %v798_v1, %v784_v39  ;;  %v805_v59 = vmul.f32 %v804_v10, %v783_v38  ;;  %v806_v50 = vmul.f32 %v804_v10, %v784_v39  ;;  %v788_v52 = vmul.f32 %v786_v60, %v784_v39  ;;  %s3301_s0 = sld [smem:[#allocation7 + $0x33]] }
  0xcb   : > { %v789_v54 = vadd.f32 %v787_v47, %v743_v15  ;;  %v795_v55 = vadd.f32 %v793_v48, %v749_v16  ;;  %v796_v56 = vadd.f32 %v794_v49, %v750_v17  ;;  %v801_v57 = vadd.f32 %v799_v45, %v755_v18  ;;  %s3307_s19 = sld [smem:[#allocation2 + $0xd]]  ;;  %v3325_v48 = vld [vmem:[%s2907_s8 + $0x18] sm:$0xff] }
  0xcc   : > { %v802_v61 = vadd.f32 %v800_v58, %v756_v19  ;;  %v807_v62 = vadd.f32 %v805_v59, %v761_v20  ;;  %v808_v0 = vadd.f32 %v806_v50, %v762_v21  ;;  %v827_v1 = vadd.f32 %v826_v41, %v823_v40  ;;  %v3314_v40 = vld [vmem:[%s2907_s8 + $0x8] sm:$0xff]  ;;  %s3317_s1 = sld [smem:[#allocation2 + $0x2d]]  ;;  %v3332_v59 = vld [vmem:[%s2907_s8 + $0x20] sm:$0xff] }
  0xcd   : > { %v828_v63 = vadd.f32 %v826_v41, %v824_v43  ;;  %v857_v60 = vmul.f32 %v856_v2, %v2912_v3  ;;  %v858_v10 = vmul.f32 %v856_v2, %v2915_v4  ;;  %v861_v51 = vmul.f32 %v2920_v5, %v860_v9  ;;  %v3310_v41 = vld [vmem:[%s2907_s8] sm:$0xff] }
  0xce   : > { %v862_v11 = vmul.f32 %v2923_v6, %v860_v9  ;;  %v790_v12 = vadd.f32 %v788_v52, %v744_v23  ;;  %v829_v13 = vmax.f32 %v827_v1, 0.0  ;;  %v866_v15 = vstv %s3257_s2  ;;  %s3329_s2 = sld [smem:[#allocation2 + $0x4d]] }
  0xcf   : > { %v830_v14 = vmax.f32 %v828_v63, 0.0  ;;  %v863_v16 = vadd.f32 %v861_v51, %v857_v60  ;;  %v867_v18 = vmul.f32 %v2928_v7, %v866_v15  ;;  %v868_v3 = vmul.f32 %v2931_v8, %v866_v15 }
  0xd0   : > { %v864_v17 = vadd.f32 %v862_v11, %v858_v10  ;;  %v833_v4 = vmul.f32 %v832_v42, %v829_v13  ;;  %v839_v6 = vmul.f32 %v838_v44, %v829_v13  ;;  %v845_v20 = vmul.f32 %v844_v46, %v829_v13 }
  0xd1   : > { %v834_v5 = vmul.f32 %v832_v42, %v830_v14  ;;  %v840_v19 = vmul.f32 %v838_v44, %v830_v14  ;;  %v846_v21 = vmul.f32 %v844_v46, %v830_v14  ;;  %v851_v22 = vmul.f32 %v850_v53, %v829_v13  ;;  %v3321_v46 = vld [vmem:[%s2907_s8 + $0x10] sm:$0xff] }
  0xd2   : > { %v852_v25 = vmul.f32 %v850_v53, %v830_v14  ;;  %v835_v7 = vadd.f32 %v833_v4, %v789_v54  ;;  %v841_v26 = vadd.f32 %v839_v6, %v795_v55  ;;  %v872_v27 = vstv %s3264_s29  ;;  %s3336_s29 = sld [smem:[#allocation5 + $0xd]] }
  0xd3   : > { %v842_v8 = vadd.f32 %v840_v19, %v796_v56  ;;  %v847_v28 = vadd.f32 %v845_v20, %v801_v57  ;;  %v848_v29 = vadd.f32 %v846_v21, %v802_v61  ;;  %v853_v24 = vadd.f32 %v851_v22, %v807_v62  ;;  %v3339_v56 = vld [vmem:[%s2907_s8 + $0x28] sm:$0xff] }
  0xd4   : > { %v854_v30 = vadd.f32 %v852_v25, %v808_v0  ;;  %v836_v23 = vadd.f32 %v834_v5, %v790_v12  ;;  %v869_v31 = vadd.f32 %v867_v18, %v863_v16  ;;  %v870_v32 = vadd.f32 %v868_v3, %v864_v17 }
  0xd5   : > { %v878_v33 = vstv %s3266_s20  ;;  %v884_v34 = vstv %s3270_s14  ;;  %v890_v35 = vstv %s3272_s23  ;;  %v902_v36 = vstv %s3276_s22  ;;  %s3343_s20 = sld [smem:[#allocation7 + $0x34]] }
  0xd6   : > { %v906_v37 = vstv %s3282_s13  ;;  %v873_v38 = vadd.f32 %v872_v27, %v869_v31  ;;  %v874_v39 = vadd.f32 %v872_v27, %v870_v32  ;;  %v903_v42 = vmul.f32 %v3310_v41, %v902_v36  ;;  %s3345_s14 = sld [smem:[#allocation7 + $0x35]] }
  0xd7   : > { %v904_v43 = vmul.f32 %v3314_v40, %v902_v36  ;;  %v896_v44 = vstv %s3285_s9  ;;  %v907_v47 = vmul.f32 %v3321_v46, %v906_v37  ;;  %v908_v49 = vmul.f32 %v3325_v48, %v906_v37  ;;  %s3347_s23 = sld [smem:[#allocation7 + $0x36]] }
  0xd8   : > { %v912_v53 = vstv %s3289_s18  ;;  %v875_v45 = vmax.f32 %v873_v38, 0.0  ;;  %v876_v58 = vmax.f32 %v874_v39, 0.0  ;;  %v918_v52 = vstv %s3291_s21  ;;  %s3350_s22 = sld [smem:[#allocation7 + $0x37]] }
  0xd9   : > { %v913_v50 = vmul.f32 %v3332_v59, %v912_v53  ;;  %v909_v54 = vadd.f32 %v907_v47, %v903_v42  ;;  %v910_v55 = vadd.f32 %v908_v49, %v904_v43  ;;  %v914_v57 = vmul.f32 %v3339_v56, %v912_v53  ;;  %s3357_s13 = sld [smem:[#allocation2 + $0xe]] }
  0xda   : > { %v924_v61 = vstv %s3293_s15  ;;  %v879_v62 = vmul.f32 %v878_v33, %v875_v45  ;;  %v880_v0 = vmul.f32 %v878_v33, %v876_v58  ;;  %v885_v1 = vmul.f32 %v884_v34, %v875_v45  ;;  %s3361_s9 = sld [smem:[#allocation2 + $0x2e]] }
  0xdb   : > { %v886_v63 = vmul.f32 %v884_v34, %v876_v58  ;;  %v891_v2 = vmul.f32 %v890_v35, %v875_v45  ;;  %v892_v9 = vmul.f32 %v890_v35, %v876_v58  ;;  %v897_v60 = vmul.f32 %v896_v44, %v875_v45  ;;  %s3367_s18 = sld [smem:[#allocation2 + $0x4e]] }
  0xdc   : > { %v898_v10 = vmul.f32 %v896_v44, %v876_v58  ;;  %v881_v51 = vadd.f32 %v879_v62, %v835_v7  ;;  %v887_v11 = vadd.f32 %v885_v1, %v841_v26  ;;  %v930_v13 = vstv %s3296_s17  ;;  %s3371_s21 = sld [smem:[#allocation5 + $0xe]] }
  0xdd   : > { %v888_v12 = vadd.f32 %v886_v63, %v842_v8  ;;  %v893_v14 = vadd.f32 %v891_v2, %v847_v28  ;;  %v894_v15 = vadd.f32 %v892_v9, %v848_v29  ;;  %v899_v16 = vadd.f32 %v897_v60, %v853_v24  ;;  %s3375_s15 = sld [smem:[#allocation7 + $0x38]] }
  0xde   : > { %v900_v17 = vadd.f32 %v898_v10, %v854_v30  ;;  %v882_v18 = vadd.f32 %v880_v0, %v836_v23  ;;  %v915_v3 = vadd.f32 %v913_v50, %v909_v54  ;;  %v916_v4 = vadd.f32 %v914_v57, %v910_v55  ;;  %s3378_s17 = sld [smem:[#allocation7 + $0x39]] }
  0xdf   : > { %v936_v5 = vstv %s3298_s16  ;;  %v942_v6 = vstv %s3301_s0  ;;  %v948_v19 = vstv %s3307_s19  ;;  %v952_v20 = vstv %s3317_s1  ;;  %s3380_s16 = sld [smem:[#allocation7 + $0x3a]] }
  0xe0   : > { %v958_v21 = vstv %s3329_s2  ;;  %v919_v22 = vadd.f32 %v918_v52, %v915_v3  ;;  %v920_v25 = vadd.f32 %v918_v52, %v916_v4  ;;  %v949_v7 = vmul.f32 %v3310_v41, %v948_v19  ;;  %s3382_s0 = sld [smem:[#allocation7 + $0x3b]] }
  0xe1   : > { %v950_v26 = vmul.f32 %v3314_v40, %v948_v19  ;;  %v953_v8 = vmul.f32 %v3321_v46, %v952_v20  ;;  %v954_v27 = vmul.f32 %v3325_v48, %v952_v20  ;;  %v959_v28 = vmul.f32 %v3332_v59, %v958_v21  ;;  %s3390_s19 = sld [smem:[#allocation2 + $0xf]] }
  0xe2   : > { %v964_v29 = vstv %s3336_s29  ;;  %v921_v24 = vmax.f32 %v919_v22, 0.0  ;;  %v922_v30 = vmax.f32 %v920_v25, 0.0  ;;  %v960_v23 = vmul.f32 %v3339_v56, %v958_v21  ;;  %s3393_s1 = sld [smem:[#allocation2 + $0x2f]] }
  0xe3   : > { %v970_v31 = vstv %s3343_s20  ;;  %v955_v32 = vadd.f32 %v953_v8, %v949_v7  ;;  %v956_v33 = vadd.f32 %v954_v27, %v950_v26  ;;  %v976_v34 = vstv %s3345_s14  ;;  %s3399_s2 = sld [smem:[#allocation2 + $0x4f]] }
  0xe4   : > { %v982_v35 = vstv %s3347_s23  ;;  %v925_v36 = vmul.f32 %v924_v61, %v921_v24  ;;  %v931_v37 = vmul.f32 %v930_v13, %v921_v24  ;;  %v932_v38 = vmul.f32 %v930_v13, %v922_v30  ;;  %s3406_s29 = sld [smem:[#allocation5 + $0xf]] }
  0xe5   : > { %v988_v39 = vstv %s3350_s22  ;;  %v937_v42 = vmul.f32 %v936_v5, %v921_v24  ;;  %v938_v43 = vmul.f32 %v936_v5, %v922_v30  ;;  %v943_v44 = vmul.f32 %v942_v6, %v921_v24  ;;  %s3408_s14 = sld [smem:[#allocation7 + $0x3c]] }
  0xe6   : > { %v944_v47 = vmul.f32 %v942_v6, %v922_v30  ;;  %v926_v49 = vmul.f32 %v924_v61, %v922_v30  ;;  %v927_v53 = vadd.f32 %v925_v36, %v881_v51  ;;  %v933_v45 = vadd.f32 %v931_v37, %v887_v11  ;;  %s3412_s23 = sld [smem:[#allocation7 + $0x3d]] }
  0xe7   : > { %v934_v58 = vadd.f32 %v932_v38, %v888_v12  ;;  %v939_v50 = vadd.f32 %v937_v42, %v893_v14  ;;  %v940_v52 = vadd.f32 %v938_v43, %v894_v15  ;;  %v945_v54 = vadd.f32 %v943_v44, %v899_v16  ;;  %s3414_s22 = sld [smem:[#allocation7 + $0x3e]] }
  0xe8   : > { %v946_v55 = vadd.f32 %v944_v47, %v900_v17  ;;  %v961_v57 = vadd.f32 %v959_v28, %v955_v32  ;;  %v962_v62 = vadd.f32 %v960_v23, %v956_v33  ;;  %v994_v0 = vstv %s3357_s13  ;;  %s3418_s13 = sld [smem:[#allocation2 + $0x10]] }
  0xe9   : > { %v998_v1 = vstv %s3361_s9  ;;  %v995_v63 = vmul.f32 %v3310_v41, %v994_v0  ;;  %v996_v2 = vmul.f32 %v3314_v40, %v994_v0  ;;  %v928_v60 = vadd.f32 %v926_v49, %v882_v18  ;;  %s3424_s20 = sld [smem:[#allocation2 + $0x30]] }
  0xea   : > { %v999_v61 = vmul.f32 %v3321_v46, %v998_v1  ;;  %v1000_v9 = vmul.f32 %v3325_v48, %v998_v1  ;;  %v965_v10 = vadd.f32 %v964_v29, %v961_v57  ;;  %v966_v51 = vadd.f32 %v964_v29, %v962_v62  ;;  %s3427_s9 = sld [smem:[#allocation7 + $0x3f]] }
  0xeb   : > { %v1004_v11 = vstv %s3367_s18  ;;  %v1010_v3 = vstv %s3371_s21  ;;  %v1016_v4 = vstv %s3375_s15  ;;  %v1022_v6 = vstv %s3378_s17  ;;  %s3431_s18 = sld [smem:[#allocation2 + $0x50]] }
  0xec   : > { %v1001_v12 = vadd.f32 %v999_v61, %v995_v63  ;;  %v1002_v13 = vadd.f32 %v1000_v9, %v996_v2  ;;  %v1005_v14 = vmul.f32 %v3332_v59, %v1004_v11  ;;  %v1006_v15 = vmul.f32 %v3339_v56, %v1004_v11  ;;  %s3433_s21 = sld [smem:[#allocation5 + $0x10]] }
  0xed   : > { %v967_v16 = vmax.f32 %v965_v10, 0.0  ;;  %v968_v17 = vmax.f32 %v966_v51, 0.0  ;;  %v1028_v19 = vstv %s3380_s16  ;;  %v1034_v25 = vstv %s3382_s0  ;;  %s3435_s15 = sld [smem:[#allocation7 + $0x40]] }
  0xee   : > { %v1007_v18 = vadd.f32 %v1005_v14, %v1001_v12  ;;  %v1008_v5 = vadd.f32 %v1006_v15, %v1002_v13  ;;  %v1040_v37 = vstv %s3390_s19  ;;  %v1044_v38 = vstv %s3393_s1  ;;  %s3438_s17 = sld [smem:[#allocation7 + $0x41]] }
  0xef   : > { %v971_v20 = vmul.f32 %v970_v31, %v967_v16  ;;  %v977_v21 = vmul.f32 %v976_v34, %v967_v16  ;;  %v978_v22 = vmul.f32 %v976_v34, %v968_v17  ;;  %v983_v7 = vmul.f32 %v982_v35, %v967_v16  ;;  %s3440_s16 = sld [smem:[#allocation7 + $0x42]] }
  0xf0   : > { %v984_v26 = vmul.f32 %v982_v35, %v968_v17  ;;  %v989_v8 = vmul.f32 %v988_v39, %v967_v16  ;;  %v990_v27 = vmul.f32 %v988_v39, %v968_v17  ;;  %v972_v28 = vmul.f32 %v970_v31, %v968_v17  ;;  %s3443_s0 = sld [smem:[#allocation7 + $0x43]] }
  0xf1   : > { %v973_v29 = vadd.f32 %v971_v20, %v927_v53  ;;  %v979_v24 = vadd.f32 %v977_v21, %v933_v45  ;;  %v980_v30 = vadd.f32 %v978_v22, %v934_v58  ;;  %v985_v23 = vadd.f32 %v983_v7, %v939_v50  ;;  %s3449_s19 = sld [smem:[#allocation2 + $0x11]] }
  0xf2   : > { %v986_v32 = vadd.f32 %v984_v26, %v940_v52  ;;  %v991_v33 = vadd.f32 %v989_v8, %v945_v54  ;;  %v992_v34 = vadd.f32 %v990_v27, %v946_v55  ;;  %v1011_v35 = vadd.f32 %v1010_v3, %v1007_v18  ;;  %s3453_s1 = sld [smem:[#allocation2 + $0x31]] }
  0xf3   : > { %v1012_v36 = vadd.f32 %v1010_v3, %v1008_v5  ;;  %v1041_v31 = vmul.f32 %v3310_v41, %v1040_v37  ;;  %v1042_v39 = vmul.f32 %v3314_v40, %v1040_v37  ;;  %v1045_v42 = vmul.f32 %v3321_v46, %v1044_v38 }
  0xf4   : > { %v1046_v43 = vmul.f32 %v3325_v48, %v1044_v38  ;;  %v974_v44 = vadd.f32 %v972_v28, %v928_v60  ;;  %v1013_v47 = vmax.f32 %v1011_v35, 0.0  ;;  %v1050_v53 = vstv %s3399_s2  ;;  %s3459_s2 = sld [smem:[#allocation2 + $0x51]] }
  0xf5   : > { %v1014_v49 = vmax.f32 %v1012_v36, 0.0  ;;  %v1047_v45 = vadd.f32 %v1045_v42, %v1041_v31  ;;  %v1051_v50 = vmul.f32 %v3332_v59, %v1050_v53  ;;  %v1052_v52 = vmul.f32 %v3339_v56, %v1050_v53 }
  0xf6   : > { %v1048_v58 = vadd.f32 %v1046_v43, %v1042_v39  ;;  %v1017_v54 = vmul.f32 %v1016_v4, %v1013_v47  ;;  %v1023_v57 = vmul.f32 %v1022_v6, %v1013_v47  ;;  %v1029_v0 = vmul.f32 %v1028_v19, %v1013_v47 }
  0xf7   : > { %v1018_v55 = vmul.f32 %v1016_v4, %v1014_v49  ;;  %v1024_v62 = vmul.f32 %v1022_v6, %v1014_v49  ;;  %v1030_v1 = vmul.f32 %v1028_v19, %v1014_v49  ;;  %v1035_v63 = vmul.f32 %v1034_v25, %v1013_v47 }
  0xf8   : > { %v1036_v2 = vmul.f32 %v1034_v25, %v1014_v49  ;;  %v1019_v61 = vadd.f32 %v1017_v54, %v973_v29  ;;  %v1025_v9 = vadd.f32 %v1023_v57, %v979_v24  ;;  %v1056_v10 = vstv %s3406_s29  ;;  %s3463_s29 = sld [smem:[#allocation5 + $0x11]] }
  0xf9   : > { %v1026_v60 = vadd.f32 %v1024_v62, %v980_v30  ;;  %v1031_v51 = vadd.f32 %v1029_v0, %v985_v23  ;;  %v1032_v11 = vadd.f32 %v1030_v1, %v986_v32  ;;  %v1037_v12 = vadd.f32 %v1035_v63, %v991_v33 }
  0xfa   : > { %v1038_v13 = vadd.f32 %v1036_v2, %v992_v34  ;;  %v1020_v14 = vadd.f32 %v1018_v55, %v974_v44  ;;  %v1053_v15 = vadd.f32 %v1051_v50, %v1047_v45  ;;  %v1054_v16 = vadd.f32 %v1052_v52, %v1048_v58 }
  0xfb   : > { %v1062_v17 = vstv %s3408_s14  ;;  %v1068_v3 = vstv %s3412_s23  ;;  %v1074_v4 = vstv %s3414_s22  ;;  %v1086_v18 = vstv %s3418_s13  ;;  %s3467_s14 = sld [smem:[#allocation7 + $0x44]] }
  0xfc   : > { %v1090_v5 = vstv %s3424_s20  ;;  %v1057_v6 = vadd.f32 %v1056_v10, %v1053_v15  ;;  %v1058_v19 = vadd.f32 %v1056_v10, %v1054_v16  ;;  %v1087_v20 = vmul.f32 %v3310_v41, %v1086_v18  ;;  %s3469_s23 = sld [smem:[#allocation7 + $0x45]] }
  0xfd   : > { %v1088_v21 = vmul.f32 %v3314_v40, %v1086_v18  ;;  %v1080_v22 = vstv %s3427_s9  ;;  %v1091_v25 = vmul.f32 %v3321_v46, %v1090_v5  ;;  %v1092_v7 = vmul.f32 %v3325_v48, %v1090_v5  ;;  %s3471_s22 = sld [smem:[#allocation7 + $0x46]] }
  0xfe   : > { %v1096_v26 = vstv %s3431_s18  ;;  %v1059_v8 = vmax.f32 %v1057_v6, 0.0  ;;  %v1060_v27 = vmax.f32 %v1058_v19, 0.0  ;;  %v1102_v29 = vstv %s3433_s21  ;;  %s3474_s13 = sld [smem:[#allocation7 + $0x47]] }
  0xff   : > { %v1097_v28 = vmul.f32 %v3332_v59, %v1096_v26  ;;  %v1093_v24 = vadd.f32 %v1091_v25, %v1087_v20  ;;  %v1094_v30 = vadd.f32 %v1092_v7, %v1088_v21  ;;  %v1098_v23 = vmul.f32 %v3339_v56, %v1096_v26  ;;  %s3481_s20 = sld [smem:[#allocation2 + $0x12]] }
 0x100   : > { %v1108_v32 = vstv %s3435_s15  ;;  %v1063_v33 = vmul.f32 %v1062_v17, %v1059_v8  ;;  %v1064_v34 = vmul.f32 %v1062_v17, %v1060_v27  ;;  %v1069_v35 = vmul.f32 %v1068_v3, %v1059_v8  ;;  %s3485_s9 = sld [smem:[#allocation2 + $0x32]] }
 0x101   : > { %v1070_v36 = vmul.f32 %v1068_v3, %v1060_v27  ;;  %v1075_v37 = vmul.f32 %v1074_v4, %v1059_v8  ;;  %v1076_v38 = vmul.f32 %v1074_v4, %v1060_v27  ;;  %v1081_v31 = vmul.f32 %v1080_v22, %v1059_v8  ;;  %s3491_s18 = sld [smem:[#allocation2 + $0x52]] }
 0x102   : > { %v1082_v39 = vmul.f32 %v1080_v22, %v1060_v27  ;;  %v1065_v42 = vadd.f32 %v1063_v33, %v1019_v61  ;;  %v1071_v43 = vadd.f32 %v1069_v35, %v1025_v9  ;;  %v1114_v47 = vstv %s3438_s17  ;;  %s3495_s21 = sld [smem:[#allocation5 + $0x12]] }
 0x103   : > { %v1072_v44 = vadd.f32 %v1070_v36, %v1026_v60  ;;  %v1077_v49 = vadd.f32 %v1075_v37, %v1031_v51  ;;  %v1078_v53 = vadd.f32 %v1076_v38, %v1032_v11  ;;  %v1083_v45 = vadd.f32 %v1081_v31, %v1037_v12  ;;  %s3499_s15 = sld [smem:[#allocation7 + $0x48]] }
 0x104   : > { %v1084_v58 = vadd.f32 %v1082_v39, %v1038_v13  ;;  %v1066_v50 = vadd.f32 %v1064_v34, %v1020_v14  ;;  %v1099_v52 = vadd.f32 %v1097_v28, %v1093_v24  ;;  %v1100_v54 = vadd.f32 %v1098_v23, %v1094_v30  ;;  %s3502_s17 = sld [smem:[#allocation7 + $0x49]] }
 0x105   : > { %v1120_v55 = vstv %s3440_s16  ;;  %v1126_v57 = vstv %s3443_s0  ;;  %v1132_v62 = vstv %s3449_s19  ;;  %v1136_v0 = vstv %s3453_s1  ;;  %s3504_s16 = sld [smem:[#allocation7 + $0x4a]] }
 0x106   : > { %v1142_v1 = vstv %s3459_s2  ;;  %v1103_v63 = vadd.f32 %v1102_v29, %v1099_v52  ;;  %v1104_v2 = vadd.f32 %v1102_v29, %v1100_v54  ;;  %v1133_v61 = vmul.f32 %v3310_v41, %v1132_v62  ;;  %s3506_s0 = sld [smem:[#allocation7 + $0x4b]] }
 0x107   : > { %v1134_v9 = vmul.f32 %v3314_v40, %v1132_v62  ;;  %v1137_v60 = vmul.f32 %v3321_v46, %v1136_v0  ;;  %v1138_v10 = vmul.f32 %v3325_v48, %v1136_v0  ;;  %v1143_v51 = vmul.f32 %v3332_v59, %v1142_v1  ;;  %s3514_s19 = sld [smem:[#allocation2 + $0x13]] }
 0x108   : > { %v1148_v11 = vstv %s3463_s29  ;;  %v1105_v12 = vmax.f32 %v1103_v63, 0.0  ;;  %v1106_v13 = vmax.f32 %v1104_v2, 0.0  ;;  %v1144_v14 = vmul.f32 %v3339_v56, %v1142_v1  ;;  %s3517_s1 = sld [smem:[#allocation2 + $0x33]] }
 0x109   : > { %v1154_v15 = vstv %s3467_s14  ;;  %v1139_v16 = vadd.f32 %v1137_v60, %v1133_v61  ;;  %v1140_v17 = vadd.f32 %v1138_v10, %v1134_v9  ;;  %v1160_v3 = vstv %s3469_s23  ;;  %s3523_s2 = sld [smem:[#allocation2 + $0x53]] }
 0x10a   : > { %v1166_v4 = vstv %s3471_s22  ;;  %v1109_v18 = vmul.f32 %v1108_v32, %v1105_v12  ;;  %v1115_v5 = vmul.f32 %v1114_v47, %v1105_v12  ;;  %v1116_v6 = vmul.f32 %v1114_v47, %v1106_v13  ;;  %s3530_s29 = sld [smem:[#allocation5 + $0x13]] }
 0x10b   : > { %v1172_v19 = vstv %s3474_s13  ;;  %v1121_v20 = vmul.f32 %v1120_v55, %v1105_v12  ;;  %v1122_v21 = vmul.f32 %v1120_v55, %v1106_v13  ;;  %v1127_v22 = vmul.f32 %v1126_v57, %v1105_v12  ;;  %s3532_s23 = sld [smem:[#allocation7 + $0x4c]] }
 0x10c   : > { %v1128_v25 = vmul.f32 %v1126_v57, %v1106_v13  ;;  %v1110_v7 = vmul.f32 %v1108_v32, %v1106_v13  ;;  %v1111_v26 = vadd.f32 %v1109_v18, %v1065_v42  ;;  %v1117_v8 = vadd.f32 %v1115_v5, %v1071_v43  ;;  %s3536_s22 = sld [smem:[#allocation7 + $0x4d]] }
 0x10d   : > { %v1118_v27 = vadd.f32 %v1116_v6, %v1072_v44  ;;  %v1123_v28 = vadd.f32 %v1121_v20, %v1077_v49  ;;  %v1124_v29 = vadd.f32 %v1122_v21, %v1078_v53  ;;  %v1129_v24 = vadd.f32 %v1127_v22, %v1083_v45  ;;  %s3538_s13 = sld [smem:[#allocation7 + $0x4e]] }
 0x10e   : > { %v1130_v30 = vadd.f32 %v1128_v25, %v1084_v58  ;;  %v1145_v23 = vadd.f32 %v1143_v51, %v1139_v16  ;;  %v1146_v33 = vadd.f32 %v1144_v14, %v1140_v17  ;;  %v1178_v34 = vstv %s3481_s20  ;;  %s3542_s20 = sld [smem:[#allocation2 + $0x14]] }
 0x10f   : > { %v1182_v35 = vstv %s3485_s9  ;;  %v1179_v36 = vmul.f32 %v3310_v41, %v1178_v34  ;;  %v1180_v37 = vmul.f32 %v3314_v40, %v1178_v34  ;;  %v1112_v31 = vadd.f32 %v1110_v7, %v1066_v50  ;;  %s3548_s14 = sld [smem:[#allocation2 + $0x34]] }
 0x110   : > { %v1183_v32 = vmul.f32 %v3321_v46, %v1182_v35  ;;  %v1184_v38 = vmul.f32 %v3325_v48, %v1182_v35  ;;  %v1149_v39 = vadd.f32 %v1148_v11, %v1145_v23  ;;  %v1150_v42 = vadd.f32 %v1148_v11, %v1146_v33  ;;  %s3551_s9 = sld [smem:[#allocation7 + $0x4f]] }
 0x111   : > { %v1188_v43 = vstv %s3491_s18  ;;  %v1194_v52 = vstv %s3495_s21  ;;  %v1200_v54 = vstv %s3499_s15  ;;  %v1206_v57 = vstv %s3502_s17  ;;  %s3555_s18 = sld [smem:[#allocation2 + $0x54]] }
 0x112   : > { %v1185_v44 = vadd.f32 %v1183_v32, %v1179_v36  ;;  %v1186_v47 = vadd.f32 %v1184_v38, %v1180_v37  ;;  %v1189_v49 = vmul.f32 %v3332_v59, %v1188_v43  ;;  %v1190_v53 = vmul.f32 %v3339_v56, %v1188_v43  ;;  %s3557_s21 = sld [smem:[#allocation5 + $0x14]] }
 0x113   : > { %v1151_v45 = vmax.f32 %v1149_v39, 0.0  ;;  %v1152_v58 = vmax.f32 %v1150_v42, 0.0  ;;  %v1212_v62 = vstv %s3504_s16  ;;  %v1218_v2 = vstv %s3506_s0  ;;  %s3559_s15 = sld [smem:[#allocation7 + $0x50]] }
 0x114   : > { %v1191_v50 = vadd.f32 %v1189_v49, %v1185_v44  ;;  %v1192_v55 = vadd.f32 %v1190_v53, %v1186_v47  ;;  %v1224_v5 = vstv %s3514_s19  ;;  %v1228_v6 = vstv %s3517_s1  ;;  %s3562_s17 = sld [smem:[#allocation7 + $0x51]] }
 0x115   : > { %v1155_v0 = vmul.f32 %v1154_v15, %v1151_v45  ;;  %v1161_v1 = vmul.f32 %v1160_v3, %v1151_v45  ;;  %v1162_v63 = vmul.f32 %v1160_v3, %v1152_v58  ;;  %v1167_v61 = vmul.f32 %v1166_v4, %v1151_v45  ;;  %s3564_s16 = sld [smem:[#allocation7 + $0x52]] }
 0x116   : > { %v1168_v9 = vmul.f32 %v1166_v4, %v1152_v58  ;;  %v1173_v60 = vmul.f32 %v1172_v19, %v1151_v45  ;;  %v1174_v10 = vmul.f32 %v1172_v19, %v1152_v58  ;;  %v1156_v51 = vmul.f32 %v1154_v15, %v1152_v58  ;;  %s3567_s0 = sld [smem:[#allocation7 + $0x53]] }
 0x117   : > { %v1157_v11 = vadd.f32 %v1155_v0, %v1111_v26  ;;  %v1163_v12 = vadd.f32 %v1161_v1, %v1117_v8  ;;  %v1164_v13 = vadd.f32 %v1162_v63, %v1118_v27  ;;  %v1169_v14 = vadd.f32 %v1167_v61, %v1123_v28  ;;  %s3573_s19 = sld [smem:[#allocation2 + $0x15]] }
 0x118   : > { %v1170_v16 = vadd.f32 %v1168_v9, %v1124_v29  ;;  %v1175_v17 = vadd.f32 %v1173_v60, %v1129_v24  ;;  %v1176_v3 = vadd.f32 %v1174_v10, %v1130_v30  ;;  %v1195_v4 = vadd.f32 %v1194_v52, %v1191_v50  ;;  %s3577_s1 = sld [smem:[#allocation2 + $0x35]] }
 0x119   : > { %v1196_v18 = vadd.f32 %v1194_v52, %v1192_v55  ;;  %v1225_v15 = vmul.f32 %v3310_v41, %v1224_v5  ;;  %v1226_v19 = vmul.f32 %v3314_v40, %v1224_v5  ;;  %v1229_v20 = vmul.f32 %v3321_v46, %v1228_v6 }
 0x11a   : > { %v1230_v21 = vmul.f32 %v3325_v48, %v1228_v6  ;;  %v1158_v22 = vadd.f32 %v1156_v51, %v1112_v31  ;;  %v1197_v25 = vmax.f32 %v1195_v4, 0.0  ;;  %v1234_v26 = vstv %s3523_s2  ;;  %s3583_s2 = sld [smem:[#allocation2 + $0x55]] }
 0x11b   : > { %v1198_v7 = vmax.f32 %v1196_v18, 0.0  ;;  %v1231_v8 = vadd.f32 %v1229_v20, %v1225_v15  ;;  %v1235_v28 = vmul.f32 %v3332_v59, %v1234_v26  ;;  %v1236_v29 = vmul.f32 %v3339_v56, %v1234_v26 }
 0x11c   : > { %v1232_v27 = vadd.f32 %v1230_v21, %v1226_v19  ;;  %v1201_v24 = vmul.f32 %v1200_v54, %v1197_v25  ;;  %v1207_v23 = vmul.f32 %v1206_v57, %v1197_v25  ;;  %v1213_v34 = vmul.f32 %v1212_v62, %v1197_v25 }
 0x11d   : > { %v1202_v30 = vmul.f32 %v1200_v54, %v1198_v7  ;;  %v1208_v33 = vmul.f32 %v1206_v57, %v1198_v7  ;;  %v1214_v35 = vmul.f32 %v1212_v62, %v1198_v7  ;;  %v1219_v36 = vmul.f32 %v1218_v2, %v1197_v25 }
 0x11e   : > { %v1220_v37 = vmul.f32 %v1218_v2, %v1198_v7  ;;  %v1203_v32 = vadd.f32 %v1201_v24, %v1157_v11  ;;  %v1209_v38 = vadd.f32 %v1207_v23, %v1163_v12  ;;  %v1240_v39 = vstv %s3530_s29  ;;  %s3587_s29 = sld [smem:[#allocation5 + $0x15]] }
 0x11f   : > { %v1210_v31 = vadd.f32 %v1208_v33, %v1164_v13  ;;  %v1215_v42 = vadd.f32 %v1213_v34, %v1169_v14  ;;  %v1216_v43 = vadd.f32 %v1214_v35, %v1170_v16  ;;  %v1221_v44 = vadd.f32 %v1219_v36, %v1175_v17 }
 0x120   : > { %v1222_v47 = vadd.f32 %v1220_v37, %v1176_v3  ;;  %v1204_v49 = vadd.f32 %v1202_v30, %v1158_v22  ;;  %v1237_v53 = vadd.f32 %v1235_v28, %v1231_v8  ;;  %v1238_v45 = vadd.f32 %v1236_v29, %v1232_v27 }
 0x121   : > { %v1246_v58 = vstv %s3532_s23  ;;  %v1252_v52 = vstv %s3536_s22  ;;  %v1258_v54 = vstv %s3538_s13  ;;  %v1270_v50 = vstv %s3542_s20  ;;  %s3591_s23 = sld [smem:[#allocation7 + $0x54]] }
 0x122   : > { %v1274_v55 = vstv %s3548_s14  ;;  %v1241_v57 = vadd.f32 %v1240_v39, %v1237_v53  ;;  %v1242_v62 = vadd.f32 %v1240_v39, %v1238_v45  ;;  %v1271_v0 = vmul.f32 %v3310_v41, %v1270_v50  ;;  %s3593_s22 = sld [smem:[#allocation7 + $0x55]] }
 0x123   : > { %v1272_v1 = vmul.f32 %v3314_v40, %v1270_v50  ;;  %v1264_v63 = vstv %s3551_s9  ;;  %v1275_v2 = vmul.f32 %v3321_v46, %v1274_v55  ;;  %v1276_v61 = vmul.f32 %v3325_v48, %v1274_v55  ;;  %s3595_s13 = sld [smem:[#allocation7 + $0x56]] }
 0x124   : > { %v1280_v9 = vstv %s3555_s18  ;;  %v1243_v60 = vmax.f32 %v1241_v57, 0.0  ;;  %v1244_v10 = vmax.f32 %v1242_v62, 0.0  ;;  %v1286_v11 = vstv %s3557_s21  ;;  %s3598_s20 = sld [smem:[#allocation7 + $0x57]] }
 0x125   : > { %v1281_v51 = vmul.f32 %v3332_v59, %v1280_v9  ;;  %v1277_v12 = vadd.f32 %v1275_v2, %v1271_v0  ;;  %v1278_v13 = vadd.f32 %v1276_v61, %v1272_v1  ;;  %v1282_v14 = vmul.f32 %v3339_v56, %v1280_v9  ;;  %s3605_s14 = sld [smem:[#allocation2 + $0x16]] }
 0x126   : > { %v1292_v16 = vstv %s3559_s15  ;;  %v1247_v17 = vmul.f32 %v1246_v58, %v1243_v60  ;;  %v1248_v3 = vmul.f32 %v1246_v58, %v1244_v10  ;;  %v1253_v4 = vmul.f32 %v1252_v52, %v1243_v60  ;;  %s3609_s9 = sld [smem:[#allocation2 + $0x36]] }
 0x127   : > { %v1254_v18 = vmul.f32 %v1252_v52, %v1244_v10  ;;  %v1259_v5 = vmul.f32 %v1258_v54, %v1243_v60  ;;  %v1260_v6 = vmul.f32 %v1258_v54, %v1244_v10  ;;  %v1265_v15 = vmul.f32 %v1264_v63, %v1243_v60  ;;  %s3615_s18 = sld [smem:[#allocation2 + $0x56]] }
 0x128   : > { %v1266_v19 = vmul.f32 %v1264_v63, %v1244_v10  ;;  %v1249_v20 = vadd.f32 %v1247_v17, %v1203_v32  ;;  %v1255_v21 = vadd.f32 %v1253_v4, %v1209_v38  ;;  %v1298_v25 = vstv %s3562_s17  ;;  %s3619_s21 = sld [smem:[#allocation5 + $0x16]] }
 0x129   : > { %v1256_v22 = vadd.f32 %v1254_v18, %v1210_v31  ;;  %v1261_v7 = vadd.f32 %v1259_v5, %v1215_v42  ;;  %v1262_v26 = vadd.f32 %v1260_v6, %v1216_v43  ;;  %v1267_v8 = vadd.f32 %v1265_v15, %v1221_v44  ;;  %s3623_s15 = sld [smem:[#allocation7 + $0x58]] }
 0x12a   : > { %v1268_v27 = vadd.f32 %v1266_v19, %v1222_v47  ;;  %v1250_v28 = vadd.f32 %v1248_v3, %v1204_v49  ;;  %v1283_v29 = vadd.f32 %v1281_v51, %v1277_v12  ;;  %v1284_v24 = vadd.f32 %v1282_v14, %v1278_v13  ;;  %s3626_s17 = sld [smem:[#allocation7 + $0x59]] }
 0x12b   : > { %v1304_v30 = vstv %s3564_s16  ;;  %v1310_v23 = vstv %s3567_s0  ;;  %v1316_v33 = vstv %s3573_s19  ;;  %v1320_v34 = vstv %s3577_s1  ;;  %s3628_s16 = sld [smem:[#allocation7 + $0x5a]] }
 0x12c   : > { %v1326_v35 = vstv %s3583_s2  ;;  %v1287_v36 = vadd.f32 %v1286_v11, %v1283_v29  ;;  %v1288_v37 = vadd.f32 %v1286_v11, %v1284_v24  ;;  %v1317_v32 = vmul.f32 %v3310_v41, %v1316_v33  ;;  %s3630_s0 = sld [smem:[#allocation7 + $0x5b]] }
 0x12d   : > { %v1318_v38 = vmul.f32 %v3314_v40, %v1316_v33  ;;  %v1321_v31 = vmul.f32 %v3321_v46, %v1320_v34  ;;  %v1322_v39 = vmul.f32 %v3325_v48, %v1320_v34  ;;  %v1327_v42 = vmul.f32 %v3332_v59, %v1326_v35  ;;  %s3638_s19 = sld [smem:[#allocation2 + $0x17]] }
 0x12e   : > { %v1332_v43 = vstv %s3587_s29  ;;  %v1289_v44 = vmax.f32 %v1287_v36, 0.0  ;;  %v1290_v47 = vmax.f32 %v1288_v37, 0.0  ;;  %v1328_v49 = vmul.f32 %v3339_v56, %v1326_v35  ;;  %s3641_s1 = sld [smem:[#allocation2 + $0x37]] }
 0x12f   : > { %v1338_v53 = vstv %s3591_s23  ;;  %v1323_v45 = vadd.f32 %v1321_v31, %v1317_v32  ;;  %v1324_v58 = vadd.f32 %v1322_v39, %v1318_v38  ;;  %v1344_v52 = vstv %s3593_s22  ;;  %s3647_s2 = sld [smem:[#allocation2 + $0x57]] }
 0x130   : > { %v1350_v54 = vstv %s3595_s13  ;;  %v1293_v50 = vmul.f32 %v1292_v16, %v1289_v44  ;;  %v1299_v55 = vmul.f32 %v1298_v25, %v1289_v44  ;;  %v1300_v57 = vmul.f32 %v1298_v25, %v1290_v47  ;;  %s3654_s29 = sld [smem:[#allocation5 + $0x17]] }
 0x131   : > { %v1356_v62 = vstv %s3598_s20  ;;  %v1305_v0 = vmul.f32 %v1304_v30, %v1289_v44  ;;  %v1306_v1 = vmul.f32 %v1304_v30, %v1290_v47  ;;  %v1311_v63 = vmul.f32 %v1310_v23, %v1289_v44  ;;  %s3656_s22 = sld [smem:[#allocation7 + $0x5c]] }
 0x132   : > { %v1312_v2 = vmul.f32 %v1310_v23, %v1290_v47  ;;  %v1294_v61 = vmul.f32 %v1292_v16, %v1290_v47  ;;  %v1295_v9 = vadd.f32 %v1293_v50, %v1249_v20  ;;  %v1301_v60 = vadd.f32 %v1299_v55, %v1255_v21  ;;  %s3660_s13 = sld [smem:[#allocation7 + $0x5d]] }
 0x133   : > { %v1302_v10 = vadd.f32 %v1300_v57, %v1256_v22  ;;  %v1307_v51 = vadd.f32 %v1305_v0, %v1261_v7  ;;  %v1308_v11 = vadd.f32 %v1306_v1, %v1262_v26  ;;  %v1313_v12 = vadd.f32 %v1311_v63, %v1267_v8  ;;  %s3662_s20 = sld [smem:[#allocation7 + $0x5e]] }
 0x134   : > { %v1314_v13 = vadd.f32 %v1312_v2, %v1268_v27  ;;  %v1329_v14 = vadd.f32 %v1327_v42, %v1323_v45  ;;  %v1330_v17 = vadd.f32 %v1328_v49, %v1324_v58  ;;  %v1362_v3 = vstv %s3605_s14  ;;  %s3666_s14 = sld [smem:[#allocation2 + $0x18]] }
 0x135   : > { %v1366_v4 = vstv %s3609_s9  ;;  %v1363_v18 = vmul.f32 %v3310_v41, %v1362_v3  ;;  %v1364_v5 = vmul.f32 %v3314_v40, %v1362_v3  ;;  %v1296_v15 = vadd.f32 %v1294_v61, %v1250_v28  ;;  %s3672_s23 = sld [smem:[#allocation2 + $0x38]] }
 0x136   : > { %v1367_v16 = vmul.f32 %v3321_v46, %v1366_v4  ;;  %v1368_v6 = vmul.f32 %v3325_v48, %v1366_v4  ;;  %v1333_v19 = vadd.f32 %v1332_v43, %v1329_v14  ;;  %v1334_v20 = vadd.f32 %v1332_v43, %v1330_v17  ;;  %s3675_s9 = sld [smem:[#allocation7 + $0x5f]] }
 0x137   : > { %v1372_v21 = vstv %s3615_s18  ;;  %v1378_v29 = vstv %s3619_s21  ;;  %v1384_v24 = vstv %s3623_s15  ;;  %v1390_v23 = vstv %s3626_s17  ;;  %s3679_s18 = sld [smem:[#allocation2 + $0x58]] }
 0x138   : > { %v1369_v22 = vadd.f32 %v1367_v16, %v1363_v18  ;;  %v1370_v25 = vadd.f32 %v1368_v6, %v1364_v5  ;;  %v1373_v7 = vmul.f32 %v3332_v59, %v1372_v21  ;;  %v1374_v26 = vmul.f32 %v3339_v56, %v1372_v21  ;;  %s3681_s21 = sld [smem:[#allocation5 + $0x18]] }
 0x139   : > { %v1335_v8 = vmax.f32 %v1333_v19, 0.0  ;;  %v1336_v27 = vmax.f32 %v1334_v20, 0.0  ;;  %v1396_v33 = vstv %s3628_s16  ;;  %v1402_v37 = vstv %s3630_s0  ;;  %s3683_s15 = sld [smem:[#allocation7 + $0x60]] }
 0x13a   : > { %v1375_v28 = vadd.f32 %v1373_v7, %v1369_v22  ;;  %v1376_v30 = vadd.f32 %v1374_v26, %v1370_v25  ;;  %v1408_v55 = vstv %s3638_s19  ;;  %v1412_v57 = vstv %s3641_s1  ;;  %s3686_s17 = sld [smem:[#allocation7 + $0x61]] }
 0x13b   : > { %v1339_v34 = vmul.f32 %v1338_v53, %v1335_v8  ;;  %v1345_v35 = vmul.f32 %v1344_v52, %v1335_v8  ;;  %v1346_v36 = vmul.f32 %v1344_v52, %v1336_v27  ;;  %v1351_v32 = vmul.f32 %v1350_v54, %v1335_v8  ;;  %s3688_s16 = sld [smem:[#allocation7 + $0x62]] }
 0x13c   : > { %v1352_v38 = vmul.f32 %v1350_v54, %v1336_v27  ;;  %v1357_v31 = vmul.f32 %v1356_v62, %v1335_v8  ;;  %v1358_v39 = vmul.f32 %v1356_v62, %v1336_v27  ;;  %v1340_v42 = vmul.f32 %v1338_v53, %v1336_v27  ;;  %s3691_s0 = sld [smem:[#allocation7 + $0x63]] }
 0x13d   : > { %v1341_v43 = vadd.f32 %v1339_v34, %v1295_v9  ;;  %v1347_v44 = vadd.f32 %v1345_v35, %v1301_v60  ;;  %v1348_v47 = vadd.f32 %v1346_v36, %v1302_v10  ;;  %v1353_v49 = vadd.f32 %v1351_v32, %v1307_v51  ;;  %s3697_s19 = sld [smem:[#allocation2 + $0x19]]  ;;  %v3715_v35 = vld [vmem:[%s2907_s8 + $0x18] sm:$0xff] }
 0x13e   : > { %v1354_v45 = vadd.f32 %v1352_v38, %v1308_v11  ;;  %v1359_v58 = vadd.f32 %v1357_v31, %v1313_v12  ;;  %v1360_v52 = vadd.f32 %v1358_v39, %v1314_v13  ;;  %v1379_v54 = vadd.f32 %v1378_v29, %v1375_v28  ;;  %v3704_v28 = vld [vmem:[%s2907_s8 + $0x8] sm:$0xff]  ;;  %s3707_s1 = sld [smem:[#allocation2 + $0x39]]  ;;  %v3722_v31 = vld [vmem:[%s2907_s8 + $0x20] sm:$0xff] }
 0x13f   : > { %v1380_v50 = vadd.f32 %v1378_v29, %v1376_v30  ;;  %v1409_v53 = vmul.f32 %v3310_v41, %v1408_v55  ;;  %v1410_v62 = vmul.f32 %v3314_v40, %v1408_v55  ;;  %v1413_v0 = vmul.f32 %v3321_v46, %v1412_v57  ;;  %v3700_v29 = vld [vmem:[%s2907_s8] sm:$0xff] }
 0x140   : > { %v1414_v1 = vmul.f32 %v3325_v48, %v1412_v57  ;;  %v1342_v63 = vadd.f32 %v1340_v42, %v1296_v15  ;;  %v1381_v2 = vmax.f32 %v1379_v54, 0.0  ;;  %v1418_v9 = vstv %s3647_s2  ;;  %s3719_s2 = sld [smem:[#allocation2 + $0x59]] }
 0x141   : > { %v1382_v61 = vmax.f32 %v1380_v50, 0.0  ;;  %v1415_v60 = vadd.f32 %v1413_v0, %v1409_v53  ;;  %v1419_v51 = vmul.f32 %v3332_v59, %v1418_v9  ;;  %v1420_v41 = vmul.f32 %v3339_v56, %v1418_v9 }
 0x142   : > { %v1416_v10 = vadd.f32 %v1414_v1, %v1410_v62  ;;  %v1385_v40 = vmul.f32 %v1384_v24, %v1381_v2  ;;  %v1391_v48 = vmul.f32 %v1390_v23, %v1381_v2  ;;  %v1397_v12 = vmul.f32 %v1396_v33, %v1381_v2 }
 0x143   : > { %v1386_v46 = vmul.f32 %v1384_v24, %v1382_v61  ;;  %v1392_v11 = vmul.f32 %v1390_v23, %v1382_v61  ;;  %v1398_v13 = vmul.f32 %v1396_v33, %v1382_v61  ;;  %v1403_v14 = vmul.f32 %v1402_v37, %v1381_v2  ;;  %v3711_v33 = vld [vmem:[%s2907_s8 + $0x10] sm:$0xff] }
 0x144   : > { %v1404_v17 = vmul.f32 %v1402_v37, %v1382_v61  ;;  %v1387_v59 = vadd.f32 %v1385_v40, %v1341_v43  ;;  %v1393_v3 = vadd.f32 %v1391_v48, %v1347_v44  ;;  %v1424_v4 = vstv %s3654_s29  ;;  %s3726_s29 = sld [smem:[#allocation5 + $0x19]] }
 0x145   : > { %v1394_v56 = vadd.f32 %v1392_v11, %v1348_v47  ;;  %v1399_v18 = vadd.f32 %v1397_v12, %v1353_v49  ;;  %v1400_v5 = vadd.f32 %v1398_v13, %v1354_v45  ;;  %v1405_v16 = vadd.f32 %v1403_v14, %v1359_v58  ;;  %v3729_v47 = vld [vmem:[%s2907_s8 + $0x28] sm:$0xff]  ;;  %s3737_s8 = sld [smem:[#allocation7 + $0x66]] }
 0x146   : > { %v1406_v6 = vadd.f32 %v1404_v17, %v1360_v52  ;;  %v1388_v15 = vadd.f32 %v1386_v46, %v1342_v63  ;;  %v1421_v19 = vadd.f32 %v1419_v51, %v1415_v60  ;;  %v1422_v20 = vadd.f32 %v1420_v41, %v1416_v10 }
 0x147   : > { %v1430_v21 = vstv %s3656_s22  ;;  %v1436_v22 = vstv %s3660_s13  ;;  %v1442_v25 = vstv %s3662_s20  ;;  %v1454_v7 = vstv %s3666_s14  ;;  %s3733_s22 = sld [smem:[#allocation7 + $0x64]] }
 0x148   : > { %v1458_v26 = vstv %s3672_s23  ;;  %v1425_v8 = vadd.f32 %v1424_v4, %v1421_v19  ;;  %v1426_v27 = vadd.f32 %v1424_v4, %v1422_v20  ;;  %v1455_v24 = vmul.f32 %v3700_v29, %v1454_v7  ;;  %s3735_s13 = sld [smem:[#allocation7 + $0x65]] }
 0x149   : > { %v1456_v30 = vmul.f32 %v3704_v28, %v1454_v7  ;;  %v1448_v23 = vstv %s3675_s9  ;;  %v1459_v34 = vmul.f32 %v3711_v33, %v1458_v26  ;;  %v1460_v36 = vmul.f32 %v3715_v35, %v1458_v26  ;;  %s3740_s20 = sld [smem:[#allocation7 + $0x67]] }
 0x14a   : > { %v1464_v37 = vstv %s3679_s18  ;;  %v1427_v32 = vmax.f32 %v1425_v8, 0.0  ;;  %v1428_v38 = vmax.f32 %v1426_v27, 0.0  ;;  %v1470_v42 = vstv %s3681_s21  ;;  %s3747_s14 = sld [smem:[#allocation2 + $0x1a]] }
 0x14b   : > { %v1465_v39 = vmul.f32 %v3722_v31, %v1464_v37  ;;  %v1461_v43 = vadd.f32 %v1459_v34, %v1455_v24  ;;  %v1462_v44 = vadd.f32 %v1460_v36, %v1456_v30  ;;  %v1466_v49 = vmul.f32 %v3729_v47, %v1464_v37  ;;  %s3751_s23 = sld [smem:[#allocation2 + $0x3a]] }
 0x14c   : > { %v1476_v45 = vstv %s3683_s15  ;;  %v1431_v58 = vmul.f32 %v1430_v21, %v1427_v32  ;;  %v1432_v52 = vmul.f32 %v1430_v21, %v1428_v38  ;;  %v1437_v54 = vmul.f32 %v1436_v22, %v1427_v32  ;;  %s3757_s9 = sld [smem:[#allocation2 + $0x5a]] }
 0x14d   : > { %v1438_v50 = vmul.f32 %v1436_v22, %v1428_v38  ;;  %v1443_v55 = vmul.f32 %v1442_v25, %v1427_v32  ;;  %v1444_v57 = vmul.f32 %v1442_v25, %v1428_v38  ;;  %v1449_v53 = vmul.f32 %v1448_v23, %v1427_v32  ;;  %s3761_s18 = sld [smem:[#allocation5 + $0x1a]] }
 0x14e   : > { %v1450_v62 = vmul.f32 %v1448_v23, %v1428_v38  ;;  %v1433_v0 = vadd.f32 %v1431_v58, %v1387_v59  ;;  %v1439_v1 = vadd.f32 %v1437_v54, %v1393_v3  ;;  %v1482_v2 = vstv %s3686_s17  ;;  %s3765_s21 = sld [smem:[#allocation7 + $0x68]] }
 0x14f   : > { %v1440_v63 = vadd.f32 %v1438_v50, %v1394_v56  ;;  %v1445_v61 = vadd.f32 %v1443_v55, %v1399_v18  ;;  %v1446_v9 = vadd.f32 %v1444_v57, %v1400_v5  ;;  %v1451_v60 = vadd.f32 %v1449_v53, %v1405_v16  ;;  %s3768_s15 = sld [smem:[#allocation7 + $0x69]] }
 0x150   : > { %v1452_v10 = vadd.f32 %v1450_v62, %v1406_v6  ;;  %v1434_v51 = vadd.f32 %v1432_v52, %v1388_v15  ;;  %v1467_v41 = vadd.f32 %v1465_v39, %v1461_v43  ;;  %v1468_v40 = vadd.f32 %v1466_v49, %v1462_v44  ;;  %s3770_s17 = sld [smem:[#allocation7 + $0x6a]] }
 0x151   : > { %v1488_v46 = vstv %s3688_s16  ;;  %v1494_v48 = vstv %s3691_s0  ;;  %v1500_v11 = vstv %s3697_s19  ;;  %v1504_v12 = vstv %s3707_s1  ;;  %s3772_s16 = sld [smem:[#allocation7 + $0x6b]] }
 0x152   : > { %v1510_v13 = vstv %s3719_s2  ;;  %v1471_v14 = vadd.f32 %v1470_v42, %v1467_v41  ;;  %v1472_v17 = vadd.f32 %v1470_v42, %v1468_v40  ;;  %v1501_v59 = vmul.f32 %v3700_v29, %v1500_v11  ;;  %s3780_s0 = sld [smem:[#allocation2 + $0x1b]] }
 0x153   : > { %v1502_v3 = vmul.f32 %v3704_v28, %v1500_v11  ;;  %v1505_v56 = vmul.f32 %v3711_v33, %v1504_v12  ;;  %v1506_v4 = vmul.f32 %v3715_v35, %v1504_v12  ;;  %v1511_v18 = vmul.f32 %v3722_v31, %v1510_v13  ;;  %s3783_s19 = sld [smem:[#allocation2 + $0x3b]] }
 0x154   : > { %v1516_v5 = vstv %s3726_s29  ;;  %v1473_v16 = vmax.f32 %v1471_v14, 0.0  ;;  %v1474_v6 = vmax.f32 %v1472_v17, 0.0  ;;  %v1512_v15 = vmul.f32 %v3729_v47, %v1510_v13  ;;  %s3789_s1 = sld [smem:[#allocation2 + $0x5b]] }
 0x155   : > { %v1522_v19 = vstv %s3733_s22  ;;  %v1507_v20 = vadd.f32 %v1505_v56, %v1501_v59  ;;  %v1508_v21 = vadd.f32 %v1506_v4, %v1502_v3  ;;  %v1528_v22 = vstv %s3735_s13  ;;  %s3796_s2 = sld [smem:[#allocation5 + $0x1b]] }
 0x156   : > { %v1534_v25 = vstv %s3737_s8  ;;  %v1477_v7 = vmul.f32 %v1476_v45, %v1473_v16  ;;  %v1483_v26 = vmul.f32 %v1482_v2, %v1473_v16  ;;  %v1484_v8 = vmul.f32 %v1482_v2, %v1474_v6  ;;  %s3798_s29 = sld [smem:[#allocation7 + $0x6c]] }
 0x157   : > { %v1540_v27 = vstv %s3740_s20  ;;  %v1489_v24 = vmul.f32 %v1488_v46, %v1473_v16  ;;  %v1490_v30 = vmul.f32 %v1488_v46, %v1474_v6  ;;  %v1495_v23 = vmul.f32 %v1494_v48, %v1473_v16  ;;  %s3802_s13 = sld [smem:[#allocation7 + $0x6d]] }
 0x158   : > { %v1496_v34 = vmul.f32 %v1494_v48, %v1474_v6  ;;  %v1478_v36 = vmul.f32 %v1476_v45, %v1474_v6  ;;  %v1479_v37 = vadd.f32 %v1477_v7, %v1433_v0  ;;  %v1485_v32 = vadd.f32 %v1483_v26, %v1439_v1  ;;  %s3804_s8 = sld [smem:[#allocation7 + $0x6e]] }
 0x159   : > { %v1486_v38 = vadd.f32 %v1484_v8, %v1440_v63  ;;  %v1491_v39 = vadd.f32 %v1489_v24, %v1445_v61  ;;  %v1492_v42 = vadd.f32 %v1490_v30, %v1446_v9  ;;  %v1497_v43 = vadd.f32 %v1495_v23, %v1451_v60  ;;  %s3808_s20 = sld [smem:[#allocation2 + $0x1c]] }
 0x15a   : > { %v1498_v44 = vadd.f32 %v1496_v34, %v1452_v10  ;;  %v1513_v49 = vadd.f32 %v1511_v18, %v1507_v20  ;;  %v1514_v58 = vadd.f32 %v1512_v15, %v1508_v21  ;;  %v1546_v52 = vstv %s3747_s14  ;;  %s3814_s22 = sld [smem:[#allocation2 + $0x3c]] }
 0x15b   : > { %v1550_v54 = vstv %s3751_s23  ;;  %v1547_v50 = vmul.f32 %v3700_v29, %v1546_v52  ;;  %v1548_v55 = vmul.f32 %v3704_v28, %v1546_v52  ;;  %v1480_v53 = vadd.f32 %v1478_v36, %v1434_v51  ;;  %s3817_s14 = sld [smem:[#allocation7 + $0x6f]] }
 0x15c   : > { %v1551_v45 = vmul.f32 %v3711_v33, %v1550_v54  ;;  %v1552_v57 = vmul.f32 %v3715_v35, %v1550_v54  ;;  %v1517_v62 = vadd.f32 %v1516_v5, %v1513_v49  ;;  %v1518_v0 = vadd.f32 %v1516_v5, %v1514_v58  ;;  %s3821_s23 = sld [smem:[#allocation2 + $0x5c]] }
 0x15d   : > { %v1556_v1 = vstv %s3757_s9  ;;  %v1562_v41 = vstv %s3761_s18  ;;  %v1568_v40 = vstv %s3765_s21  ;;  %v1574_v48 = vstv %s3768_s15  ;;  %s3823_s9 = sld [smem:[#allocation5 + $0x1c]] }
 0x15e   : > { %v1553_v63 = vadd.f32 %v1551_v45, %v1547_v50  ;;  %v1554_v2 = vadd.f32 %v1552_v57, %v1548_v55  ;;  %v1557_v61 = vmul.f32 %v3722_v31, %v1556_v1  ;;  %v1558_v9 = vmul.f32 %v3729_v47, %v1556_v1  ;;  %s3825_s18 = sld [smem:[#allocation7 + $0x70]] }
 0x15f   : > { %v1519_v60 = vmax.f32 %v1517_v62, 0.0  ;;  %v1520_v10 = vmax.f32 %v1518_v0, 0.0  ;;  %v1580_v11 = vstv %s3770_s17  ;;  %v1586_v17 = vstv %s3772_s16  ;;  %s3828_s21 = sld [smem:[#allocation7 + $0x71]] }
 0x160   : > { %v1559_v51 = vadd.f32 %v1557_v61, %v1553_v63  ;;  %v1560_v46 = vadd.f32 %v1558_v9, %v1554_v2  ;;  %v1592_v26 = vstv %s3780_s0  ;;  %v1596_v8 = vstv %s3783_s19  ;;  %s3830_s15 = sld [smem:[#allocation7 + $0x72]] }
 0x161   : > { %v1523_v12 = vmul.f32 %v1522_v19, %v1519_v60  ;;  %v1529_v13 = vmul.f32 %v1528_v22, %v1519_v60  ;;  %v1530_v14 = vmul.f32 %v1528_v22, %v1520_v10  ;;  %v1535_v59 = vmul.f32 %v1534_v25, %v1519_v60  ;;  %s3832_s17 = sld [smem:[#allocation7 + $0x73]] }
 0x162   : > { %v1536_v3 = vmul.f32 %v1534_v25, %v1520_v10  ;;  %v1541_v56 = vmul.f32 %v1540_v27, %v1519_v60  ;;  %v1542_v4 = vmul.f32 %v1540_v27, %v1520_v10  ;;  %v1524_v18 = vmul.f32 %v1522_v19, %v1520_v10  ;;  %s3838_s16 = sld [smem:[#allocation2 + $0x1d]] }
 0x163   : > { %v1525_v5 = vadd.f32 %v1523_v12, %v1479_v37  ;;  %v1531_v16 = vadd.f32 %v1529_v13, %v1485_v32  ;;  %v1532_v6 = vadd.f32 %v1530_v14, %v1486_v38  ;;  %v1537_v15 = vadd.f32 %v1535_v59, %v1491_v39  ;;  %s3842_s0 = sld [smem:[#allocation2 + $0x3d]] }
 0x164   : > { %v1538_v20 = vadd.f32 %v1536_v3, %v1492_v42  ;;  %v1543_v21 = vadd.f32 %v1541_v56, %v1497_v43  ;;  %v1544_v22 = vadd.f32 %v1542_v4, %v1498_v44  ;;  %v1563_v25 = vadd.f32 %v1562_v41, %v1559_v51  ;;  %s3848_s19 = sld [smem:[#allocation2 + $0x5d]] }
 0x165   : > { %v1564_v7 = vadd.f32 %v1562_v41, %v1560_v46  ;;  %v1593_v19 = vmul.f32 %v3700_v29, %v1592_v26  ;;  %v1594_v27 = vmul.f32 %v3704_v28, %v1592_v26  ;;  %v1597_v24 = vmul.f32 %v3711_v33, %v1596_v8 }
 0x166   : > { %v1598_v30 = vmul.f32 %v3715_v35, %v1596_v8  ;;  %v1526_v23 = vadd.f32 %v1524_v18, %v1480_v53  ;;  %v1565_v34 = vmax.f32 %v1563_v25, 0.0  ;;  %v1602_v37 = vstv %s3789_s1  ;;  %s3852_s1 = sld [smem:[#allocation5 + $0x1d]] }
 0x167   : > { %v1566_v36 = vmax.f32 %v1564_v7, 0.0  ;;  %v1599_v32 = vadd.f32 %v1597_v24, %v1593_v19  ;;  %v1603_v39 = vmul.f32 %v3722_v31, %v1602_v37  ;;  %v1604_v42 = vmul.f32 %v3729_v47, %v1602_v37 }
 0x168   : > { %v1600_v38 = vadd.f32 %v1598_v30, %v1594_v27  ;;  %v1569_v43 = vmul.f32 %v1568_v40, %v1565_v34  ;;  %v1575_v49 = vmul.f32 %v1574_v48, %v1565_v34  ;;  %v1581_v52 = vmul.f32 %v1580_v11, %v1565_v34 }
 0x169   : > { %v1570_v44 = vmul.f32 %v1568_v40, %v1566_v36  ;;  %v1576_v58 = vmul.f32 %v1574_v48, %v1566_v36  ;;  %v1582_v54 = vmul.f32 %v1580_v11, %v1566_v36  ;;  %v1587_v50 = vmul.f32 %v1586_v17, %v1565_v34 }
 0x16a   : > { %v1588_v55 = vmul.f32 %v1586_v17, %v1566_v36  ;;  %v1577_v45 = vadd.f32 %v1575_v49, %v1531_v16  ;;  %v1608_v53 = vstv %s3796_s2  ;;  %v1583_v62 = vadd.f32 %v1581_v52, %v1537_v15  ;;  %s3856_s2 = sld [smem:[#allocation7 + $0x74]] }
 0x16b   : > { %v1578_v57 = vadd.f32 %v1576_v58, %v1532_v6  ;;  %v1584_v0 = vadd.f32 %v1582_v54, %v1538_v20  ;;  %v1589_v1 = vadd.f32 %v1587_v50, %v1543_v21  ;;  %v1571_v2 = vadd.f32 %v1569_v43, %v1525_v5 }
 0x16c   : > { %v1590_v63 = vadd.f32 %v1588_v55, %v1544_v22  ;;  %v1572_v61 = vadd.f32 %v1570_v44, %v1526_v23  ;;  %v1605_v9 = vadd.f32 %v1603_v39, %v1599_v32  ;;  %v1606_v60 = vadd.f32 %v1604_v42, %v1600_v38 }
 0x16d   : > { %v1614_v10 = vstv %s3798_s29  ;;  %v1620_v41 = vstv %s3802_s13  ;;  %v1638_v40 = vstv %s3808_s20  ;;  %v1642_v51 = vstv %s3814_s22  ;;  %s3858_s29 = sld [smem:[#allocation7 + $0x75]] }
 0x16e   : > { %v1609_v46 = vadd.f32 %v1608_v53, %v1605_v9  ;;  %v1610_v48 = vadd.f32 %v1608_v53, %v1606_v60  ;;  %v1639_v11 = vmul.f32 %v3700_v29, %v1638_v40  ;;  %v1640_v12 = vmul.f32 %v3704_v28, %v1638_v40  ;;  %s3860_s13 = sld [smem:[#allocation7 + $0x76]] }
 0x16f   : > { %v1626_v13 = vstv %s3804_s8  ;;  %v1643_v14 = vmul.f32 %v3711_v33, %v1642_v51  ;;  %v1644_v17 = vmul.f32 %v3715_v35, %v1642_v51  ;;  %v1648_v59 = vstv %s3821_s23  ;;  %s3864_s8 = sld [smem:[#allocation7 + $0x77]] }
 0x170   : > { %v1611_v3 = vmax.f32 %v1609_v46, 0.0  ;;  %v1612_v56 = vmax.f32 %v1610_v48, 0.0  ;;  %v1632_v4 = vstv %s3817_s14  ;;  %v1654_v18 = vstv %s3823_s9  ;;  %s3872_s20 = sld [smem:[#allocation2 + $0x1e]] }
 0x171   : > { %v1645_v5 = vadd.f32 %v1643_v14, %v1639_v11  ;;  %v1646_v16 = vadd.f32 %v1644_v17, %v1640_v12  ;;  %v1649_v6 = vmul.f32 %v3722_v31, %v1648_v59  ;;  %v1650_v15 = vmul.f32 %v3729_v47, %v1648_v59  ;;  %s3876_s22 = sld [smem:[#allocation2 + $0x3e]] }
 0x172   : > { %v1615_v20 = vmul.f32 %v1614_v10, %v1611_v3  ;;  %v1616_v21 = vmul.f32 %v1614_v10, %v1612_v56  ;;  %v1621_v22 = vmul.f32 %v1620_v41, %v1611_v3  ;;  %v1622_v25 = vmul.f32 %v1620_v41, %v1612_v56  ;;  %s3882_s14 = sld [smem:[#allocation2 + $0x5e]] }
 0x173   : > { %v1627_v7 = vmul.f32 %v1626_v13, %v1611_v3  ;;  %v1628_v26 = vmul.f32 %v1626_v13, %v1612_v56  ;;  %v1633_v8 = vmul.f32 %v1632_v4, %v1611_v3  ;;  %v1634_v19 = vmul.f32 %v1632_v4, %v1612_v56  ;;  %s3886_s23 = sld [smem:[#allocation5 + $0x1e]] }
 0x174   : > { %v1623_v27 = vadd.f32 %v1621_v22, %v1577_v45  ;;  %v1624_v24 = vadd.f32 %v1622_v25, %v1578_v57  ;;  %v1660_v30 = vstv %s3825_s18  ;;  %v1666_v23 = vstv %s3828_s21  ;;  %s3890_s9 = sld [smem:[#allocation7 + $0x78]] }
 0x175   : > { %v1629_v34 = vadd.f32 %v1627_v7, %v1583_v62  ;;  %v1630_v36 = vadd.f32 %v1628_v26, %v1584_v0  ;;  %v1635_v37 = vadd.f32 %v1633_v8, %v1589_v1  ;;  %v1636_v32 = vadd.f32 %v1634_v19, %v1590_v63  ;;  %s3894_s18 = sld [smem:[#allocation7 + $0x79]] }
 0x176   : > { %v1617_v38 = vadd.f32 %v1615_v20, %v1571_v2  ;;  %v3866_v39 = vadd.f32 %v1616_v21, %v1572_v61  ;;  %v1651_v42 = vadd.f32 %v1649_v6, %v1645_v5  ;;  %v1652_v43 = vadd.f32 %v1650_v15, %v1646_v16  ;;  %s3896_s21 = sld [smem:[#allocation7 + $0x7a]] }
 0x177   : > { %v1672_v44 = vstv %s3830_s15  ;;  %v1684_v49 = vstv %s3838_s16  ;;  %v1688_v58 = vstv %s3842_s0  ;;  %v1694_v52 = vstv %s3848_s19  ;;  %s3898_s15 = sld [smem:[#allocation7 + $0x7b]] }
 0x178   : > { %v1655_v54 = vadd.f32 %v1654_v18, %v1651_v42  ;;  %v1656_v50 = vadd.f32 %v1654_v18, %v1652_v43  ;;  %v1685_v55 = vmul.f32 %v3700_v29, %v1684_v49  ;;  %v1686_v45 = vmul.f32 %v3704_v28, %v1684_v49  ;;  %s3909_s16 = sld [smem:[#allocation2 + $0x3f]] }
 0x179   : > { %v1678_v57 = vstv %s3832_s17  ;;  %v1689_v53 = vmul.f32 %v3711_v33, %v1688_v58  ;;  %v1690_v62 = vmul.f32 %v3715_v35, %v1688_v58  ;;  %v1700_v0 = vstv %s3852_s1  ;;  %s3906_s17 = sld [smem:[#allocation2 + $0x1f]] }
 0x17a   : > { %v1657_v1 = vmax.f32 %v1655_v54, 0.0  ;;  %v1658_v63 = vmax.f32 %v1656_v50, 0.0  ;;  %v1695_v2 = vmul.f32 %v3722_v31, %v1694_v52  ;;  %v1696_v61 = vmul.f32 %v3729_v47, %v1694_v52  ;;  %s3915_s0 = sld [smem:[#allocation2 + $0x5f]] }
 0x17b   : > { %v1691_v9 = vadd.f32 %v1689_v53, %v1685_v55  ;;  %v1692_v60 = vadd.f32 %v1690_v62, %v1686_v45  ;;  %v1706_v10 = vstv %s3856_s2  ;;  %v1712_v41 = vstv %s3858_s29  ;;  %s3919_s19 = sld [smem:[#allocation5 + $0x1f]] }
 0x17c   : > { %v1667_v40 = vmul.f32 %v1666_v23, %v1657_v1  ;;  %v1668_v51 = vmul.f32 %v1666_v23, %v1658_v63  ;;  %v1718_v46 = vstv %s3860_s13  ;;  %v1724_v48 = vstv %s3864_s8  ;;  %s3929_s1 = sld [smem:[#allocation7 + $0x7c]] }
 0x17d   : > { %v1673_v11 = vmul.f32 %v1672_v44, %v1657_v1  ;;  %v1674_v12 = vmul.f32 %v1672_v44, %v1658_v63  ;;  %v1679_v13 = vmul.f32 %v1678_v57, %v1657_v1  ;;  %v1680_v14 = vmul.f32 %v1678_v57, %v1658_v63  ;;  %s3932_s2 = sld [smem:[#allocation7 + $0x7d]] }
 0x17e   : > { %v1661_v17 = vmul.f32 %v1660_v30, %v1657_v1  ;;  %v1662_v59 = vmul.f32 %v1660_v30, %v1658_v63  ;;  %v1669_v3 = vadd.f32 %v1667_v40, %v1623_v27  ;;  %v1670_v56 = vadd.f32 %v1668_v51, %v1624_v24  ;;  %s3935_s29 = sld [smem:[#allocation7 + $0x7e]] }
 0x17f   : > { %v1675_v4 = vadd.f32 %v1673_v11, %v1629_v34  ;;  %v1676_v18 = vadd.f32 %v1674_v12, %v1630_v36  ;;  %v1681_v5 = vadd.f32 %v1679_v13, %v1635_v37  ;;  %v1682_v16 = vadd.f32 %v1680_v14, %v1636_v32  ;;  %s3939_s13 = sld [smem:[#allocation7 + $0x7f]] }
 0x180   : > { %v1697_v6 = vadd.f32 %v1695_v2, %v1691_v9  ;;  %v1698_v15 = vadd.f32 %v1696_v61, %v1692_v60  ;;  %v1730_v20 = vstv %s3872_s20  ;;  %v1734_v21 = vstv %s3876_s22 }
 0x181   : > { %v1731_v22 = vmul.f32 %v3700_v29, %v1730_v20  ;;  %v1732_v25 = vmul.f32 %v3704_v28, %v1730_v20  ;;  %v1735_v7 = vmul.f32 %v3711_v33, %v1734_v21  ;;  %v1736_v26 = vmul.f32 %v3715_v35, %v1734_v21 }
 0x182   : > { %v1663_v8 = vadd.f32 %v1661_v17, %v1617_v38  ;;  %v1701_v19 = vadd.f32 %v1700_v0, %v1697_v6  ;;  %v1702_v27 = vadd.f32 %v1700_v0, %v1698_v15  ;;  %v1740_v24 = vstv %s3882_s14 }
 0x183   : > { %v1737_v30 = vadd.f32 %v1735_v7, %v1731_v22  ;;  %v1738_v23 = vadd.f32 %v1736_v26, %v1732_v25  ;;  %v1741_v34 = vmul.f32 %v3722_v31, %v1740_v24  ;;  %v1742_v36 = vmul.f32 %v3729_v47, %v1740_v24 }
 0x184   : > { %v1664_v37 = vadd.f32 %v1662_v59, %v3866_v39  ;;  %v1703_v32 = vmax.f32 %v1701_v19, 0.0  ;;  %v1704_v42 = vmax.f32 %v1702_v27, 0.0  ;;  %v1746_v38 = vstv %s3886_s23  ;;  %s321_s23 = sand.u32 1, %s2712_s25  }
 0x185   : > { %v1743_v43 = vadd.f32 %v1741_v34, %v1737_v30  ;;  %v1744_v44 = vadd.f32 %v1742_v36, %v1738_v23  ;;  %v1752_v49 = vstv %s3890_s9  ;;  %v1758_v58 = vstv %s3894_s18  ;;  %s2174_s9 = sshll.u32 %s321_s23, 2  ;;  %s2439_s18 = sshll.u32 %s2789_s28, 6 }
 0x186   : > { %v1713_v52 = vmul.f32 %v1712_v41, %v1703_v32  ;;  %v1714_v54 = vmul.f32 %v1712_v41, %v1704_v42  ;;  %v1764_v50 = vstv %s3896_s21  ;;  %v1770_v55 = vstv %s3898_s15  ;;  %s323_s21 = scalar_lea.vmem [#allocation10], %s2174_s9 }
 0x187   : > { %v1719_v45 = vmul.f32 %v1718_v46, %v1703_v32  ;;  %v1720_v57 = vmul.f32 %v1718_v46, %v1704_v42  ;;  %v1725_v39 = vmul.f32 %v1724_v48, %v1703_v32  ;;  %v1726_v53 = vmul.f32 %v1724_v48, %v1704_v42  ;;  %s2062_s15 = sshll.u32 %s323_s21, 4  ;;  %s2063_s15 = int_to_ptr.vmem [resolvable:$true] %s2062_s15 }
 0x188   : > { %v1707_v62 = vmul.f32 %v1706_v10, %v1703_v32  ;;  %v1708_v0 = vmul.f32 %v1706_v10, %v1704_v42  ;;  %v1715_v1 = vadd.f32 %v1713_v52, %v1669_v3  ;;  %v1716_v63 = vadd.f32 %v1714_v54, %v1670_v56  ;;  %s2648_s28 = scalar_lea.vmem %s2063_s15, 64 }
 0x189   : > { %v1721_v2 = vadd.f32 %v1719_v45, %v1675_v4  ;;  %v1722_v61 = vadd.f32 %v1720_v57, %v1676_v18  ;;  %v1727_v9 = vadd.f32 %v1725_v39, %v1681_v5  ;;  %v1728_v60 = vadd.f32 %v1726_v53, %v1682_v16  ;;  %p2649_p8 = scmp.ne.s32.totalorder %s2063_s15, %s2648_s28 }
 0x18a   : > { %v1747_v40 = vadd.f32 %v1746_v38, %v1743_v43  ;;  %v1748_v51 = vadd.f32 %v1746_v38, %v1744_v44  ;;  %v1776_v41 = vstv %s3906_s17  ;;  %v1780_v11 = vstv %s3909_s16 }
 0x18b   : > { %v1777_v12 = vmul.f32 %v3700_v29, %v1776_v41  ;;  %v1778_v46 = vmul.f32 %v3704_v28, %v1776_v41  ;;  %v1781_v48 = vmul.f32 %v3711_v33, %v1780_v11  ;;  %v1782_v10 = vmul.f32 %v3715_v35, %v1780_v11  ;;  %p2650_p13 = pnand %p2649_p8, %p4033_p11 }
 0x18c   : > { %v1709_v13 = vadd.f32 %v1707_v62, %v1663_v8  ;;  %v1749_v14 = vmax.f32 %v1747_v40, 0.0  ;;  %v1750_v17 = vmax.f32 %v1748_v51, 0.0  ;;  %v1786_v59 = vstv %s3915_s0  ;;  %s3968_s0 = scalar_lea.hbm %s4012_s7, %s2439_s18 }
 0x18d   : > { %v1710_v3 = vadd.f32 %v1708_v0, %v1664_v37  ;;  %v1783_v56 = vadd.f32 %v1781_v48, %v1777_v12  ;;  %v1784_v4 = vadd.f32 %v1782_v10, %v1778_v46  ;;  %v1792_v18 = vstv %s3919_s19  ;;  %s2049_s19 = scalar_lea.sflag [#allocation3], %s321_s23  ;;  %p2651_p1 = pneg %p2650_p13 }
 0x18e   : > { %v1759_v29 = vmul.f32 %v1758_v58, %v1749_v14  ;;  %v1760_v28 = vmul.f32 %v1758_v58, %v1750_v17  ;;  %v1787_v33 = vmul.f32 %v3722_v31, %v1786_v59  ;;  %v1788_v35 = vmul.f32 %v3729_v47, %v1786_v59  ;;  %v1907_v47 = vld [vmem:[%s4011_s6] sm:$0xff]  ;;  %v1897_v59 = vpop.permute.xlu0 %1896 }
 0x18f   : > { %v1765_v5 = vmul.f32 %v1764_v50, %v1749_v14  ;;  %v1766_v16 = vmul.f32 %v1764_v50, %v1750_v17  ;;  %v1771_v6 = vmul.f32 %v1770_v55, %v1749_v14  ;;  %v1772_v15 = vmul.f32 %v1770_v55, %v1750_v17  ;;  %2450 = vmatprep.mubr.msk.f32.mxu0 %vm1909_vm0, %v1907_v47 }
 0x190   : > { %v1753_v20 = vmul.f32 %v1752_v49, %v1749_v14  ;;  %v1754_v21 = vmul.f32 %v1752_v49, %v1750_v17  ;;  %v1761_v22 = vadd.f32 %v1759_v29, %v1715_v1  ;;  %v1762_v25 = vadd.f32 %v1760_v28, %v1716_v63 }
 0x191   : > { %v1767_v7 = vadd.f32 %v1765_v5, %v1721_v2  ;;  %v1768_v26 = vadd.f32 %v1766_v16, %v1722_v61  ;;  %v1773_v8 = vadd.f32 %v1771_v6, %v1727_v9  ;;  %v1774_v31 = vadd.f32 %v1772_v15, %v1728_v60 }
 0x192   : > { %v1789_v19 = vadd.f32 %v1787_v33, %v1783_v56  ;;  %v1790_v27 = vadd.f32 %v1788_v35, %v1784_v4  ;;  %v1755_v23 = vadd.f32 %v1753_v20, %v1709_v13  ;;  %v1756_v34 = vadd.f32 %v1754_v21, %v1710_v3  ;;  %v1892_v15 = vpop.permute.xlu0 %1891 }
 0x193   : > { %v1798_v36 = vstv %s3929_s1  ;;  %v1804_v37 = vstv %s3932_s2  ;;  %v1810_v38 = vstv %s3935_s29  ;;  %v1816_v43 = vstv %s3939_s13  ;;  %s2727_s1 = smov [#allocation10]  }
 0x194   : > { %v1793_v24 = vadd.f32 %v1792_v18, %v1789_v19  ;;  %v1794_v30 = vadd.f32 %v1792_v18, %v1790_v27  ;;  %s2652_s2 = sshll.u32 %s2727_s1, 4  ;;  %s2653_s2 = int_to_ptr.vmem [resolvable:$false] %s2652_s2 }
 0x195   : > { %s2654_s29 = scalar_lea.vmem %s2653_s2, 128  ;;  %p2655_p2 = scmp.lt.s32.totalorder %s2063_s15, %s2653_s2 }
 0x196   : > { %v1795_v32 = vmax.f32 %v1793_v24, 0.0  ;;  %v1796_v42 = vmax.f32 %v1794_v30, 0.0  ;;  %p2656_p3 = scmp.lt.s32.totalorder %s2654_s29, %s2648_s28 }
 0x198   : > { %v1799_v44 = vmul.f32 %v1798_v36, %v1795_v32  ;;  %v1800_v49 = vmul.f32 %v1798_v36, %v1796_v42  ;;  %v1805_v58 = vmul.f32 %v1804_v37, %v1795_v32  ;;  %v1806_v52 = vmul.f32 %v1804_v37, %v1796_v42  ;;  %p2657_p4 = por %p2656_p3, %p2655_p2 }
 0x199   : > { %v1811_v54 = vmul.f32 %v1810_v38, %v1795_v32  ;;  %v1812_v50 = vmul.f32 %v1810_v38, %v1796_v42  ;;  %v1817_v55 = vmul.f32 %v1816_v43, %v1795_v32  ;;  %v1818_v45 = vmul.f32 %v1816_v43, %v1796_v42 }
 0x19a   : > { %v1801_v57 = vadd.f32 %v1799_v44, %v1755_v23  ;;  %v1802_v39 = vadd.f32 %v1800_v49, %v1756_v34  ;;  %v1807_v53 = vadd.f32 %v1805_v58, %v1761_v22  ;;  %v1808_v62 = vadd.f32 %v1806_v52, %v1762_v25  ;;  %v1908_v25 = vld [vmem:[%s4011_s6 + $0x8] sm:$0xff]  ;;  %p2658_p9 = pnand %p2657_p4, %p2651_p1 }
 0x19b   : > { %v1813_v0 = vadd.f32 %v1811_v54, %v1767_v7  ;;  %v1814_v1 = vadd.f32 %v1812_v50, %v1768_v26  ;;  %v1819_v63 = vadd.f32 %v1817_v55, %v1773_v8  ;;  %v1820_v2 = vadd.f32 %v1818_v45, %v1774_v31 }
 0x19c   : > { %v1823_v61 = vmin.f32 %v1801_v57, 20.0  ;;  %v1824_v9 = vmin.f32 %v1802_v39, 20.0  ;;  %vm1821_vm2 = vcmp.gt.f32.partialorder %v1801_v57, 20.0  ;;  %vm1822_vm4 = vcmp.gt.f32.partialorder %v1802_v39, 20.0 }
 0x19d   : > { %v1849_v7 = vsub.f32 0.0, %v1807_v53  ;;  %v1850_v26 = vsub.f32 0.0, %v1808_v62  ;;  %v1862_v8 = vsub.f32 0.0, %v1814_v1  ;;  %v1874_v19 = vsub.f32 0.0, %v1820_v2 }
 0x19e   : > { %v1825_v60 = vmul.f32 1.442695, %v1823_v61  ;;  %v1827_v40 = vmul.f32 1.442695, %v1824_v9  ;;  %v1861_v27 = vsub.f32 0.0, %v1813_v0  ;;  %v1873_v30 = vsub.f32 0.0, %v1819_v63 }
 0x19f   : > { %v1851_v31 = vmul.f32 1.442695, %v1849_v7  ;;  %v1853_v47 = vmul.f32 1.442695, %v1850_v26  ;;  %v1865_v24 = vmul.f32 1.442695, %v1862_v8 }
 0x1a0   : > { %2536 = vpow2.f32 %v1825_v60  ;;  %v1877_v23 = vmul.f32 1.442695, %v1874_v19  ;;  %v1863_v34 = vmul.f32 1.442695, %v1861_v27  ;;  %v1875_v36 = vmul.f32 1.442695, %v1873_v30 }
 0x1a1   : > { %2538 = vpow2.f32 %v1827_v40 }
 0x1ad   : > { %v2537_v51 = vpop.eup %2536 }
 0x1ae   : > { %v2539_v41 = vpop.eup %2538  ;;  %v1829_v11 = vadd.f32 1.0, %v2537_v51  ;;  %v1832_v46 = vmul.f32 -0.5, %v2537_v51  ;;  %v1835_v13 = vand.u32 2147483647, %v2537_v51 }
 0x1af   : > { %v1838_v12 = vadd.f32 1.0, %v2539_v41  ;;  %v1841_v48 = vmul.f32 -0.5, %v2539_v41  ;;  %v1844_v17 = vand.u32 2147483647, %v2539_v41 }
 0x1b0   : > { %2540 = vlog2.f32 %v1829_v11  ;;  %v1833_v10 = vadd.f32 1.0, %v1832_v46  ;;  %vm1836_vm1 = vcmp.lt.f32.partialorder %v1835_v13, 0.0004427343 }
 0x1b1   : > { %2542 = vlog2.f32 %v1838_v12  ;;  %v1842_v14 = vadd.f32 1.0, %v1841_v48  ;;  %vm1845_vm3 = vcmp.lt.f32.partialorder %v1844_v17, 0.0004427343 }
 0x1b2   : > { %v1834_v3 = vmul.f32 %v2537_v51, %v1833_v10  ;;  %2544 = vpow2.f32 %v1851_v31 }
 0x1b3   : > { %v1843_v4 = vmul.f32 %v2539_v41, %v1842_v14  ;;  %2546 = vpow2.f32 %v1853_v47 }
 0x1b4   : > { %2548 = vpow2.f32 %v1865_v24 }
 0x1b5   : > { %2550 = vpow2.f32 %v1877_v23 }
 0x1b6   : > { %2552 = vpow2.f32 %v1863_v34 }
 0x1b7   : > { %2554 = vpow2.f32 %v1875_v36 }
 0x1bd   : > { %v2541_v56 = vpop.eup %2540 }
 0x1be   : > { %v2543_v18 = vpop.eup %2542  ;;  %v1831_v29 = vmul.f32 0.6931472, %v2541_v56 }
 0x1bf   : > { %v1840_v28 = vmul.f32 0.6931472, %v2543_v18  ;;  %v2545_v37 = vpop.eup %2544 }
 0x1c0   : > { %v1837_v33 = vsel %vm1836_vm1, %v1834_v3, %v1831_v29  ;;  %v2547_v32 = vpop.eup %2546  ;;  %v1855_v38 = vadd.f32 1.0, %v2545_v37 }
 0x1c1   : > { %v1846_v35 = vsel %vm1845_vm3, %v1843_v4, %v1840_v28  ;;  %v1847_v5 = vsel %vm1821_vm2, %v1801_v57, %v1837_v33  ;;  %v2549_v42 = vpop.eup %2548  ;;  %v1856_v43 = vadd.f32 1.0, %v2547_v32 }
 0x1c2   : > { %v1848_v16 = vsel %vm1822_vm4, %v1802_v39, %v1846_v35  ;;  %v1885_v6 = vsub.f32 0.0, %v1847_v5  ;;  %v2551_v44 = vpop.eup %2550  ;;  %v1868_v58 = vadd.f32 1.0, %v2549_v42  ;;  %2556 = vrcp.f32 %v1855_v38 }
 0x1c3   : > { %v1886_v20 = vsub.f32 0.0, %v1848_v16  ;;  %v2553_v52 = vpop.eup %2552  ;;  %2558 = vrcp.f32 %v1856_v43  ;;  %v1880_v50 = vadd.f32 1.0, %v2551_v44 }
 0x1c4   : > { %v1899_v22 = vmul.f32 %v1892_v15, %v1885_v6  ;;  %v2555_v55 = vpop.eup %2554  ;;  %v1867_v45 = vadd.f32 1.0, %v2553_v52 }
 0x1c5   : > { %v1900_v21 = vmul.f32 %v1897_v59, %v1886_v20  ;;  %v1879_v53 = vadd.f32 1.0, %v2555_v55 }
 0x1c6   : > { %v1901_v54 = vmul.f32 1.442695, %v1899_v22 }
 0x1c7   : > { %2446 = vmatprep.subr.mxu0 %v1900_v21  ;;  %v1903_v49 = vmul.f32 1.442695, %v1900_v21 }
 0x1c8   : > { %2447 = vmatpush3.msra.mxu0 %v1900_v21 }
 0x1c9   : > { %2448 = vmatprep.subr.mxu0 %v1899_v22  ;;  %2560 = vpow2.f32 %v1903_v49 }
 0x1ca   : > { %2449 = vmatpush3.msra.mxu0 %v1899_v22  ;;  %2562 = vrcp.f32 %v1868_v58 }
 0x1cb   : > { %2451 = vmatmul.mubr.msk.f32.vlgmr.msra.gmra.mxu0 %vm1909_vm0, %v1908_v25  ;;  %2564 = vpow2.f32 %v1901_v54 }
 0x1cc   : > { %2566 = vrcp.f32 %v1880_v50 }
 0x1cf   : > { %v2557_v1 = vpop.eup %2556 }
 0x1d0   : > { %v2559_v63 = vpop.eup %2558 }
 0x1d6   : > { %v2561_v2 = vpop.eup %2560 }
 0x1d7   : > { %v2563_v61 = vpop.eup %2562  ;;  %v1906_v40 = vsub.f32 1.0, %v2561_v2 }
 0x1d8   : > { %v2565_v9 = vpop.eup %2564 }
 0x1d9   : > { %v2567_v60 = vpop.eup %2566  ;;  %v1905_v11 = vsub.f32 1.0, %v2565_v9 }
 0x28b   : > { %v2452_v57 = vpop.f32.mrf.mxu0 }
 0x28c   : > { %v1993_v39 = vmul.f32 1.442695, %v2452_v57 }
 0x28d   : > { %v1982_v62 = vpop.f32.mrf.mxu0 }
 0x28e   : > { %v1991_v0 = vmul.f32 1.442695, %v1982_v62  ;;  %2568 = vpow2.f32 %v1993_v39 }
 0x28f   : > { %2570 = vrcp.f32 %v1867_v45 }
 0x290   : > { %2572 = vpow2.f32 %v1991_v0 }
 0x291   : > { %2574 = vrcp.f32 %v1879_v53 }
 0x29b   : > { %v2569_v51 = vpop.eup %2568 }
 0x29c   : > { %v2571_v41 = vpop.eup %2570  ;;  %v1996_v12 = vmul.f32 %v2569_v51, %v1906_v40 }
 0x29d   : > { %v2573_v46 = vpop.eup %2572 }
 0x29e   : > { %v2575_v48 = vpop.eup %2574  ;;  %v1995_v10 = vmul.f32 %v2573_v46, %v1905_v11  ;;  %v1998_v13 = vmul.f32 %v2559_v63, %v1996_v12  ;;  %v2010_v14 = vmul.f32 %v2563_v61, %v1996_v12  ;;  %v2021_v17 = vmul.f32 %v2567_v60, %v1996_v12 }
 0x29f   : > { %v2032_v29 = vsel %vm1999_vm5, %v1996_v12, 0.0 }
 0x2a0   : > { %v1997_v59 = vmul.f32 %v2557_v1, %v1995_v10  ;;  %v2009_v3 = vmul.f32 %v2571_v41, %v1995_v10  ;;  %v2001_v56 = vsel %vm1999_vm5, %v1998_v13, 0.0  ;;  %v2020_v4 = vmul.f32 %v2575_v48, %v1995_v10 }
 0x2a1   : > { %v2031_v18 = vsel %vm1999_vm5, %v1995_v10, 0.0  ;;  %v2012_v35 = vsel %vm1999_vm5, %v2010_v14, 0.0  ;;  %v2023_v20 = vsel %vm1999_vm5, %v2021_v17, 0.0 }
 0x2a2   : > { %v2000_v28 = vsel %vm1999_vm5, %v1997_v59, 0.0  ;;  %v2011_v33 = vsel %vm1999_vm5, %v2009_v3, 0.0  ;;  %v2033_v5 = vadd.f32 %v2032_v29, %v2031_v18  ;;  %v2022_v15 = vsel %vm1999_vm5, %v2020_v4, 0.0 }
 0x2a3   : > { %v2002_v16 = vadd.f32 %v2001_v56, %v2000_v28  ;;  %v2013_v6 = vadd.f32 %v2012_v35, %v2011_v33  ;;  %v2024_v21 = vadd.f32 %v2023_v20, %v2022_v15 }
 0x2a4   : > { %v2034_v22 = vrot.slane %v2033_v5, 4 }
 0x2a5   : > { %v2003_v25 = vrot.slane %v2002_v16, 4  ;;  %v2014_v7 = vrot.slane %v2013_v6, 4  ;;  %v2025_v26 = vrot.slane %v2024_v21, 4 }
 0x2a6   : > { %v2035_v8 = vadd.f32 %v2034_v22, %v2033_v5 }
 0x2a7   : > { %v2004_v31 = vadd.f32 %v2003_v25, %v2002_v16  ;;  %v2015_v47 = vadd.f32 %v2014_v7, %v2013_v6  ;;  %v2026_v19 = vadd.f32 %v2025_v26, %v2024_v21 }
 0x2a8   : > { %v2036_v27 = vrot.slane %v2035_v8, 2 }
 0x2a9   : > { %v2005_v24 = vrot.slane %v2004_v31, 2  ;;  %v2016_v30 = vrot.slane %v2015_v47, 2  ;;  %v2027_v23 = vrot.slane %v2026_v19, 2 }
 0x2aa   : > { %v2037_v34 = vadd.f32 %v2036_v27, %v2035_v8 }
 0x2ab   : > { %v2006_v36 = vadd.f32 %v2005_v24, %v2004_v31  ;;  %v2017_v37 = vadd.f32 %v2016_v30, %v2015_v47  ;;  %v2028_v32 = vadd.f32 %v2027_v23, %v2026_v19 }
 0x2ac   : > { %v2038_v43 = vrot.slane %v2037_v34, 1 }
 0x2ad   : > { %v2007_v42 = vrot.slane %v2006_v36, 1  ;;  %v2018_v38 = vrot.slane %v2017_v37, 1  ;;  %v2029_v44 = vrot.slane %v2028_v32, 1 }
 0x2ae   : > { %v2039_v54 = vadd.f32 %v2038_v43, %v2037_v34 }
 0x2af   : > { %v2008_v49 = vadd.f32 %v2007_v42, %v2006_v36  ;;  %v2019_v58 = vadd.f32 %v2018_v38, %v2017_v37  ;;  %v2030_v52 = vadd.f32 %v2029_v44, %v2028_v32 }
 0x2b1   : > { %v2041_v50 = vsel %vm2040_vm6, %v2008_v49, %v2019_v58 }
 0x2b2   : > { %v2043_v55 = vsel %vm2042_vm7, %v2041_v50, %v2030_v52 }
 0x2b3   : > { %v2045_v45 = vsel %vm2044_vm8, %v2043_v55, %v2039_v54 }
 0x2b4   : > { %2047 = vst.msk [vmem:[%s323_s21] sm:$0xf] %vm2046_vm9, %v2045_v45 }
 0x2b5   : > { %2661 = shalt.err (!%p2658_p9)
}
 0x2b6   : > { %s2662_s13 = scalar_lea.hbm %s3968_s0, 64  ;;  %s2666_s22 = scalar_lea.hbm %s4012_s7, 128 }
 0x2b7   : > { %p2663_p7 = scmp.ne.s32.totalorder %s3968_s0, %s2662_s13  ;;  %p2667_p6 = scmp.lt.s32.totalorder %s3968_s0, %s4012_s7 }
 0x2b8   : > { %p2668_p12 = scmp.lt.s32.totalorder %s2666_s22, %s2662_s13 }
 0x2b9   : > { %p2664_p0 = pnand %p2663_p7, %p4033_p11 }
 0x2ba   : > { %p2669_p10 = por %p2668_p12, %p2667_p6 }
 0x2bb   : > { %p2665_p5 = pneg %p2664_p0 }
 0x2bd   : > { %p2670_p8 = pnand %p2669_p10, %p2665_p5 }
 0x2bf   : > { %2673 = shalt.err (!%p2670_p8)
}
 0x2c0   : > { %2470 = dma.vmem_to_hbm [thread:$0]  (%p4033_p11), %s2063_s15, 64, %s3968_s0, %s2049_s19  }
 0x2c1 PF: > { %p2497_p13 = scmp.ge.s32.totalorder %s2720_s27, 2  ;;  %s2074_s9 = sand.u32 1, %s2708_s24  }
 0x2c2   : > { %p4034_p1 = scmp.ne.s32.totalorder %s4020_s12, 0  ;;  %s2075_s18 = scalar_lea.sflag [#allocation3], %s2074_s9 }
 0x2c4   : > { %p2486_p2 = pnand %p2497_p13, %p4034_p1 }
 0x2c6   : > { %p2487_p3 = pneg %p2486_p2 }
 0x2c8   : > { %2703 = dma.done.wait (%p2487_p3), %s2075_s18, 64  }
 0x2c9   : > { %2705 = vsyncadd (%p2487_p3), %s2075_s18, 4294967232  ;;  %p20_p4 = scmp.ge.s32.totalorder %s2793_s30, 4   ;;  %s4035_s24 = smov %s2712_s25 }
 0x2ca   : > { %s4036_s25 = smov %s2716_s26  ;;  %s4037_s26 = smov %s2804_s10 }
 0x2cb   : > { %s4038_s27 = smov %s2793_s30  ;;  %22 = sbr.rel (!%p20_p4) target bundleno = 10 (0xa), region = 102 }
 0x2d0   :  { %2080 = vsyncpa [#allocation3], 1 }
 0x2d1   :  { %2082 = vsyncpa [#allocation3 + $0x1], 1 }
 0x2d2   :  { %2083 = vsyncpa [#allocation4], 1 }
 0x2d3   :  { %2085 = vsyncpa [#allocation4 + $0x1], 1 }
 0x2d4   :  { %2086 = vsyncpa [#allocation6], 1 }
 0x2d5   :  { %2087 = vsyncpa [#allocation9], 1 }

</bundles_post_ra>
